<compile_context>
chip_gen: v6e
topology: v6e:2x2x1
jax: 0.10.0
libtpu: 0.0.40
codegen_flags: <defaults>
</compile_context>

<pallas_src>
import functools

import jax
import jax.numpy as jnp
from jax.experimental import pallas as pl
from jax.experimental.pallas import tpu as pltpu


def _ca_kernel(x_ref, wid_ref, wdx_ref, wdy_ref, b1_ref, w2_ref, b2_ref,
               frame_ref, state_ref):
    """One grid point = one CA step for one batch element.

    x_ref    : (1, H, W, C)      initial state for this batch element (f32)
    wid/wdx/wdy_ref : (C, HID)   split 1x1 conv #1 weight blocks (bf16)
    b1_ref   : (1, HID)          conv #1 bias (f32)
    w2_ref   : (HID, C)          1x1 conv #2 weight (bf16, zero-initialized)
    b2_ref   : (1, C)            conv #2 bias (f32)
    frame_ref: (1, 1, H, W, C)   output frame for (step, batch)
    state_ref: (H+2, W+2, C)     persistent VMEM scratch: zero-padded CA state
    """
    H = frame_ref.shape[2]
    W = frame_ref.shape[3]
    C = frame_ref.shape[4]
    step = pl.program_id(1)

    # First step for this batch element: zero the padded scratch (border stays
    # zero forever) and copy the input state into the interior.
    @pl.when(step == 0)
    def _init():
        state_ref[...] = jnp.zeros_like(state_ref)
        state_ref[1:H + 1, 1:W + 1, :] = x_ref[0]

    xp = state_ref[...]                              # (H+2, W+2, C) old padded state

    # Hoist the 9 shifted views once; reuse for identity, sobel-x, sobel-y, pre-pool.
    shifts = [[xp[i:i + H, j:j + W, :] for j in range(3)] for i in range(3)]
    x = shifts[1][1]                                 # identity (center) slice

    # Depthwise 3x3 cross-correlation with fixed sobel filters.
    # dx = outer([1,2,1], [-1,0,1]) / 8 ; dy = dx.T
    w0, w1c, w2c = 1.0 / 8.0, 2.0 / 8.0, 1.0 / 8.0
    dx = (w0 * (shifts[0][2] - shifts[0][0])
          + w1c * (shifts[1][2] - shifts[1][0])
          + w2c * (shifts[2][2] - shifts[2][0]))
    dy = (w0 * (shifts[2][0] - shifts[0][0])
          + w1c * (shifts[2][1] - shifts[0][1])
          + w2c * (shifts[2][2] - shifts[0][2]))

    # 1x1 convs as MXU matmuls (split weights -> no 3C concat / relayout).
    x_f = x.reshape(H * W, C).astype(jnp.bfloat16)
    dx_f = dx.reshape(H * W, C).astype(jnp.bfloat16)
    dy_f = dy.reshape(H * W, C).astype(jnp.bfloat16)
    h = (jnp.dot(x_f, wid_ref[...], preferred_element_type=jnp.float32)
         + jnp.dot(dx_f, wdx_ref[...], preferred_element_type=jnp.float32)
         + jnp.dot(dy_f, wdy_ref[...], preferred_element_type=jnp.float32)
         + b1_ref[...])
    h = jnp.maximum(h, 0.0)
    d = jnp.dot(h.astype(jnp.bfloat16), w2_ref[...],
                preferred_element_type=jnp.float32) + b2_ref[...]
    x_new = x + d.reshape(H, W, C)                   # dropout=0 -> update_mask == 1

    # alive_pre: 3x3 max-pool of OLD alpha (channel 3), zero pad, threshold 0.1.
    ap_old = xp[:, :, 3:4]                           # (H+2, W+2, 1)
    pre = ap_old[0:H, 0:W, :]
    for i in range(3):
        for j in range(3):
            if (i, j) != (0, 0):
                pre = jnp.maximum(pre, ap_old[i:i + H, j:j + W, :])
    alive_pre = pre > 0.1                            # (H, W, 1) bool

    # Write x_new into the state interior (needed for next step anyway), then
    # compute alive_post from the zero-padded NEW alpha.
    state_ref[1:H + 1, 1:W + 1, :] = x_new
    ap_new = state_ref[:, :, 3:4]                    # (H+2, W+2, 1)
    post = ap_new[0:H, 0:W, :]
    for i in range(3):
        for j in range(3):
            if (i, j) != (0, 0):
                post = jnp.maximum(post, ap_new[i:i + H, j:j + W, :])
    alive_post = post > 0.1                          # (H, W, 1) bool

    x_masked = jnp.where(alive_pre & alive_post, x_new, 0.0)

    # Carry masked state to the next step and emit this frame.
    state_ref[1:H + 1, 1:W + 1, :] = x_masked
    frame_ref[0, 0] = x_masked


def ca_forward_nhwc(x_nhwc, w_id, w_dx, w_dy, b1, w2, b2, num_steps):
    """Runs all CA steps in one fused pallas_call.

    x_nhwc: (N, H, W, C) f32.  Returns frames (num_steps, N, H, W, C) f32.
    """
    N, H, W, C = x_nhwc.shape
    HID = w_id.shape[1]

    return pl.pallas_call(
        _ca_kernel,
        out_shape=jax.ShapeDtypeStruct((num_steps, N, H, W, C), jnp.float32),
        grid_spec=pltpu.PrefetchScalarGridSpec(
            num_scalar_prefetch=0,
            grid=(N, num_steps),
            in_specs=[
                pl.BlockSpec((1, H, W, C), lambda b, s: (b, 0, 0, 0)),
                pl.BlockSpec((C, HID), lambda b, s: (0, 0)),
                pl.BlockSpec((C, HID), lambda b, s: (0, 0)),
                pl.BlockSpec((C, HID), lambda b, s: (0, 0)),
                pl.BlockSpec((1, HID), lambda b, s: (0, 0)),
                pl.BlockSpec((HID, C), lambda b, s: (0, 0)),
                pl.BlockSpec((1, C), lambda b, s: (0, 0)),
            ],
            out_specs=pl.BlockSpec((1, 1, H, W, C),
                                   lambda b, s: (s, b, 0, 0, 0)),
            scratch_shapes=[pltpu.VMEM((H + 2, W + 2, C), jnp.float32)],
        ),
        compiler_params=pltpu.CompilerParams(
            dimension_semantics=("parallel", "arbitrary")),
    )(x_nhwc, w_id, w_dx, w_dy, b1, w2, b2)


@functools.partial(jax.jit, static_argnames=("num_steps",))
def ca_forward(x_nchw, w1, b1, w2, b2, num_steps):
    """Mirrors CA.forward: returns stacked frames (num_steps, N, C, H, W)."""
    C = x_nchw.shape[1]
    x = jnp.transpose(x_nchw, (0, 2, 3, 1))          # NCHW -> NHWC (once)
    # Split the (3C, HID) perception weight into id / dx / dy blocks; bf16 for MXU.
    w_id = w1[0:C].astype(jnp.bfloat16)
    w_dx = w1[C:2 * C].astype(jnp.bfloat16)
    w_dy = w1[2 * C:3 * C].astype(jnp.bfloat16)
    frames = ca_forward_nhwc(x, w_id, w_dx, w_dy, b1,
                             w2.astype(jnp.bfloat16), b2, num_steps)
    return jnp.transpose(frames, (0, 1, 4, 2, 3))    # -> (S, N, C, H, W) (once)


def init_params(key, state_dim=16, hidden_dim=128):
    """Deterministic synthetic parameters matching the module's __init__."""
    k1, k2, k3 = jax.random.split(key, 3)
    fan1 = 3 * state_dim
    bound1 = 1.0 / jnp.sqrt(fan1)
    # 1x1 conv #1: torch weight (hidden, 3C, 1, 1) -> matmul (3C, hidden),
    # rows ordered blocked [id | dx | dy].
    w1 = jax.random.uniform(k1, (fan1, hidden_dim), jnp.float32,
                            minval=-bound1, maxval=bound1)
    b1 = jax.random.uniform(k2, (1, hidden_dim), jnp.float32,
                            minval=-bound1, maxval=bound1)
    # 1x1 conv #2: weight zeroed in __init__ (`weight.data *= 0`), bias random.
    bound2 = 1.0 / jnp.sqrt(hidden_dim)
    w2 = jnp.zeros((hidden_dim, state_dim), jnp.float32)
    b2 = jax.random.uniform(k3, (1, state_dim), jnp.float32,
                            minval=-bound2, maxval=bound2)
    return w1, b1, w2, b2


if __name__ == "__main__":
    state_dim, hidden_dim = 16, 128
    N, H, W = 2, 16, 16
    num_steps = 3

    key = jax.random.PRNGKey(0)
    kx, kp = jax.random.split(key)
    # Input in PyTorch NCHW convention: (N, state_dim, H, W).
    x = jax.random.normal(kx, (N, state_dim, H, W), jnp.float32)
    w1, b1, w2, b2 = init_params(kp, state_dim, hidden_dim)

    frames = ca_forward(x, w1, b1, w2, b2, num_steps)
    frames = jax.block_until_ready(frames)
    assert frames.shape == (num_steps, N, state_dim, H, W)
    assert jnp.all(jnp.isfinite(frames))
    print("KERNEL_OK")
</pallas_src>

<mosaic_0001>
module attributes {stable_mosaic.version = 11 : i64} {
  func.func @_ca_kernel(%arg0: i32, %arg1: i32, %arg2: memref<1x16x16x16xf32, #tpu.memory_space<vmem>>, %arg3: memref<16x128xbf16, #tpu.memory_space<vmem>>, %arg4: memref<16x128xbf16, #tpu.memory_space<vmem>>, %arg5: memref<16x128xbf16, #tpu.memory_space<vmem>>, %arg6: memref<1x128xf32, #tpu.memory_space<vmem>>, %arg7: memref<128x16xbf16, #tpu.memory_space<vmem>>, %arg8: memref<1x16xf32, #tpu.memory_space<vmem>>, %arg9: memref<1x1x16x16x16xf32, #tpu.memory_space<vmem>>, %arg10: memref<18x18x16xf32, #tpu.memory_space<vmem>>) attributes {dimension_semantics = [#tpu.dimension_semantics<parallel>, #tpu.dimension_semantics<arbitrary>], iteration_bounds = array<i64: 2, 3>, scalar_prefetch = 0 : i64, scratch_operands = 1 : i64, tpu.core_type = #tpu.core_type<tc>, window_params = [{transform_indices = @transform_0, window_bounds = array<i64: 1, 16, 16, 16>}, {pipeline_mode = #tpu.pipeline_mode<synchronous>, transform_indices = @transform_1, window_bounds = array<i64: 16, 128>}, {pipeline_mode = #tpu.pipeline_mode<synchronous>, transform_indices = @transform_2, window_bounds = array<i64: 16, 128>}, {pipeline_mode = #tpu.pipeline_mode<synchronous>, transform_indices = @transform_3, window_bounds = array<i64: 16, 128>}, {pipeline_mode = #tpu.pipeline_mode<synchronous>, transform_indices = @transform_4, window_bounds = array<i64: 1, 128>}, {pipeline_mode = #tpu.pipeline_mode<synchronous>, transform_indices = @transform_5, window_bounds = array<i64: 128, 16>}, {pipeline_mode = #tpu.pipeline_mode<synchronous>, transform_indices = @transform_6, window_bounds = array<i64: 1, 16>}, {transform_indices = @transform_7, window_bounds = array<i64: 1, 1, 16, 16, 16>}]} {
    %c0_i32 = arith.constant 0 : i32
    %0 = arith.cmpi eq, %arg1, %c0_i32 : i32
    %1 = arith.extui %0 : i1 to i32
    %c0_i32_0 = arith.constant 0 : i32
    %2 = arith.cmpi ne, %1, %c0_i32_0 : i32
    scf.if %2 {
      %cst_40 = arith.constant 0.000000e+00 : f32
      %112 = vector.broadcast %cst_40 : f32 to vector<18x18x16xf32>
      %c0_41 = arith.constant 0 : index
      %c0_42 = arith.constant 0 : index
      %c0_43 = arith.constant 0 : index
      %113 = vector.load %arg10[%c0_41, %c0_42, %c0_43] : memref<18x18x16xf32, #tpu.memory_space<vmem>>, vector<18x18x16xf32>
      tpu.vector_store %arg10[%c0_41, %c0_42, %c0_43], %112 {strides = array<i32>} : memref<18x18x16xf32, #tpu.memory_space<vmem>>, vector<18x18x16xf32>,
      %c0_44 = arith.constant 0 : index
      %c0_45 = arith.constant 0 : index
      %c0_46 = arith.constant 0 : index
      %c0_47 = arith.constant 0 : index
      %114 = vector.load %arg2[%c0_44, %c0_45, %c0_46, %c0_47] : memref<1x16x16x16xf32, #tpu.memory_space<vmem>>, vector<1x16x16x16xf32>
      %115 = vector.shape_cast %114 : vector<1x16x16x16xf32> to vector<16x16x16xf32>
      %c1_48 = arith.constant 1 : index
      %c1_49 = arith.constant 1 : index
      %c0_50 = arith.constant 0 : index
      %116 = vector.load %arg10[%c1_48, %c1_49, %c0_50] : memref<18x18x16xf32, #tpu.memory_space<vmem>>, vector<16x16x16xf32>
      tpu.vector_store %arg10[%c1_48, %c1_49, %c0_50], %115 {strides = array<i32>} : memref<18x18x16xf32, #tpu.memory_space<vmem>>, vector<16x16x16xf32>,
    } else {
    }
    %c0 = arith.constant 0 : index
    %c0_1 = arith.constant 0 : index
    %c0_2 = arith.constant 0 : index
    %3 = vector.load %arg10[%c0, %c0_1, %c0_2] : memref<18x18x16xf32, #tpu.memory_space<vmem>>, vector<18x18x16xf32>
    %4 = vector.extract_strided_slice %3 {offsets = [0, 0, 0], sizes = [16, 16, 16], strides = [1, 1, 1]} : vector<18x18x16xf32> to vector<16x16x16xf32>
    %5 = vector.extract_strided_slice %3 {offsets = [0, 1, 0], sizes = [16, 16, 16], strides = [1, 1, 1]} : vector<18x18x16xf32> to vector<16x16x16xf32>
    %6 = vector.extract_strided_slice %3 {offsets = [0, 2, 0], sizes = [16, 16, 16], strides = [1, 1, 1]} : vector<18x18x16xf32> to vector<16x16x16xf32>
    %7 = vector.extract_strided_slice %3 {offsets = [1, 0, 0], sizes = [16, 16, 16], strides = [1, 1, 1]} : vector<18x18x16xf32> to vector<16x16x16xf32>
    %8 = vector.extract_strided_slice %3 {offsets = [1, 1, 0], sizes = [16, 16, 16], strides = [1, 1, 1]} : vector<18x18x16xf32> to vector<16x16x16xf32>
    %9 = vector.extract_strided_slice %3 {offsets = [1, 2, 0], sizes = [16, 16, 16], strides = [1, 1, 1]} : vector<18x18x16xf32> to vector<16x16x16xf32>
    %10 = vector.extract_strided_slice %3 {offsets = [2, 0, 0], sizes = [16, 16, 16], strides = [1, 1, 1]} : vector<18x18x16xf32> to vector<16x16x16xf32>
    %11 = vector.extract_strided_slice %3 {offsets = [2, 1, 0], sizes = [16, 16, 16], strides = [1, 1, 1]} : vector<18x18x16xf32> to vector<16x16x16xf32>
    %12 = vector.extract_strided_slice %3 {offsets = [2, 2, 0], sizes = [16, 16, 16], strides = [1, 1, 1]} : vector<18x18x16xf32> to vector<16x16x16xf32>
    %13 = arith.subf %6, %4 : vector<16x16x16xf32>
    %cst = arith.constant 1.250000e-01 : f32
    %14 = vector.broadcast %cst : f32 to vector<16x16x16xf32>
    %15 = arith.mulf %14, %13 : vector<16x16x16xf32>
    %16 = arith.subf %9, %7 : vector<16x16x16xf32>
    %cst_3 = arith.constant 2.500000e-01 : f32
    %17 = vector.broadcast %cst_3 : f32 to vector<16x16x16xf32>
    %18 = arith.mulf %17, %16 : vector<16x16x16xf32>
    %19 = arith.addf %15, %18 : vector<16x16x16xf32>
    %20 = arith.subf %12, %10 : vector<16x16x16xf32>
    %cst_4 = arith.constant 1.250000e-01 : f32
    %21 = vector.broadcast %cst_4 : f32 to vector<16x16x16xf32>
    %22 = arith.mulf %21, %20 : vector<16x16x16xf32>
    %23 = arith.addf %19, %22 : vector<16x16x16xf32>
    %24 = arith.subf %10, %4 : vector<16x16x16xf32>
    %cst_5 = arith.constant 1.250000e-01 : f32
    %25 = vector.broadcast %cst_5 : f32 to vector<16x16x16xf32>
    %26 = arith.mulf %25, %24 : vector<16x16x16xf32>
    %27 = arith.subf %11, %5 : vector<16x16x16xf32>
    %cst_6 = arith.constant 2.500000e-01 : f32
    %28 = vector.broadcast %cst_6 : f32 to vector<16x16x16xf32>
    %29 = arith.mulf %28, %27 : vector<16x16x16xf32>
    %30 = arith.addf %26, %29 : vector<16x16x16xf32>
    %31 = arith.subf %12, %6 : vector<16x16x16xf32>
    %cst_7 = arith.constant 1.250000e-01 : f32
    %32 = vector.broadcast %cst_7 : f32 to vector<16x16x16xf32>
    %33 = arith.mulf %32, %31 : vector<16x16x16xf32>
    %34 = arith.addf %30, %33 : vector<16x16x16xf32>
    %35 = vector.shape_cast %8 : vector<16x16x16xf32> to vector<256x16xf32>
    %36 = arith.truncf %35 : vector<256x16xf32> to vector<256x16xbf16>
    %37 = vector.shape_cast %23 : vector<16x16x16xf32> to vector<256x16xf32>
    %38 = arith.truncf %37 : vector<256x16xf32> to vector<256x16xbf16>
    %39 = vector.shape_cast %34 : vector<16x16x16xf32> to vector<256x16xf32>
    %40 = arith.truncf %39 : vector<256x16xf32> to vector<256x16xbf16>
    %c0_8 = arith.constant 0 : index
    %c0_9 = arith.constant 0 : index
    %41 = vector.load %arg3[%c0_8, %c0_9] : memref<16x128xbf16, #tpu.memory_space<vmem>>, vector<16x128xbf16>
    %cst_10 = arith.constant dense<0.000000e+00> : vector<256x128xf32>
    %42 = tpu.matmul %36, %41, %cst_10 {dimension_numbers = #tpu.dot_dimension_numbers<[1], [0], [0], [1], [0, 0, 1, 1], [], []>} : vector<256x16xbf16>, vector<16x128xbf16>, vector<256x128xf32> -> vector<256x128xf32>
    %c0_11 = arith.constant 0 : index
    %c0_12 = arith.constant 0 : index
    %43 = vector.load %arg4[%c0_11, %c0_12] : memref<16x128xbf16, #tpu.memory_space<vmem>>, vector<16x128xbf16>
    %cst_13 = arith.constant dense<0.000000e+00> : vector<256x128xf32>
    %44 = tpu.matmul %38, %43, %cst_13 {dimension_numbers = #tpu.dot_dimension_numbers<[1], [0], [0], [1], [0, 0, 1, 1], [], []>} : vector<256x16xbf16>, vector<16x128xbf16>, vector<256x128xf32> -> vector<256x128xf32>
    %45 = arith.addf %42, %44 : vector<256x128xf32>
    %c0_14 = arith.constant 0 : index
    %c0_15 = arith.constant 0 : index
    %46 = vector.load %arg5[%c0_14, %c0_15] : memref<16x128xbf16, #tpu.memory_space<vmem>>, vector<16x128xbf16>
    %cst_16 = arith.constant dense<0.000000e+00> : vector<256x128xf32>
    %47 = tpu.matmul %40, %46, %cst_16 {dimension_numbers = #tpu.dot_dimension_numbers<[1], [0], [0], [1], [0, 0, 1, 1], [], []>} : vector<256x16xbf16>, vector<16x128xbf16>, vector<256x128xf32> -> vector<256x128xf32>
    %48 = arith.addf %45, %47 : vector<256x128xf32>
    %c0_17 = arith.constant 0 : index
    %c0_18 = arith.constant 0 : index
    %49 = vector.load %arg6[%c0_17, %c0_18] : memref<1x128xf32, #tpu.memory_space<vmem>>, vector<1x128xf32>
    %50 = vector.broadcast %49 : vector<1x128xf32> to vector<256x128xf32>
    %51 = arith.addf %48, %50 : vector<256x128xf32>
    %cst_19 = arith.constant 0.000000e+00 : f32
    %52 = vector.broadcast %cst_19 : f32 to vector<256x128xf32>
    %53 = arith.maximumf %51, %52 : vector<256x128xf32>
    %54 = arith.truncf %53 : vector<256x128xf32> to vector<256x128xbf16>
    %c0_20 = arith.constant 0 : index
    %c0_21 = arith.constant 0 : index
    %55 = vector.load %arg7[%c0_20, %c0_21] : memref<128x16xbf16, #tpu.memory_space<vmem>>, vector<128x16xbf16>
    %cst_22 = arith.constant dense<0.000000e+00> : vector<256x16xf32>
    %56 = tpu.matmul %54, %55, %cst_22 {dimension_numbers = #tpu.dot_dimension_numbers<[1], [0], [0], [1], [0, 0, 1, 1], [], []>} : vector<256x128xbf16>, vector<128x16xbf16>, vector<256x16xf32> -> vector<256x16xf32>
    %c0_23 = arith.constant 0 : index
    %c0_24 = arith.constant 0 : index
    %57 = vector.load %arg8[%c0_23, %c0_24] : memref<1x16xf32, #tpu.memory_space<vmem>>, vector<1x16xf32>
    %58 = vector.broadcast %57 : vector<1x16xf32> to vector<256x16xf32>
    %59 = arith.addf %56, %58 : vector<256x16xf32>
    %60 = vector.shape_cast %59 : vector<256x16xf32> to vector<16x16x16xf32>
    %61 = arith.addf %8, %60 : vector<16x16x16xf32>
    %62 = vector.extract_strided_slice %3 {offsets = [0, 0, 3], sizes = [18, 18, 1], strides = [1, 1, 1]} : vector<18x18x16xf32> to vector<18x18x1xf32>
    %63 = vector.extract_strided_slice %62 {offsets = [0, 0, 0], sizes = [16, 16, 1], strides = [1, 1, 1]} : vector<18x18x1xf32> to vector<16x16x1xf32>
    %64 = vector.extract_strided_slice %62 {offsets = [0, 1, 0], sizes = [16, 16, 1], strides = [1, 1, 1]} : vector<18x18x1xf32> to vector<16x16x1xf32>
    %65 = arith.maximumf %63, %64 : vector<16x16x1xf32>
    %66 = vector.extract_strided_slice %62 {offsets = [0, 2, 0], sizes = [16, 16, 1], strides = [1, 1, 1]} : vector<18x18x1xf32> to vector<16x16x1xf32>
    %67 = arith.maximumf %65, %66 : vector<16x16x1xf32>
    %68 = vector.extract_strided_slice %62 {offsets = [1, 0, 0], sizes = [16, 16, 1], strides = [1, 1, 1]} : vector<18x18x1xf32> to vector<16x16x1xf32>
    %69 = arith.maximumf %67, %68 : vector<16x16x1xf32>
    %70 = vector.extract_strided_slice %62 {offsets = [1, 1, 0], sizes = [16, 16, 1], strides = [1, 1, 1]} : vector<18x18x1xf32> to vector<16x16x1xf32>
    %71 = arith.maximumf %69, %70 : vector<16x16x1xf32>
    %72 = vector.extract_strided_slice %62 {offsets = [1, 2, 0], sizes = [16, 16, 1], strides = [1, 1, 1]} : vector<18x18x1xf32> to vector<16x16x1xf32>
    %73 = arith.maximumf %71, %72 : vector<16x16x1xf32>
    %74 = vector.extract_strided_slice %62 {offsets = [2, 0, 0], sizes = [16, 16, 1], strides = [1, 1, 1]} : vector<18x18x1xf32> to vector<16x16x1xf32>
    %75 = arith.maximumf %73, %74 : vector<16x16x1xf32>
    %76 = vector.extract_strided_slice %62 {offsets = [2, 1, 0], sizes = [16, 16, 1], strides = [1, 1, 1]} : vector<18x18x1xf32> to vector<16x16x1xf32>
    %77 = arith.maximumf %75, %76 : vector<16x16x1xf32>
    %78 = vector.extract_strided_slice %62 {offsets = [2, 2, 0], sizes = [16, 16, 1], strides = [1, 1, 1]} : vector<18x18x1xf32> to vector<16x16x1xf32>
    %79 = arith.maximumf %77, %78 : vector<16x16x1xf32>
    %cst_25 = arith.constant 1.000000e-01 : f32
    %80 = vector.broadcast %cst_25 : f32 to vector<16x16x1xf32>
    %81 = arith.cmpf ogt, %79, %80 : vector<16x16x1xf32>
    %c1 = arith.constant 1 : index
    %c1_26 = arith.constant 1 : index
    %c0_27 = arith.constant 0 : index
    %82 = vector.load %arg10[%c1, %c1_26, %c0_27] : memref<18x18x16xf32, #tpu.memory_space<vmem>>, vector<16x16x16xf32>
    tpu.vector_store %arg10[%c1, %c1_26, %c0_27], %61 {strides = array<i32>} : memref<18x18x16xf32, #tpu.memory_space<vmem>>, vector<16x16x16xf32>,
    %c0_28 = arith.constant 0 : index
    %c0_29 = arith.constant 0 : index
    %c3 = arith.constant 3 : index
    %83 = vector.load %arg10[%c0_28, %c0_29, %c3] : memref<18x18x16xf32, #tpu.memory_space<vmem>>, vector<18x18x1xf32>
    %84 = vector.extract_strided_slice %83 {offsets = [0, 0, 0], sizes = [16, 16, 1], strides = [1, 1, 1]} : vector<18x18x1xf32> to vector<16x16x1xf32>
    %85 = vector.extract_strided_slice %83 {offsets = [0, 1, 0], sizes = [16, 16, 1], strides = [1, 1, 1]} : vector<18x18x1xf32> to vector<16x16x1xf32>
    %86 = arith.maximumf %84, %85 : vector<16x16x1xf32>
    %87 = vector.extract_strided_slice %83 {offsets = [0, 2, 0], sizes = [16, 16, 1], strides = [1, 1, 1]} : vector<18x18x1xf32> to vector<16x16x1xf32>
    %88 = arith.maximumf %86, %87 : vector<16x16x1xf32>
    %89 = vector.extract_strided_slice %83 {offsets = [1, 0, 0], sizes = [16, 16, 1], strides = [1, 1, 1]} : vector<18x18x1xf32> to vector<16x16x1xf32>
    %90 = arith.maximumf %88, %89 : vector<16x16x1xf32>
    %91 = vector.extract_strided_slice %83 {offsets = [1, 1, 0], sizes = [16, 16, 1], strides = [1, 1, 1]} : vector<18x18x1xf32> to vector<16x16x1xf32>
    %92 = arith.maximumf %90, %91 : vector<16x16x1xf32>
    %93 = vector.extract_strided_slice %83 {offsets = [1, 2, 0], sizes = [16, 16, 1], strides = [1, 1, 1]} : vector<18x18x1xf32> to vector<16x16x1xf32>
    %94 = arith.maximumf %92, %93 : vector<16x16x1xf32>
    %95 = vector.extract_strided_slice %83 {offsets = [2, 0, 0], sizes = [16, 16, 1], strides = [1, 1, 1]} : vector<18x18x1xf32> to vector<16x16x1xf32>
    %96 = arith.maximumf %94, %95 : vector<16x16x1xf32>
    %97 = vector.extract_strided_slice %83 {offsets = [2, 1, 0], sizes = [16, 16, 1], strides = [1, 1, 1]} : vector<18x18x1xf32> to vector<16x16x1xf32>
    %98 = arith.maximumf %96, %97 : vector<16x16x1xf32>
    %99 = vector.extract_strided_slice %83 {offsets = [2, 2, 0], sizes = [16, 16, 1], strides = [1, 1, 1]} : vector<18x18x1xf32> to vector<16x16x1xf32>
    %100 = arith.maximumf %98, %99 : vector<16x16x1xf32>
    %cst_30 = arith.constant 1.000000e-01 : f32
    %101 = vector.broadcast %cst_30 : f32 to vector<16x16x1xf32>
    %102 = arith.cmpf ogt, %100, %101 : vector<16x16x1xf32>
    %103 = arith.andi %81, %102 : vector<16x16x1xi1>
    %cst_31 = arith.constant 0.000000e+00 : f32
    %104 = vector.shape_cast %103 : vector<16x16x1xi1> to vector<16x16x1xi1>
    %105 = vector.broadcast %104 : vector<16x16x1xi1> to vector<16x16x16xi1>
    %106 = vector.broadcast %cst_31 : f32 to vector<16x16x16xf32>
    %107 = arith.select %105, %61, %106 : vector<16x16x16xi1>, vector<16x16x16xf32>
    %c1_32 = arith.constant 1 : index
    %c1_33 = arith.constant 1 : index
    %c0_34 = arith.constant 0 : index
    %108 = vector.load %arg10[%c1_32, %c1_33, %c0_34] : memref<18x18x16xf32, #tpu.memory_space<vmem>>, vector<16x16x16xf32>
    tpu.vector_store %arg10[%c1_32, %c1_33, %c0_34], %107 {strides = array<i32>} : memref<18x18x16xf32, #tpu.memory_space<vmem>>, vector<16x16x16xf32>,
    %c0_35 = arith.constant 0 : index
    %c0_36 = arith.constant 0 : index
    %c0_37 = arith.constant 0 : index
    %c0_38 = arith.constant 0 : index
    %c0_39 = arith.constant 0 : index
    %109 = vector.load %arg9[%c0_35, %c0_36, %c0_37, %c0_38, %c0_39] : memref<1x1x16x16x16xf32, #tpu.memory_space<vmem>>, vector<1x1x16x16x16xf32>
    %110 = vector.shape_cast %109 : vector<1x1x16x16x16xf32> to vector<16x16x16xf32>
    %111 = vector.shape_cast %107 : vector<16x16x16xf32> to vector<1x1x16x16x16xf32>
    tpu.vector_store %arg9[%c0_35, %c0_36, %c0_37, %c0_38, %c0_39], %111 {strides = array<i32>} : memref<1x1x16x16x16xf32, #tpu.memory_space<vmem>>, vector<1x1x16x16x16xf32>,
    return
  }
  func.func @transform_0(%arg0: i32, %arg1: i32) -> (i32, i32, i32, i32) {
    %c0_i32 = arith.constant 0 : i32
    %c0_i32_0 = arith.constant 0 : i32
    %c0_i32_1 = arith.constant 0 : i32
    %c0_i32_2 = arith.constant 0 : i32
    return %arg0, %c0_i32, %c0_i32_0, %c0_i32_1 : i32, i32, i32, i32
  }
  func.func @transform_1(%arg0: i32, %arg1: i32) -> (i32, i32) {
    %c0_i32 = arith.constant 0 : i32
    %c0_i32_0 = arith.constant 0 : i32
    %c0_i32_1 = arith.constant 0 : i32
    return %c0_i32, %c0_i32_0 : i32, i32
  }
  func.func @transform_2(%arg0: i32, %arg1: i32) -> (i32, i32) {
    %c0_i32 = arith.constant 0 : i32
    %c0_i32_0 = arith.constant 0 : i32
    %c0_i32_1 = arith.constant 0 : i32
    return %c0_i32, %c0_i32_0 : i32, i32
  }
  func.func @transform_3(%arg0: i32, %arg1: i32) -> (i32, i32) {
    %c0_i32 = arith.constant 0 : i32
    %c0_i32_0 = arith.constant 0 : i32
    %c0_i32_1 = arith.constant 0 : i32
    return %c0_i32, %c0_i32_0 : i32, i32
  }
  func.func @transform_4(%arg0: i32, %arg1: i32) -> (i32, i32) {
    %c0_i32 = arith.constant 0 : i32
    %c0_i32_0 = arith.constant 0 : i32
    %c0_i32_1 = arith.constant 0 : i32
    return %c0_i32, %c0_i32_0 : i32, i32
  }
  func.func @transform_5(%arg0: i32, %arg1: i32) -> (i32, i32) {
    %c0_i32 = arith.constant 0 : i32
    %c0_i32_0 = arith.constant 0 : i32
    %c0_i32_1 = arith.constant 0 : i32
    return %c0_i32, %c0_i32_0 : i32, i32
  }
  func.func @transform_6(%arg0: i32, %arg1: i32) -> (i32, i32) {
    %c0_i32 = arith.constant 0 : i32
    %c0_i32_0 = arith.constant 0 : i32
    %c0_i32_1 = arith.constant 0 : i32
    return %c0_i32, %c0_i32_0 : i32, i32
  }
  func.func @transform_7(%arg0: i32, %arg1: i32) -> (i32, i32, i32, i32, i32) {
    %c0_i32 = arith.constant 0 : i32
    %c0_i32_0 = arith.constant 0 : i32
    %c0_i32_1 = arith.constant 0 : i32
    %c0_i32_2 = arith.constant 0 : i32
    return %arg1, %arg0, %c0_i32, %c0_i32_0, %c0_i32_1 : i32, i32, i32, i32, i32
  }
}

</mosaic_0001>

<bundles_post_ra>
// kernel: ca_forward.1
= control target key start
LH: loop header
LB: loop body
LE: loop exit
PB: predicated region body
PF: predicated region fallthrough
CT: control target
= control target key end

     0   :  { %s5126_s24 = smov 0   ;;  %s5128_s25 = smov 0   ;;  %s7599_s0 = inlined_call_operand.vmem [shape: f32[2,16,16,16], index: 0, kind: input, shape index: {}]   ;;  %s7600_s1 = inlined_call_operand.vmem [shape: bf16[16,128], index: 1, kind: input, shape index: {}]   ;;  %s7601_s2 = inlined_call_operand.vmem [shape: bf16[16,128], index: 2, kind: input, shape index: {}]   ;;  %s7602_s3 = inlined_call_operand.vmem [shape: bf16[16,128], index: 3, kind: input, shape index: {}]   ;;  %s7603_s4 = inlined_call_operand.vmem [shape: f32[1,128], index: 4, kind: input, shape index: {}]   ;;  %s7604_s5 = inlined_call_operand.vmem [shape: bf16[128,16], index: 5, kind: input, shape index: {}]   ;;  %s7605_s6 = inlined_call_operand.vmem [shape: f32[1,16], index: 6, kind: input, shape index: {}]   ;;  %s7606_s7 = inlined_call_operand.vmem [shape: f32[3,2,16,16,16], index: 7, kind: output, shape index: {}]  }
   0x1   :  { %s5130_s26 = smov 0   ;;  %s5132_s27 = smov 0  }
   0x2   :  { %s5134_s28 = smov 0  }
   0x3 LB: > { %s26_s29 = sadd.s32 1, %s5073_s26  ;;  %s29_s30 = sadd.s32 1, %s5077_s27  ;;  %s5081_s28 = sphi %s5134_s28, %s17_s28   ;;  %s5077_s27 = sphi %s5132_s27, %s7950_s27   ;;  %s5073_s26 = sphi %s5130_s26, %s7949_s26   ;;  %s5069_s25 = sphi %s5128_s25, %s7948_s25   ;;  %s5065_s24 = sphi %s5126_s24, %s7947_s24  }
   0x4   : > { %p27_p0 = scmp.ge.s32.totalorder %s26_s29, 3  ;;  %p4591_p1 = scmp.ge.s32.totalorder %s5081_s28, 1 }
   0x5   : > { %p251_p2 = scmp.lt.s32.totalorder %s5081_s28, 7 }
   0x6   : > { %s7952_s29 = smov (%p27_p0, %s26_s29), 0  ;;  %s7954_s30 = smov (!%p27_p0, %s29_s30), %s5077_s27 }
   0x7   : > { %p252_p3 = pnand %p4591_p1, %p251_p2  ;;  %p31_p4 = scmp.ge.s32.totalorder %s7954_s30, 2 }
   0x9   : > { %s7956_s30 = smov (%p31_p4, %s7954_s30), 0  ;;  %255 = sbr.rel (%p252_p3) target bundleno = 958 (0x3be), region = 48 }
   0xe   : > { %p287_p5 = scmp.lt.s32.totalorder %s5069_s25, 1  ;;  %p292_p6 = scmp.lt.s32.totalorder %s5065_s24, 2 }
   0xf   : > { %p4597_p7 = scmp.ne.s32.totalorder %s5065_s24, 0 }
  0x10   : > { %s7958_s25 = smov (!%p287_p5, %s5069_s25), 1 }
  0x11   : > { %s293_s8 = scalar_select %p292_p6, %s5065_s24, 2 }
  0x12   : > { %s4661_s9 = sshll.u32 %s7958_s25, 8  ;;  %s4594_s10 = sshll.u32 %s7958_s25, 5 }
  0x13   : > { %s5159_s13 = scalar_lea.vmem %s7599_s0, %s4661_s9  ;;  %s4595_s14 = sshll.u32 %s293_s8, 6 }
  0x14   : > { %s298_s15 = sadd.s32 %s4595_s14, %s4594_s10  ;;  %305 = sbr.rel (%p4597_p7) target bundleno = 69 (0x45), region = 52 }
  0x15   : > { %s4596_s16 = sshll.u32 %s298_s15, 3 }
  0x16   : > { %s5164_s19 = scalar_lea.vmem %s7606_s7, %s4596_s16 }
  0x19   : > { %vm306_vm0 = vcmask 130048   ;;  %vm309_vm1 = vcmask 123904   ;;  %v362_v0 = vld [vmem:[%s5159_s13] sm:$0xff]  ;;  %v363_v1 = vld [vmem:[%s5159_s13 + $0x8] sm:$0xff]  ;;  %v364_v2 = vld [vmem:[%s5159_s13 + $0x10] sm:$0xff]  ;;  %v5083_v3 = vmov 0.0  }
  0x1a   : > { %311 = vst.msk [vmem:[#allocation2 + $0x18] sm:$0xff] %vm306_vm0, %v5083_v3  ;;  %307 = vst.msk [vmem:[#allocation2] sm:$0xff] %vm306_vm0, %v5083_v3  ;;  %v365_v4 = vld [vmem:[%s5159_s13 + $0x18] sm:$0xff]  ;;  %v366_v5 = vld [vmem:[%s5159_s13 + $0x20] sm:$0xff] }
  0x1b   : > { %308 = vst.msk [vmem:[#allocation2 + $0x8] sm:$0xff] %vm306_vm0, %v5083_v3  ;;  %312 = vst.msk [vmem:[#allocation2 + $0x20] sm:$0xff] %vm306_vm0, %v5083_v3  ;;  %v367_v6 = vld [vmem:[%s5159_s13 + $0x28] sm:$0xff]  ;;  %v368_v7 = vld [vmem:[%s5159_s13 + $0x30] sm:$0xff] }
  0x1c   : > { %314 = vst.msk [vmem:[#allocation2 + $0x30] sm:$0xff] %vm306_vm0, %v5083_v3  ;;  %315 = vst.msk [vmem:[#allocation2 + $0x38] sm:$0xff] %vm306_vm0, %v5083_v3  ;;  %v369_v8 = vld [vmem:[%s5159_s13 + $0x38] sm:$0xff]  ;;  %v370_v9 = vld [vmem:[%s5159_s13 + $0x40] sm:$0xff] }
  0x1d   : > { %317 = vst.msk [vmem:[#allocation2 + $0x48] sm:$0xff] %vm306_vm0, %v5083_v3  ;;  %318 = vst.msk [vmem:[#allocation2 + $0x50] sm:$0xff] %vm306_vm0, %v5083_v3  ;;  %v371_v10 = vld [vmem:[%s5159_s13 + $0x48] sm:$0xff]  ;;  %v372_v11 = vld [vmem:[%s5159_s13 + $0x50] sm:$0xff] }
  0x1e   : > { %320 = vst.msk [vmem:[#allocation2 + $0x60] sm:$0xff] %vm306_vm0, %v5083_v3  ;;  %321 = vst.msk [vmem:[#allocation2 + $0x68] sm:$0xff] %vm306_vm0, %v5083_v3  ;;  %v373_v12 = vld [vmem:[%s5159_s13 + $0x58] sm:$0xff]  ;;  %v374_v13 = vld [vmem:[%s5159_s13 + $0x60] sm:$0xff] }
  0x1f   : > { %323 = vst.msk [vmem:[#allocation2 + $0x78] sm:$0xff] %vm306_vm0, %v5083_v3  ;;  %324 = vst.msk [vmem:[#allocation2 + $0x80] sm:$0xff] %vm306_vm0, %v5083_v3  ;;  %v375_v14 = vld [vmem:[%s5159_s13 + $0x68] sm:$0xff]  ;;  %v376_v15 = vld [vmem:[%s5159_s13 + $0x70] sm:$0xff] }
  0x20   : > { %326 = vst.msk [vmem:[#allocation2 + $0x90] sm:$0xff] %vm306_vm0, %v5083_v3  ;;  %327 = vst.msk [vmem:[#allocation2 + $0x98] sm:$0xff] %vm306_vm0, %v5083_v3  ;;  %v377_v16 = vld [vmem:[%s5159_s13 + $0x78] sm:$0xff]  ;;  %v378_v17 = vld [vmem:[%s5159_s13 + $0x80] sm:$0xff] }
  0x21   : > { %329 = vst.msk [vmem:[#allocation2 + $0xa8] sm:$0xff] %vm306_vm0, %v5083_v3  ;;  %330 = vst.msk [vmem:[#allocation2 + $0xb0] sm:$0xff] %vm306_vm0, %v5083_v3  ;;  %v379_v18 = vld [vmem:[%s5159_s13 + $0x88] sm:$0xff]  ;;  %v380_v19 = vld [vmem:[%s5159_s13 + $0x90] sm:$0xff] }
  0x22   : > { %332 = vst.msk [vmem:[#allocation2 + $0xc0] sm:$0xff] %vm306_vm0, %v5083_v3  ;;  %333 = vst.msk [vmem:[#allocation2 + $0xc8] sm:$0xff] %vm306_vm0, %v5083_v3  ;;  %v381_v20 = vld [vmem:[%s5159_s13 + $0x98] sm:$0xff]  ;;  %v382_v21 = vld [vmem:[%s5159_s13 + $0xa0] sm:$0xff] }
  0x23   : > { %335 = vst.msk [vmem:[#allocation2 + $0xd8] sm:$0xff] %vm306_vm0, %v5083_v3  ;;  %336 = vst.msk [vmem:[#allocation2 + $0xe0] sm:$0xff] %vm306_vm0, %v5083_v3  ;;  %v383_v22 = vld [vmem:[%s5159_s13 + $0xa8] sm:$0xff]  ;;  %v384_v23 = vld [vmem:[%s5159_s13 + $0xb0] sm:$0xff] }
  0x24   : > { %338 = vst.msk [vmem:[#allocation2 + $0xf0] sm:$0xff] %vm306_vm0, %v5083_v3  ;;  %339 = vst.msk [vmem:[#allocation2 + $0xf8] sm:$0xff] %vm306_vm0, %v5083_v3  ;;  %v385_v24 = vld [vmem:[%s5159_s13 + $0xb8] sm:$0xff]  ;;  %v386_v25 = vld [vmem:[%s5159_s13 + $0xc0] sm:$0xff] }
  0x25   : > { %341 = vst.msk [vmem:[#allocation2 + $0x108] sm:$0xff] %vm306_vm0, %v5083_v3  ;;  %342 = vst.msk [vmem:[#allocation2 + $0x110] sm:$0xff] %vm306_vm0, %v5083_v3  ;;  %v387_v26 = vld [vmem:[%s5159_s13 + $0xc8] sm:$0xff]  ;;  %v388_v27 = vld [vmem:[%s5159_s13 + $0xd0] sm:$0xff] }
  0x26   : > { %344 = vst.msk [vmem:[#allocation2 + $0x120] sm:$0xff] %vm306_vm0, %v5083_v3  ;;  %345 = vst.msk [vmem:[#allocation2 + $0x128] sm:$0xff] %vm306_vm0, %v5083_v3  ;;  %v389_v28 = vld [vmem:[%s5159_s13 + $0xd8] sm:$0xff]  ;;  %v390_v29 = vld [vmem:[%s5159_s13 + $0xe0] sm:$0xff] }
  0x27   : > { %347 = vst.msk [vmem:[#allocation2 + $0x138] sm:$0xff] %vm306_vm0, %v5083_v3  ;;  %348 = vst.msk [vmem:[#allocation2 + $0x140] sm:$0xff] %vm306_vm0, %v5083_v3  ;;  %v391_v30 = vld [vmem:[%s5159_s13 + $0xe8] sm:$0xff]  ;;  %v392_v31 = vld [vmem:[%s5159_s13 + $0xf0] sm:$0xff] }
  0x28   : > { %350 = vst.msk [vmem:[#allocation2 + $0x150] sm:$0xff] %vm306_vm0, %v5083_v3  ;;  %351 = vst.msk [vmem:[#allocation2 + $0x158] sm:$0xff] %vm306_vm0, %v5083_v3  ;;  %v393_v32 = vld [vmem:[%s5159_s13 + $0xf8] sm:$0xff] }
  0x29   : > { %353 = vst.msk [vmem:[#allocation2 + $0x168] sm:$0xff] %vm306_vm0, %v5083_v3  ;;  %354 = vst.msk [vmem:[#allocation2 + $0x170] sm:$0xff] %vm306_vm0, %v5083_v3 }
  0x2a   : > { %356 = vst.msk [vmem:[#allocation2 + $0x180] sm:$0xff] %vm306_vm0, %v5083_v3  ;;  %357 = vst.msk [vmem:[#allocation2 + $0x188] sm:$0xff] %vm306_vm0, %v5083_v3 }
  0x2b   : > { %359 = vst.msk [vmem:[#allocation2 + $0x198] sm:$0xff] %vm306_vm0, %v5083_v3  ;;  %360 = vst.msk [vmem:[#allocation2 + $0x1a0] sm:$0xff] %vm306_vm0, %v5083_v3 }
  0x2c   : > { %313 = vst.msk [vmem:[#allocation2 + $0x28] sm:$0x3] %vm309_vm1, %v5083_v3  ;;  %310 = vst.msk [vmem:[#allocation2 + $0x10] sm:$0x3] %vm309_vm1, %v5083_v3 }
  0x2d   : > { %316 = vst.msk [vmem:[#allocation2 + $0x40] sm:$0x3] %vm309_vm1, %v5083_v3  ;;  %319 = vst.msk [vmem:[#allocation2 + $0x58] sm:$0x3] %vm309_vm1, %v5083_v3 }
  0x2e   : > { %322 = vst.msk [vmem:[#allocation2 + $0x70] sm:$0x3] %vm309_vm1, %v5083_v3  ;;  %325 = vst.msk [vmem:[#allocation2 + $0x88] sm:$0x3] %vm309_vm1, %v5083_v3 }
  0x2f   : > { %328 = vst.msk [vmem:[#allocation2 + $0xa0] sm:$0x3] %vm309_vm1, %v5083_v3  ;;  %331 = vst.msk [vmem:[#allocation2 + $0xb8] sm:$0x3] %vm309_vm1, %v5083_v3 }
  0x30   : > { %334 = vst.msk [vmem:[#allocation2 + $0xd0] sm:$0x3] %vm309_vm1, %v5083_v3  ;;  %337 = vst.msk [vmem:[#allocation2 + $0xe8] sm:$0x3] %vm309_vm1, %v5083_v3 }
  0x31   : > { %340 = vst.msk [vmem:[#allocation2 + $0x100] sm:$0x3] %vm309_vm1, %v5083_v3  ;;  %343 = vst.msk [vmem:[#allocation2 + $0x118] sm:$0x3] %vm309_vm1, %v5083_v3 }
  0x32   : > { %346 = vst.msk [vmem:[#allocation2 + $0x130] sm:$0x3] %vm309_vm1, %v5083_v3  ;;  %349 = vst.msk [vmem:[#allocation2 + $0x148] sm:$0x3] %vm309_vm1, %v5083_v3 }
  0x33   : > { %352 = vst.msk [vmem:[#allocation2 + $0x160] sm:$0x3] %vm309_vm1, %v5083_v3  ;;  %355 = vst.msk [vmem:[#allocation2 + $0x178] sm:$0x3] %vm309_vm1, %v5083_v3 }
  0x34   : > { %358 = vst.msk [vmem:[#allocation2 + $0x190] sm:$0x3] %vm309_vm1, %v5083_v3  ;;  %361 = vst.msk [vmem:[#allocation2 + $0x1a8] sm:$0x3] %vm309_vm1, %v5083_v3 }
  0x35   : > { %395 = vst.msk [vmem:[#allocation2 + $0x19] sm:$0xff] %vm306_vm0, %v362_v0  ;;  %396 = vst.msk [vmem:[#allocation2 + $0x21] sm:$0xff] %vm306_vm0, %v363_v1 }
  0x36   : > { %397 = vst.msk [vmem:[#allocation2 + $0x31] sm:$0xff] %vm306_vm0, %v364_v2  ;;  %398 = vst.msk [vmem:[#allocation2 + $0x39] sm:$0xff] %vm306_vm0, %v365_v4 }
  0x37   : > { %399 = vst.msk [vmem:[#allocation2 + $0x49] sm:$0xff] %vm306_vm0, %v366_v5  ;;  %400 = vst.msk [vmem:[#allocation2 + $0x51] sm:$0xff] %vm306_vm0, %v367_v6 }
  0x38   : > { %401 = vst.msk [vmem:[#allocation2 + $0x61] sm:$0xff] %vm306_vm0, %v368_v7  ;;  %402 = vst.msk [vmem:[#allocation2 + $0x69] sm:$0xff] %vm306_vm0, %v369_v8 }
  0x39   : > { %403 = vst.msk [vmem:[#allocation2 + $0x79] sm:$0xff] %vm306_vm0, %v370_v9  ;;  %404 = vst.msk [vmem:[#allocation2 + $0x81] sm:$0xff] %vm306_vm0, %v371_v10 }
  0x3a   : > { %405 = vst.msk [vmem:[#allocation2 + $0x91] sm:$0xff] %vm306_vm0, %v372_v11  ;;  %406 = vst.msk [vmem:[#allocation2 + $0x99] sm:$0xff] %vm306_vm0, %v373_v12 }
  0x3b   : > { %407 = vst.msk [vmem:[#allocation2 + $0xa9] sm:$0xff] %vm306_vm0, %v374_v13  ;;  %408 = vst.msk [vmem:[#allocation2 + $0xb1] sm:$0xff] %vm306_vm0, %v375_v14 }
  0x3c   : > { %409 = vst.msk [vmem:[#allocation2 + $0xc1] sm:$0xff] %vm306_vm0, %v376_v15  ;;  %410 = vst.msk [vmem:[#allocation2 + $0xc9] sm:$0xff] %vm306_vm0, %v377_v16 }
  0x3d   : > { %411 = vst.msk [vmem:[#allocation2 + $0xd9] sm:$0xff] %vm306_vm0, %v378_v17  ;;  %412 = vst.msk [vmem:[#allocation2 + $0xe1] sm:$0xff] %vm306_vm0, %v379_v18 }
  0x3e   : > { %413 = vst.msk [vmem:[#allocation2 + $0xf1] sm:$0xff] %vm306_vm0, %v380_v19  ;;  %414 = vst.msk [vmem:[#allocation2 + $0xf9] sm:$0xff] %vm306_vm0, %v381_v20 }
  0x3f   : > { %415 = vst.msk [vmem:[#allocation2 + $0x109] sm:$0xff] %vm306_vm0, %v382_v21  ;;  %416 = vst.msk [vmem:[#allocation2 + $0x111] sm:$0xff] %vm306_vm0, %v383_v22 }
  0x40   : > { %417 = vst.msk [vmem:[#allocation2 + $0x121] sm:$0xff] %vm306_vm0, %v384_v23  ;;  %418 = vst.msk [vmem:[#allocation2 + $0x129] sm:$0xff] %vm306_vm0, %v385_v24 }
  0x41   : > { %419 = vst.msk [vmem:[#allocation2 + $0x139] sm:$0xff] %vm306_vm0, %v386_v25  ;;  %420 = vst.msk [vmem:[#allocation2 + $0x141] sm:$0xff] %vm306_vm0, %v387_v26 }
  0x42   : > { %421 = vst.msk [vmem:[#allocation2 + $0x151] sm:$0xff] %vm306_vm0, %v388_v27  ;;  %422 = vst.msk [vmem:[#allocation2 + $0x159] sm:$0xff] %vm306_vm0, %v389_v28 }
  0x43   : > { %423 = vst.msk [vmem:[#allocation2 + $0x169] sm:$0xff] %vm306_vm0, %v390_v29  ;;  %424 = vst.msk [vmem:[#allocation2 + $0x171] sm:$0xff] %vm306_vm0, %v391_v30 }
  0x44   : > { %425 = vst.msk [vmem:[#allocation2 + $0x181] sm:$0xff] %vm306_vm0, %v392_v31  ;;  %426 = vst.msk [vmem:[#allocation2 + $0x189] sm:$0xff] %vm306_vm0, %v393_v32 }
  0x45 PF: > { %v4932_v33 = vld [vmem:[%s7601_s2] sm:$0xff]   ;;  %v428_v36 = vld [vmem:[#allocation2 + $0x8] sm:$0xff]  ;;  %vm513_vm2 = vcmask 1041408   ;;  %v430_v37 = vld [vmem:[#allocation2 + $0x18] sm:$0xff]  ;;  %vm1054_vm3 = vcmask 1046528   ;;  %vm1263_vm4 = vcmask 1045504  }
  0x46   : > { %v4933_v34 = vld [vmem:[%s7600_s1] sm:$0xff]   ;;  %4737 = vmatprep.subr.bf16.mxu0 %v4932_v33  ;;  %v515_v40 = vrot.slane %v428_v36, 6  ;;  %v429_v41 = vld [vmem:[#allocation2 + $0x10] sm:$0x3]  ;;  %v5294_v43 = vld [vmem:[#allocation2 + $0x38] sm:$0xff]  ;;  %v517_v44 = vrot.slane %v430_v37, 6 }
  0x47   : > { %v427_v35 = vld [vmem:[#allocation2] sm:$0xff]  ;;  %4738 = vmatpush3.bf16.msra.mxu0 %v4932_v33  ;;  %4771 = vmatprep.subr.bf16.mxu1 %v4933_v34  ;;  %v5292_v42 = vld [vmem:[#allocation2 + $0x30] sm:$0xff]  ;;  %v432_v46 = vld [vmem:[#allocation2 + $0x28] sm:$0x3]  ;;  %v521_v49 = vrot.slane %v5294_v43, 6  ;;  %v1424_v15 = vrot.slane %v430_v37, 1 }
  0x48   : > { %v5290_v38 = vld [vmem:[#allocation2 + $0x20] sm:$0xff]  ;;  %v514_v39 = vrot.slane %v427_v35, 6  ;;  %4772 = vmatpush3.bf16.msra.mxu1 %v4933_v34  ;;  %v520_v48 = vrot.slane %v5292_v42, 6  ;;  %v612_v55 = vsub.f32 %v429_v41, %v515_v40  ;;  %v613_v56 = vsub.f32 %v430_v37, %v517_v44  ;;  %v5309_v58 = vld [vmem:[#allocation2 + $0x48] sm:$0xff]  ;;  %v5311_v59 = vld [vmem:[#allocation2 + $0x50] sm:$0xff] }
  0x49   : > { %v518_v45 = vrot.slane %v5290_v38, 6  ;;  %v5300_v50 = vld [vmem:[#allocation2 + $0x40] sm:$0x3]  ;;  %v523_v3 = vrot.slane %v5309_v58, 6  ;;  %v524_v4 = vrot.slane %v5311_v59, 6  ;;  %v1425_v16 = vrot.slane %v5290_v38, 1 }
  0x4a   : > { %v516_v47 = vsel %vm513_vm2, %v514_v39, %v515_v40  ;;  %v610_v52 = vsub.f32 %v427_v35, %v514_v39  ;;  %v522_v54 = vsel %vm513_vm2, %v520_v48, %v521_v49  ;;  %v5307_v57 = vld [vmem:[%s7602_s3] sm:$0xff]   ;;  %v616_v62 = vsub.f32 %v5292_v42, %v520_v48  ;;  %v5321_v17 = vld [vmem:[#allocation2 + $0x58] sm:$0x3] }
  0x4b   : > { %v519_v51 = vsel %vm513_vm2, %v517_v44, %v518_v45  ;;  %v611_v53 = vsub.f32 %v428_v36, %v516_v47  ;;  %v615_v61 = vsub.f32 %v432_v46, %v518_v45  ;;  %v617_v63 = vsub.f32 %v5294_v43, %v522_v54  ;;  %4805 = vmatprep.subr.bf16.mxu0 %v5307_v57 }
  0x4c   : > { %v614_v60 = vsub.f32 %v5290_v38, %v519_v51  ;;  %v618_v0 = vsub.f32 %v5300_v50, %v521_v49  ;;  %v658_v1 = vmul.f32 0.125, %v610_v52  ;;  %v660_v5 = vmul.f32 0.125, %v612_v55  ;;  %v5345_v49 = vld [vmem:[#allocation2 + $0x60] sm:$0xff] }
  0x4d   : > { %v659_v2 = vmul.f32 0.125, %v611_v53  ;;  %v664_v6 = vmul.f32 0.125, %v616_v62  ;;  %v665_v7 = vmul.f32 0.125, %v617_v63  ;;  %v717_v8 = vmul.f32 0.25, %v613_v56  ;;  %v5347_v53 = vld [vmem:[#allocation2 + $0x68] sm:$0xff] }
  0x4e   : > { %v718_v9 = vmul.f32 0.25, %v614_v60  ;;  %v719_v10 = vmul.f32 0.25, %v615_v61  ;;  %v666_v11 = vmul.f32 0.125, %v618_v0  ;;  %v525_v18 = vsel %vm513_vm2, %v523_v3, %v524_v4 }
  0x4f   : > { %v765_v12 = vadd.f32 %v717_v8, %v658_v1  ;;  %v5325_v22 = vsel %vm1054_vm3, %v1424_v15, %v1425_v16  ;;  %v1427_v23 = vrot.slane %v432_v46, 1  ;;  %v619_v24 = vsub.f32 %v5309_v58, %v523_v3 }
  0x50   : > { %v766_v13 = vadd.f32 %v718_v9, %v659_v2  ;;  %v767_v14 = vadd.f32 %v719_v10, %v660_v5  ;;  %vm1754_vm5 = vcmask 130048   ;;  %v620_v27 = vsub.f32 %v5311_v59, %v525_v18 }
  0x51   : > { %v830_v19 = vadd.f32 %v765_v12, %v664_v6  ;;  %v621_v28 = vsub.f32 %v5321_v17, %v524_v4  ;;  %v5331_v30 = vsel %vm1054_vm3, %v1425_v16, %v1427_v23  ;;  %v661_v31 = vmul.f32 0.125, %v613_v56 }
  0x52   : > { %v831_v20 = vadd.f32 %v766_v13, %v665_v7  ;;  %v832_v21 = vadd.f32 %v767_v14, %v666_v11  ;;  %v720_v32 = vmul.f32 0.25, %v616_v62  ;;  %v1536_v34 = vpack.c.bf16 %v5331_v30, %v5325_v22  ;;  %v5353_v62 = vld [vmem:[#allocation2 + $0x70] sm:$0x3]  ;;  %v5368_v14 = vld [vmem:[#allocation2 + $0x78] sm:$0xff] }
  0x53   : > { %v1600_v25 = vrot.slane %v830_v19, 2  ;;  %v662_v35 = vmul.f32 0.125, %v614_v60  ;;  %v663_v37 = vmul.f32 0.125, %v615_v61  ;;  %v721_v38 = vmul.f32 0.25, %v617_v63 }
  0x54   : > { %v1601_v26 = vrot.slane %v831_v20, 2  ;;  %v1603_v29 = vrot.slane %v832_v21, 2  ;;  %v722_v39 = vmul.f32 0.25, %v618_v0  ;;  %4773 = vmatprep.mubr.msk.bf16.mxu1 %vm1754_vm5, %v1536_v34  ;;  %v723_v41 = vmul.f32 0.25, %v619_v24 }
  0x55   : > { %v5338_v44 = vmul.f32 0.125, %v619_v24  ;;  %v724_v45 = vmul.f32 0.25, %v620_v27  ;;  %v5341_v46 = vmul.f32 0.125, %v620_v27  ;;  %v5343_v47 = vmul.f32 0.125, %v621_v28 }
  0x56   : > { %v1602_v33 = vsel %vm1263_vm4, %v1600_v25, %v1601_v26  ;;  %v1604_v36 = vsel %vm1263_vm4, %v1601_v26, %v1603_v29  ;;  %v768_v48 = vadd.f32 %v720_v32, %v661_v31  ;;  %v769_v51 = vadd.f32 %v721_v38, %v662_v35 }
  0x57   : > { %v1712_v40 = vpack.c.bf16 %v1604_v36, %v1602_v33  ;;  %v770_v52 = vadd.f32 %v722_v39, %v663_v37  ;;  %v725_v54 = vmul.f32 0.25, %v621_v28  ;;  %v1429_v56 = vrot.slane %v5292_v42, 1 }
  0x58   : > { %v833_v55 = vadd.f32 %v768_v48, %v5338_v44  ;;  %v834_v60 = vadd.f32 %v769_v51, %v5341_v46  ;;  %v771_v63 = vadd.f32 %v723_v41, %v664_v6  ;;  %v1430_v1 = vrot.slane %v5294_v43, 1 }
  0x59   : > { %4739 = vmatprep.mubr.msk.bf16.mxu0 %vm1754_vm5, %v1712_v40  ;;  %v835_v61 = vadd.f32 %v770_v52, %v5343_v47  ;;  %v1432_v4 = vrot.slane %v5300_v50, 1  ;;  %v526_v5 = vrot.slane %v5345_v49, 6  ;;  %v772_v8 = vadd.f32 %v724_v45, %v665_v7  ;;  %v5370_v50 = vld [vmem:[#allocation2 + $0x80] sm:$0xff] }
  0x5a   : > { %v1605_v0 = vrot.slane %v833_v55, 2  ;;  %v1606_v2 = vrot.slane %v834_v60, 2  ;;  %v773_v9 = vadd.f32 %v725_v54, %v666_v11  ;;  %v5359_v42 = vsel %vm1054_vm3, %v1429_v56, %v1430_v1  ;;  %v5416_v60 = vld [vmem:[#allocation2 + $0x90] sm:$0xff] }
  0x5b   : > { %v1608_v3 = vrot.slane %v835_v61, 2  ;;  %7732 = vst [vmem:[#allocation3_spill] sm:$0xff] %v5359_v42  ;;  %v527_v10 = vrot.slane %v5347_v53, 6  ;;  %v5365_v13 = vsel %vm1054_vm3, %v1430_v1, %v1432_v4  ;;  %v622_v43 = vsub.f32 %v5345_v49, %v526_v5  ;;  %v5418_v61 = vld [vmem:[#allocation2 + $0x98] sm:$0xff] }
  0x5c   : > { %v1607_v12 = vsel %vm1263_vm4, %v1605_v0, %v1606_v2  ;;  %7733 = vst [vmem:[#allocation4_spill] sm:$0xff] %v5365_v13  ;;  %v1537_v11 = vpack.c.bf16 %v5365_v13, %v5359_v42  ;;  %v1434_v20 = vrot.slane %v5309_v58, 1  ;;  %v1435_v21 = vrot.slane %v5311_v59, 1  ;;  %v5393_v59 = vld [vmem:[#allocation2 + $0x88] sm:$0x3]  ;;  %v4958_v42 = vld [vmem:[#allocation2 + $0x78] sm:$0xff] }
  0x5d   : > { %v1609_v6 = vsel %vm1263_vm4, %v1606_v2, %v1608_v3  ;;  %v528_v15 = vsel %vm513_vm2, %v526_v5, %v527_v10  ;;  %v624_v16 = vsub.f32 %v5353_v62, %v527_v10  ;;  %v5377_v19 = vmul.f32 0.125, %v622_v43  ;;  %v5430_v5 = vld [vmem:[#allocation2 + $0xa0] sm:$0x3] }
  0x5e   : > { %v1713_v7 = vpack.c.bf16 %v1609_v6, %v1607_v12  ;;  %v623_v18 = vsub.f32 %v5347_v53, %v528_v15  ;;  %4774 = vmatmul.mubr.msk.bf16.vlgmr.msra.gmra.mxu1 %vm1754_vm5, %v1537_v11  ;;  %v1437_v24 = vrot.slane %v5321_v17, 1  ;;  %v529_v25 = vrot.slane %v5368_v14, 6 }
  0x5f   : > { %v5383_v23 = vmul.f32 0.125, %v624_v16  ;;  %v530_v26 = vrot.slane %v5370_v50, 6  ;;  %v836_v28 = vadd.f32 %v771_v63, %v5377_v19  ;;  %v5391_v58 = vsel %vm1054_vm3, %v1434_v20, %v1435_v21 }
  0x60   : > { %4740 = vmatmul.mubr.msk.bf16.vlgmr.msra.gmra.mxu0 %vm1754_vm5, %v1713_v7  ;;  %v671_v27 = vmul.f32 0.125, %v623_v18  ;;  %7734 = vst [vmem:[#allocation5_spill] sm:$0xff] %v5391_v58  ;;  %v726_v29 = vmul.f32 0.25, %v622_v43  ;;  %v5397_v32 = vsel %vm1054_vm3, %v1435_v21, %v1437_v24  ;;  %v625_v33 = vsub.f32 %v5368_v14, %v529_v25 }
  0x61   : > { %4806 = vmatpush3.bf16.msra.mxu0 %v5307_v57  ;;  %v838_v31 = vadd.f32 %v773_v9, %v5383_v23  ;;  %7735 = vst [vmem:[#allocation6_spill] sm:$0xff] %v5397_v32  ;;  %v531_v17 = vsel %vm513_vm2, %v529_v25, %v530_v26  ;;  %v1610_v57 = vrot.slane %v836_v28, 2  ;;  %v1538_v35 = vpack.c.bf16 %v5397_v32, %v5391_v58  ;;  %v5450_v28 = vld [vmem:[#allocation2 + $0xa8] sm:$0xff] }
  0x62   : > { %v837_v34 = vadd.f32 %v772_v8, %v671_v27  ;;  %v626_v36 = vsub.f32 %v5370_v50, %v531_v17  ;;  %v627_v38 = vsub.f32 %v5393_v59, %v530_v26  ;;  %v5405_v39 = vmul.f32 0.125, %v625_v33 }
  0x63   : > { %v1613_v37 = vrot.slane %v838_v31, 2  ;;  %v727_v40 = vmul.f32 0.25, %v623_v18  ;;  %4777 = vmatprep.mubr.msk.bf16.mxu1 %vm1754_vm5, %v1538_v35  ;;  %v728_v48 = vmul.f32 0.25, %v624_v16  ;;  %v774_v51 = vadd.f32 %v726_v29, %v5338_v44  ;;  %v5452_v29 = vld [vmem:[#allocation2 + $0xb0] sm:$0xff] }
  0x64   : > { %v1611_v41 = vrot.slane %v837_v34, 2  ;;  %v5408_v45 = vmul.f32 0.125, %v626_v36  ;;  %v5411_v52 = vmul.f32 0.125, %v627_v38  ;;  %v1439_v55 = vrot.slane %v5345_v49, 1 }
  0x65   : > { %v775_v54 = vadd.f32 %v727_v40, %v5341_v46  ;;  %v1440_v56 = vrot.slane %v5347_v53, 1  ;;  %v776_v1 = vadd.f32 %v728_v48, %v5343_v47  ;;  %v839_v44 = vadd.f32 %v774_v51, %v5405_v39 }
  0x66   : > { %v1612_v63 = vsel %vm1263_vm4, %v1610_v57, %v1611_v41  ;;  %v1614_v0 = vsel %vm1263_vm4, %v1611_v41, %v1613_v37  ;;  %v1442_v49 = vrot.slane %v5353_v62, 1  ;;  %v532_v8 = vrot.slane %v5416_v60, 6 }
  0x67   : > { %v1714_v2 = vpack.c.bf16 %v1614_v0, %v1612_v63  ;;  %v840_v3 = vadd.f32 %v775_v54, %v5408_v45  ;;  %v5426_v46 = vsel %vm1054_vm3, %v1439_v55, %v1440_v56  ;;  %v841_v53 = vadd.f32 %v776_v1, %v5411_v52 }
  0x68   : > { %7736 = vst [vmem:[#allocation7_spill] sm:$0xff] %v5426_v46  ;;  %v1615_v4 = vrot.slane %v839_v44, 2  ;;  %v533_v9 = vrot.slane %v5418_v61, 6  ;;  %v5436_v10 = vsel %vm1054_vm3, %v1440_v56, %v1442_v49  ;;  %v729_v12 = vmul.f32 0.25, %v625_v33 }
  0x69   : > { %4743 = vmatprep.mubr.msk.bf16.mxu0 %vm1754_vm5, %v1714_v2  ;;  %v1616_v47 = vrot.slane %v840_v3, 2  ;;  %7737 = vst [vmem:[#allocation8_spill] sm:$0xff] %v5436_v10  ;;  %v730_v6 = vmul.f32 0.25, %v626_v36  ;;  %v1618_v43 = vrot.slane %v841_v53, 2  ;;  %v1539_v62 = vpack.c.bf16 %v5436_v10, %v5426_v46  ;;  %v5486_v53 = vld [vmem:[#allocation2 + $0xc0] sm:$0xff] }
  0x6a   : > { %v534_v7 = vsel %vm513_vm2, %v532_v8, %v533_v9  ;;  %v628_v11 = vsub.f32 %v5416_v60, %v532_v8  ;;  %v630_v18 = vsub.f32 %v5430_v5, %v533_v9  ;;  %v731_v20 = vmul.f32 0.25, %v627_v38  ;;  %v5466_v38 = vld [vmem:[#allocation2 + $0xb8] sm:$0x3] }
  0x6b   : > { %v1617_v15 = vsel %vm1263_vm4, %v1615_v4, %v1616_v47  ;;  %v629_v16 = vsub.f32 %v5418_v61, %v534_v7  ;;  %v1619_v21 = vsel %vm1263_vm4, %v1616_v47, %v1618_v43  ;;  %4778 = vmatmul.mubr.msk.bf16.gmra.mxu1 %vm1754_vm5, %v1539_v62  ;;  %v777_v25 = vadd.f32 %v729_v12, %v5377_v19  ;;  %v5488_v4 = vld [vmem:[#allocation2 + $0xc8] sm:$0xff] }
  0x6c   : > { %v5447_v24 = vmul.f32 0.125, %v628_v11  ;;  %v778_v26 = vadd.f32 %v730_v6, %v671_v27  ;;  %v1715_v31 = vpack.c.bf16 %v1619_v21, %v1617_v15  ;;  %v5456_v33 = vmul.f32 0.125, %v630_v18 }
  0x6d   : > { %v5454_v17 = vmul.f32 0.125, %v629_v16  ;;  %v779_v34 = vadd.f32 %v731_v20, %v5383_v23  ;;  %v1444_v35 = vrot.slane %v5368_v14, 1  ;;  %v1445_v36 = vrot.slane %v5370_v50, 1 }
  0x6e   : > { %v842_v57 = vadd.f32 %v777_v25, %v5447_v24  ;;  %v1447_v19 = vrot.slane %v5393_v59, 1  ;;  %4744 = vmatmul.mubr.msk.bf16.gmra.mxu0 %vm1754_vm5, %v1715_v31  ;;  %v535_v40 = vrot.slane %v5450_v28, 6  ;;  %v536_v23 = vrot.slane %v5452_v29, 6 }
  0x6f   : > { %v843_v27 = vadd.f32 %v778_v26, %v5454_v17  ;;  %v844_v37 = vadd.f32 %v779_v34, %v5456_v33  ;;  %v5471_v48 = vsel %vm1054_vm3, %v1444_v35, %v1445_v36  ;;  %v732_v50 = vmul.f32 0.25, %v628_v11 }
  0x70   : > { %v1620_v41 = vrot.slane %v842_v57, 2  ;;  %7738 = vst [vmem:[#allocation9_spill] sm:$0xff] %v5471_v48  ;;  %v5474_v14 = vsel %vm1054_vm3, %v1445_v36, %v1447_v19  ;;  %v537_v55 = vsel %vm513_vm2, %v535_v40, %v536_v23  ;;  %v631_v56 = vsub.f32 %v5450_v28, %v535_v40 }
  0x71   : > { %7739 = vst [vmem:[#allocation10_spill] sm:$0xff] %v5474_v14  ;;  %v1621_v59 = vrot.slane %v843_v27, 2  ;;  %v1623_v51 = vrot.slane %v844_v37, 2  ;;  %v1540_v54 = vpack.c.bf16 %v5474_v14, %v5471_v48  ;;  %v632_v63 = vsub.f32 %v5452_v29, %v537_v55 }
  0x72   : > { %v633_v0 = vsub.f32 %v5466_v38, %v536_v23  ;;  %v733_v1 = vmul.f32 0.25, %v629_v16  ;;  %v734_v3 = vmul.f32 0.25, %v630_v18  ;;  %v780_v49 = vadd.f32 %v732_v50, %v5405_v39  ;;  %v5529_v50 = vld [vmem:[#allocation2 + $0xd8] sm:$0xff] }
  0x73   : > { %v1622_v44 = vsel %vm1263_vm4, %v1620_v41, %v1621_v59  ;;  %v1624_v2 = vsel %vm1263_vm4, %v1621_v59, %v1623_v51  ;;  %4781 = vmatprep.mubr.msk.bf16.mxu1 %vm1754_vm5, %v1540_v54  ;;  %v5490_v9 = vmul.f32 0.125, %v631_v56  ;;  %v5492_v47 = vmul.f32 0.125, %v632_v63  ;;  %v5531_v59 = vld [vmem:[#allocation2 + $0xe0] sm:$0xff] }
  0x74   : > { %v1716_v8 = vpack.c.bf16 %v1624_v2, %v1622_v44  ;;  %v5494_v12 = vmul.f32 0.125, %v633_v0  ;;  %v781_v6 = vadd.f32 %v733_v1, %v5408_v45  ;;  %v782_v43 = vadd.f32 %v734_v3, %v5411_v52  ;;  %v5544_v3 = vld [vmem:[#allocation2 + $0xe8] sm:$0x3] }
  0x75   : > { %v1449_v62 = vrot.slane %v5416_v60, 1  ;;  %v1450_v7 = vrot.slane %v5418_v61, 1  ;;  %v845_v39 = vadd.f32 %v780_v49, %v5490_v9  ;;  %v1452_v11 = vrot.slane %v5430_v5, 1  ;;  %v5510_v60 = vld [vmem:[#allocation2 + $0xd0] sm:$0x3] }
  0x76   : > { %4747 = vmatprep.mubr.msk.bf16.mxu0 %vm1754_vm5, %v1716_v8  ;;  %v538_v15 = vrot.slane %v5486_v53, 6  ;;  %v539_v16 = vrot.slane %v5488_v4, 6  ;;  %v846_v18 = vadd.f32 %v781_v6, %v5492_v47  ;;  %v847_v45 = vadd.f32 %v782_v43, %v5494_v12 }
  0x77   : > { %v5508_v52 = vsel %vm1054_vm3, %v1449_v62, %v1450_v7  ;;  %v735_v61 = vmul.f32 0.25, %v631_v56  ;;  %v1625_v20 = vrot.slane %v845_v39, 2  ;;  %v5513_v21 = vsel %vm1054_vm3, %v1450_v7, %v1452_v11 }
  0x78   : > { %7740 = vst [vmem:[#allocation11_spill] sm:$0xff] %v5508_v52  ;;  %7741 = vst [vmem:[#allocation12_spill] sm:$0xff] %v5513_v21  ;;  %v540_v5 = vsel %vm513_vm2, %v538_v15, %v539_v16  ;;  %v634_v25 = vsub.f32 %v5486_v53, %v538_v15  ;;  %v1626_v26 = vrot.slane %v846_v18, 2  ;;  %v1628_v31 = vrot.slane %v847_v45, 2 }
  0x79   : > { %v1541_v34 = vpack.c.bf16 %v5513_v21, %v5508_v52  ;;  %v635_v57 = vsub.f32 %v5488_v4, %v540_v5  ;;  %v636_v35 = vsub.f32 %v5510_v60, %v539_v16  ;;  %v736_v19 = vmul.f32 0.25, %v632_v63  ;;  %v5566_v5 = vld [vmem:[#allocation2 + $0xf8] sm:$0xff] }
  0x7a   : > { %v5521_v36 = vmul.f32 0.125, %v634_v25  ;;  %v737_v27 = vmul.f32 0.25, %v633_v0  ;;  %v1627_v37 = vsel %vm1263_vm4, %v1625_v20, %v1626_v26  ;;  %v1629_v40 = vsel %vm1263_vm4, %v1626_v26, %v1628_v31  ;;  %v5564_v20 = vld [vmem:[#allocation2 + $0xf0] sm:$0xff] }
  0x7b   : > { %4782 = vmatmul.mubr.msk.bf16.gmra.mxu1 %vm1754_vm5, %v1541_v34  ;;  %v5526_v23 = vmul.f32 0.125, %v635_v57  ;;  %v783_v41 = vadd.f32 %v735_v61, %v5447_v24  ;;  %v1717_v51 = vpack.c.bf16 %v1629_v40, %v1627_v37  ;;  %v5533_v54 = vmul.f32 0.125, %v636_v35 }
  0x7c   : > { %v784_v55 = vadd.f32 %v736_v19, %v5454_v17  ;;  %v785_v56 = vadd.f32 %v737_v27, %v5456_v33  ;;  %v1454_v0 = vrot.slane %v5450_v28, 1  ;;  %v1455_v1 = vrot.slane %v5452_v29, 1 }
  0x7d   : > { %v848_v63 = vadd.f32 %v783_v41, %v5521_v36  ;;  %v1457_v44 = vrot.slane %v5466_v38, 1  ;;  %4748 = vmatmul.mubr.msk.bf16.gmra.mxu0 %vm1754_vm5, %v1717_v51  ;;  %v541_v17 = vrot.slane %v5529_v50, 6  ;;  %v542_v33 = vrot.slane %v5531_v59, 6 }
  0x7e   : > { %v849_v24 = vadd.f32 %v784_v55, %v5526_v23  ;;  %v850_v2 = vadd.f32 %v785_v56, %v5533_v54  ;;  %v5549_v8 = vsel %vm1054_vm3, %v1454_v0, %v1455_v1  ;;  %v738_v29 = vmul.f32 0.25, %v634_v25 }
  0x7f   : > { %v1630_v49 = vrot.slane %v848_v63, 2  ;;  %7742 = vst [vmem:[#allocation13_spill] sm:$0xff] %v5549_v8  ;;  %v5552_v28 = vsel %vm1054_vm3, %v1455_v1, %v1457_v44  ;;  %v543_v62 = vsel %vm513_vm2, %v541_v17, %v542_v33  ;;  %v637_v7 = vsub.f32 %v5529_v50, %v541_v17 }
  0x80   : > { %7743 = vst [vmem:[#allocation14_spill] sm:$0xff] %v5552_v28  ;;  %v1631_v38 = vrot.slane %v849_v24, 2  ;;  %v1633_v6 = vrot.slane %v850_v2, 2  ;;  %v1542_v43 = vpack.c.bf16 %v5552_v28, %v5549_v8  ;;  %v638_v39 = vsub.f32 %v5531_v59, %v543_v62 }
  0x81   : > { %v639_v11 = vsub.f32 %v5544_v3, %v542_v33  ;;  %v739_v15 = vmul.f32 0.25, %v635_v57  ;;  %v740_v45 = vmul.f32 0.25, %v636_v35  ;;  %v786_v61 = vadd.f32 %v738_v29, %v5490_v9 }
  0x82   : > { %v1632_v16 = vsel %vm1263_vm4, %v1630_v49, %v1631_v38  ;;  %v1634_v18 = vsel %vm1263_vm4, %v1631_v38, %v1633_v6  ;;  %4785 = vmatprep.mubr.msk.bf16.mxu1 %vm1754_vm5, %v1542_v43  ;;  %v5568_v26 = vmul.f32 0.125, %v637_v7  ;;  %v5570_v31 = vmul.f32 0.125, %v638_v39 }
  0x83   : > { %v1718_v25 = vpack.c.bf16 %v1634_v18, %v1632_v16  ;;  %v5572_v34 = vmul.f32 0.125, %v639_v11  ;;  %v787_v57 = vadd.f32 %v739_v15, %v5492_v47  ;;  %v788_v19 = vadd.f32 %v740_v45, %v5494_v12  ;;  %v5609_v15 = vld [vmem:[#allocation2 + $0x110] sm:$0xff] }
  0x84   : > { %v1459_v27 = vrot.slane %v5486_v53, 1  ;;  %v1460_v35 = vrot.slane %v5488_v4, 1  ;;  %v851_v9 = vadd.f32 %v786_v61, %v5568_v26  ;;  %v1462_v37 = vrot.slane %v5510_v60, 1  ;;  %v5588_v53 = vld [vmem:[#allocation2 + $0x100] sm:$0x3] }
  0x85   : > { %4751 = vmatprep.mubr.msk.bf16.mxu0 %vm1754_vm5, %v1718_v25  ;;  %v544_v40 = vrot.slane %v5564_v20, 6  ;;  %v545_v41 = vrot.slane %v5566_v5, 6  ;;  %v852_v51 = vadd.f32 %v787_v57, %v5570_v31  ;;  %v853_v47 = vadd.f32 %v788_v19, %v5572_v34 }
  0x86   : > { %v5586_v12 = vsel %vm1054_vm3, %v1459_v27, %v1460_v35  ;;  %v741_v4 = vmul.f32 0.25, %v637_v7  ;;  %v1635_v55 = vrot.slane %v851_v9, 2  ;;  %v5591_v56 = vsel %vm1054_vm3, %v1460_v35, %v1462_v37  ;;  %v5607_v7 = vld [vmem:[#allocation2 + $0x108] sm:$0xff]  ;;  %v5622_v27 = vld [vmem:[#allocation2 + $0x118] sm:$0x3] }
  0x87   : > { %7744 = vst [vmem:[#allocation15_spill] sm:$0xff] %v5586_v12  ;;  %7745 = vst [vmem:[#allocation16_spill] sm:$0xff] %v5591_v56  ;;  %v546_v63 = vsel %vm513_vm2, %v544_v40, %v545_v41  ;;  %v640_v0 = vsub.f32 %v5564_v20, %v544_v40  ;;  %v1636_v1 = vrot.slane %v852_v51, 2  ;;  %v1638_v44 = vrot.slane %v853_v47, 2 }
  0x88   : > { %v1543_v24 = vpack.c.bf16 %v5591_v56, %v5586_v12  ;;  %v641_v2 = vsub.f32 %v5566_v5, %v546_v63  ;;  %v642_v17 = vsub.f32 %v5588_v53, %v545_v41  ;;  %v742_v49 = vmul.f32 0.25, %v638_v39 }
  0x89   : > { %v5599_v33 = vmul.f32 0.125, %v640_v0  ;;  %v743_v29 = vmul.f32 0.25, %v639_v11  ;;  %v1637_v38 = vsel %vm1263_vm4, %v1635_v55, %v1636_v1  ;;  %v1639_v6 = vsel %vm1263_vm4, %v1636_v1, %v1638_v44 }
  0x8a   : > { %4786 = vmatmul.mubr.msk.bf16.gmra.mxu1 %vm1754_vm5, %v1543_v24  ;;  %v5604_v43 = vmul.f32 0.125, %v641_v2  ;;  %v789_v62 = vadd.f32 %v741_v4, %v5521_v36  ;;  %v1719_v16 = vpack.c.bf16 %v1639_v6, %v1637_v38  ;;  %v5611_v18 = vmul.f32 0.125, %v642_v17 }
  0x8b   : > { %v790_v39 = vadd.f32 %v742_v49, %v5526_v23  ;;  %v791_v11 = vadd.f32 %v743_v29, %v5533_v54  ;;  %v1464_v61 = vrot.slane %v5529_v50, 1  ;;  %v1465_v25 = vrot.slane %v5531_v59, 1  ;;  %v5642_v49 = vld [vmem:[#allocation2 + $0x120] sm:$0xff]  ;;  %v5644_v29 = vld [vmem:[#allocation2 + $0x128] sm:$0xff] }
  0x8c   : > { %v854_v45 = vadd.f32 %v789_v62, %v5599_v33  ;;  %v1467_v57 = vrot.slane %v5544_v3, 1  ;;  %4752 = vmatmul.mubr.msk.bf16.gmra.mxu0 %vm1754_vm5, %v1719_v16  ;;  %v547_v23 = vrot.slane %v5607_v7, 6  ;;  %v548_v54 = vrot.slane %v5609_v15, 6 }
  0x8d   : > { %v855_v36 = vadd.f32 %v790_v39, %v5604_v43  ;;  %v856_v19 = vadd.f32 %v791_v11, %v5611_v18  ;;  %v5627_v9 = vsel %vm1054_vm3, %v1464_v61, %v1465_v25  ;;  %v744_v59 = vmul.f32 0.25, %v640_v0 }
  0x8e   : > { %v1640_v35 = vrot.slane %v854_v45, 2  ;;  %7746 = vst [vmem:[#allocation17_spill] sm:$0xff] %v5627_v9  ;;  %v5630_v50 = vsel %vm1054_vm3, %v1465_v25, %v1467_v57  ;;  %v549_v51 = vsel %vm513_vm2, %v547_v23, %v548_v54  ;;  %v643_v47 = vsub.f32 %v5607_v7, %v547_v23 }
  0x8f   : > { %7747 = vst [vmem:[#allocation18_spill] sm:$0xff] %v5630_v50  ;;  %v1641_v37 = vrot.slane %v855_v36, 2  ;;  %v1643_v40 = vrot.slane %v856_v19, 2  ;;  %v1544_v41 = vpack.c.bf16 %v5630_v50, %v5627_v9  ;;  %v644_v4 = vsub.f32 %v5609_v15, %v549_v51  ;;  %v5666_v36 = vld [vmem:[#allocation2 + $0x130] sm:$0x3] }
  0x90   : > { %v645_v55 = vsub.f32 %v5622_v27, %v548_v54  ;;  %v745_v63 = vmul.f32 0.25, %v641_v2  ;;  %v746_v0 = vmul.f32 0.25, %v642_v17  ;;  %v792_v24 = vadd.f32 %v744_v59, %v5568_v26 }
  0x91   : > { %v1642_v1 = vsel %vm1263_vm4, %v1640_v35, %v1641_v37  ;;  %v1644_v44 = vsel %vm1263_vm4, %v1641_v37, %v1643_v40  ;;  %4789 = vmatprep.mubr.msk.bf16.mxu1 %vm1754_vm5, %v1544_v41  ;;  %v5646_v6 = vmul.f32 0.125, %v643_v47  ;;  %v5648_v62 = vmul.f32 0.125, %v644_v4 }
  0x92   : > { %v1720_v38 = vpack.c.bf16 %v1644_v44, %v1642_v1  ;;  %v5650_v16 = vmul.f32 0.125, %v645_v55  ;;  %v793_v2 = vadd.f32 %v745_v63, %v5570_v31  ;;  %v794_v39 = vadd.f32 %v746_v0, %v5572_v34 }
  0x93   : > { %v1469_v11 = vrot.slane %v5564_v20, 1  ;;  %v1470_v17 = vrot.slane %v5566_v5, 1  ;;  %v857_v26 = vadd.f32 %v792_v24, %v5646_v6  ;;  %v1472_v45 = vrot.slane %v5588_v53, 1 }
  0x94   : > { %4755 = vmatprep.mubr.msk.bf16.mxu0 %vm1754_vm5, %v1720_v38  ;;  %v550_v61 = vrot.slane %v5642_v49, 6  ;;  %v551_v25 = vrot.slane %v5644_v29, 6  ;;  %v858_v57 = vadd.f32 %v793_v2, %v5648_v62  ;;  %v859_v31 = vadd.f32 %v794_v39, %v5650_v16  ;;  %v5685_v39 = vld [vmem:[#allocation2 + $0x138] sm:$0xff] }
  0x95   : > { %v5664_v34 = vsel %vm1054_vm3, %v1469_v11, %v1470_v17  ;;  %v747_v19 = vmul.f32 0.25, %v643_v47  ;;  %v1645_v23 = vrot.slane %v857_v26, 2  ;;  %v5669_v54 = vsel %vm1054_vm3, %v1470_v17, %v1472_v45  ;;  %v5687_v11 = vld [vmem:[#allocation2 + $0x140] sm:$0xff] }
  0x96   : > { %7748 = vst [vmem:[#allocation19_spill] sm:$0xff] %v5664_v34  ;;  %7749 = vst [vmem:[#allocation20_spill] sm:$0xff] %v5669_v54  ;;  %v552_v35 = vsel %vm513_vm2, %v550_v61, %v551_v25  ;;  %v646_v59 = vsub.f32 %v5642_v49, %v550_v61  ;;  %v1646_v37 = vrot.slane %v858_v57, 2  ;;  %v1648_v40 = vrot.slane %v859_v31, 2 }
  0x97   : > { %v1545_v41 = vpack.c.bf16 %v5669_v54, %v5664_v34  ;;  %v647_v51 = vsub.f32 %v5644_v29, %v552_v35  ;;  %v648_v63 = vsub.f32 %v5666_v36, %v551_v25  ;;  %v748_v47 = vmul.f32 0.25, %v644_v4 }
  0x98   : > { %v5677_v1 = vmul.f32 0.125, %v646_v59  ;;  %v749_v44 = vmul.f32 0.25, %v645_v55  ;;  %v1647_v0 = vsel %vm1263_vm4, %v1645_v23, %v1646_v37  ;;  %v1649_v24 = vsel %vm1263_vm4, %v1646_v37, %v1648_v40 }
  0x99   : > { %4790 = vmatmul.mubr.msk.bf16.gmra.mxu1 %vm1754_vm5, %v1545_v41  ;;  %v5682_v38 = vmul.f32 0.125, %v647_v51  ;;  %v795_v2 = vadd.f32 %v747_v19, %v5599_v33  ;;  %v1721_v17 = vpack.c.bf16 %v1649_v24, %v1647_v0  ;;  %v5689_v26 = vmul.f32 0.125, %v648_v63  ;;  %v5700_v19 = vld [vmem:[#allocation2 + $0x148] sm:$0x3] }
  0x9a   : > { %v796_v4 = vadd.f32 %v748_v47, %v5604_v43  ;;  %v797_v55 = vadd.f32 %v749_v44, %v5611_v18  ;;  %v1474_v61 = vrot.slane %v5607_v7, 1  ;;  %v1475_v25 = vrot.slane %v5609_v15, 1 }
  0x9b   : > { %v860_v45 = vadd.f32 %v795_v2, %v5677_v1  ;;  %v1477_v57 = vrot.slane %v5622_v27, 1  ;;  %4756 = vmatmul.mubr.msk.bf16.gmra.mxu0 %vm1754_vm5, %v1721_v17  ;;  %v553_v43 = vrot.slane %v5685_v39, 6  ;;  %v554_v18 = vrot.slane %v5687_v11, 6 }
  0x9c   : > { %v861_v33 = vadd.f32 %v796_v4, %v5682_v38  ;;  %v862_v31 = vadd.f32 %v797_v55, %v5689_v26  ;;  %v5705_v35 = vsel %vm1054_vm3, %v1474_v61, %v1475_v25  ;;  %v750_v40 = vmul.f32 0.25, %v646_v59 }
  0x9d   : > { %v1650_v23 = vrot.slane %v860_v45, 2  ;;  %7750 = vst [vmem:[#allocation21_spill] sm:$0xff] %v5705_v35  ;;  %v5708_v37 = vsel %vm1054_vm3, %v1475_v25, %v1477_v57  ;;  %v555_v0 = vsel %vm513_vm2, %v553_v43, %v554_v18  ;;  %v649_v24 = vsub.f32 %v5685_v39, %v553_v43  ;;  %v5720_v25 = vld [vmem:[#allocation2 + $0x150] sm:$0xff]  ;;  %v5722_v57 = vld [vmem:[#allocation2 + $0x158] sm:$0xff] }
  0x9e   : > { %7751 = vst [vmem:[#allocation22_spill] sm:$0xff] %v5708_v37  ;;  %v1651_v41 = vrot.slane %v861_v33, 2  ;;  %v1653_v47 = vrot.slane %v862_v31, 2  ;;  %v1546_v44 = vpack.c.bf16 %v5708_v37, %v5705_v35  ;;  %v650_v2 = vsub.f32 %v5687_v11, %v555_v0 }
  0x9f   : > { %v651_v17 = vsub.f32 %v5700_v19, %v554_v18  ;;  %v751_v4 = vmul.f32 0.25, %v647_v51  ;;  %v752_v59 = vmul.f32 0.25, %v648_v63  ;;  %v798_v61 = vadd.f32 %v750_v40, %v5646_v6 }
  0xa0   : > { %v1652_v55 = vsel %vm1263_vm4, %v1650_v23, %v1651_v41  ;;  %v1654_v45 = vsel %vm1263_vm4, %v1651_v41, %v1653_v47  ;;  %4793 = vmatprep.mubr.msk.bf16.mxu1 %vm1754_vm5, %v1546_v44  ;;  %v5724_v31 = vmul.f32 0.125, %v649_v24  ;;  %v5726_v43 = vmul.f32 0.125, %v650_v2 }
  0xa1   : > { %v1722_v33 = vpack.c.bf16 %v1654_v45, %v1652_v55  ;;  %v5728_v18 = vmul.f32 0.125, %v651_v17  ;;  %v799_v51 = vadd.f32 %v751_v4, %v5648_v62  ;;  %v800_v23 = vadd.f32 %v752_v59, %v5650_v16  ;;  %v5744_v4 = vld [vmem:[#allocation2 + $0x160] sm:$0x3] }
  0xa2   : > { %v1479_v41 = vrot.slane %v5642_v49, 1  ;;  %v1480_v63 = vrot.slane %v5644_v29, 1  ;;  %v863_v6 = vadd.f32 %v798_v61, %v5724_v31  ;;  %v1482_v40 = vrot.slane %v5666_v36, 1 }
  0xa3   : > { %4759 = vmatprep.mubr.msk.bf16.mxu0 %vm1754_vm5, %v1722_v33  ;;  %v556_v47 = vrot.slane %v5720_v25, 6  ;;  %v557_v44 = vrot.slane %v5722_v57, 6  ;;  %v864_v0 = vadd.f32 %v799_v51, %v5726_v43  ;;  %v865_v62 = vadd.f32 %v800_v23, %v5728_v18 }
  0xa4   : > { %v5742_v16 = vsel %vm1054_vm3, %v1479_v41, %v1480_v63  ;;  %v753_v55 = vmul.f32 0.25, %v649_v24  ;;  %v1655_v45 = vrot.slane %v863_v6, 2  ;;  %v5747_v59 = vsel %vm1054_vm3, %v1480_v63, %v1482_v40 }
  0xa5   : > { %7752 = vst [vmem:[#allocation23_spill] sm:$0xff] %v5742_v16  ;;  %7753 = vst [vmem:[#allocation24_spill] sm:$0xff] %v5747_v59  ;;  %v558_v61 = vsel %vm513_vm2, %v556_v47, %v557_v44  ;;  %v652_v33 = vsub.f32 %v5720_v25, %v556_v47  ;;  %v1656_v37 = vrot.slane %v864_v0, 2  ;;  %v1658_v35 = vrot.slane %v865_v62, 2  ;;  %v5763_v62 = vld [vmem:[#allocation2 + $0x168] sm:$0xff] }
  0xa6   : > { %v1547_v51 = vpack.c.bf16 %v5747_v59, %v5742_v16  ;;  %v653_v23 = vsub.f32 %v5722_v57, %v558_v61  ;;  %v654_v41 = vsub.f32 %v5744_v4, %v557_v44  ;;  %v754_v24 = vmul.f32 0.25, %v650_v2  ;;  %v5765_v59 = vld [vmem:[#allocation2 + $0x170] sm:$0xff] }
  0xa7   : > { %v5755_v54 = vmul.f32 0.125, %v652_v33  ;;  %v755_v6 = vmul.f32 0.25, %v651_v17  ;;  %v1657_v63 = vsel %vm1263_vm4, %v1655_v45, %v1656_v37  ;;  %v1659_v40 = vsel %vm1263_vm4, %v1656_v37, %v1658_v35 }
  0xa8   : > { %4794 = vmatmul.mubr.msk.bf16.gmra.mxu1 %vm1754_vm5, %v1547_v51  ;;  %v5760_v47 = vmul.f32 0.125, %v653_v23  ;;  %v801_v0 = vadd.f32 %v753_v55, %v5677_v1  ;;  %v1723_v61 = vpack.c.bf16 %v1659_v40, %v1657_v63  ;;  %v5767_v44 = vmul.f32 0.125, %v654_v41  ;;  %v5778_v63 = vld [vmem:[#allocation2 + $0x178] sm:$0x3] }
  0xa9   : > { %v802_v2 = vadd.f32 %v754_v24, %v5682_v38  ;;  %v803_v17 = vadd.f32 %v755_v6, %v5689_v26  ;;  %v1484_v35 = vrot.slane %v5685_v39, 1  ;;  %v1485_v37 = vrot.slane %v5687_v11, 1 }
  0xaa   : > { %v866_v45 = vadd.f32 %v801_v0, %v5755_v54  ;;  %v1487_v51 = vrot.slane %v5700_v19, 1  ;;  %4760 = vmatmul.mubr.msk.bf16.gmra.mxu0 %vm1754_vm5, %v1723_v61  ;;  %v559_v38 = vrot.slane %v5763_v62, 6  ;;  %v560_v26 = vrot.slane %v5765_v59, 6 }
  0xab   : > { %v867_v1 = vadd.f32 %v802_v2, %v5760_v47  ;;  %v868_v55 = vadd.f32 %v803_v17, %v5767_v44  ;;  %v5783_v6 = vsel %vm1054_vm3, %v1484_v35, %v1485_v37  ;;  %v756_v0 = vmul.f32 0.25, %v652_v33 }
  0xac   : > { %v1660_v24 = vrot.slane %v866_v45, 2  ;;  %7754 = vst [vmem:[#allocation25_spill] sm:$0xff] %v5783_v6  ;;  %v5786_v40 = vsel %vm1054_vm3, %v1485_v37, %v1487_v51  ;;  %v561_v17 = vsel %vm513_vm2, %v559_v38, %v560_v26  ;;  %v655_v34 = vsub.f32 %v5763_v62, %v559_v38 }
  0xad   : > { %7755 = vst [vmem:[#allocation26_spill] sm:$0xff] %v5786_v40  ;;  %v1661_v16 = vrot.slane %v867_v1, 2  ;;  %v1663_v61 = vrot.slane %v868_v55, 2  ;;  %v1548_v2 = vpack.c.bf16 %v5786_v40, %v5783_v6  ;;  %v656_v50 = vsub.f32 %v5765_v59, %v561_v17  ;;  %v5798_v1 = vld [vmem:[#allocation2 + $0x180] sm:$0xff]  ;;  %v5800_v55 = vld [vmem:[#allocation2 + $0x188] sm:$0xff] }
  0xae   : > { %v657_v45 = vsub.f32 %v5778_v63, %v560_v26  ;;  %v757_v9 = vmul.f32 0.25, %v653_v23  ;;  %v758_v33 = vmul.f32 0.25, %v654_v41  ;;  %v804_v51 = vadd.f32 %v756_v0, %v5724_v31 }
  0xaf   : > { %v1662_v35 = vsel %vm1263_vm4, %v1660_v24, %v1661_v16  ;;  %v1664_v37 = vsel %vm1263_vm4, %v1661_v16, %v1663_v61  ;;  %4797 = vmatprep.mubr.msk.bf16.mxu1 %vm1754_vm5, %v1548_v2  ;;  %v703_v38 = vmul.f32 0.125, %v655_v34  ;;  %v704_v6 = vmul.f32 0.125, %v656_v50 }
  0xb0   : > { %v1724_v40 = vpack.c.bf16 %v1664_v37, %v1662_v35  ;;  %v705_v17 = vmul.f32 0.125, %v657_v45  ;;  %v805_v26 = vadd.f32 %v757_v9, %v5726_v43  ;;  %v806_v23 = vadd.f32 %v758_v33, %v5728_v18  ;;  %v5813_v9 = vld [vmem:[#allocation2 + $0x190] sm:$0x3] }
  0xb1   : > { %v1489_v24 = vrot.slane %v5720_v25, 1  ;;  %v1490_v16 = vrot.slane %v5722_v57, 1  ;;  %v869_v41 = vadd.f32 %v804_v51, %v703_v38  ;;  %v1492_v31 = vrot.slane %v5744_v4, 1 }
  0xb2   : > { %4763 = vmatprep.mubr.msk.bf16.mxu0 %vm1754_vm5, %v1724_v40  ;;  %v708_v0 = vrot.slane %v5798_v1, 6  ;;  %v709_v61 = vrot.slane %v5800_v55, 6  ;;  %v870_v2 = vadd.f32 %v805_v26, %v704_v6  ;;  %v871_v35 = vadd.f32 %v806_v23, %v705_v17 }
  0xb3   : > { %v5811_v37 = vsel %vm1054_vm3, %v1489_v24, %v1490_v16  ;;  %v759_v43 = vmul.f32 0.25, %v655_v34  ;;  %v1665_v18 = vrot.slane %v869_v41, 2  ;;  %v5816_v33 = vsel %vm1054_vm3, %v1490_v16, %v1492_v31  ;;  %v4935_v16 = vld [vmem:[%s7604_s5 + $0x38] sm:$0xff]  }
  0xb4   : > { %7756 = vst [vmem:[#allocation27_spill] sm:$0xff] %v5811_v37  ;;  %7757 = vst [vmem:[#allocation28_spill] sm:$0xff] %v5816_v33  ;;  %v710_v40 = vsel %vm513_vm2, %v708_v0, %v709_v61  ;;  %v714_v51 = vsub.f32 %v5798_v1, %v708_v0  ;;  %v1666_v56 = vrot.slane %v870_v2, 2  ;;  %v1668_v12 = vrot.slane %v871_v35, 2  ;;  %4839 = vmatprep.subr.bf16.mxu1 %v4935_v16 }
  0xb5   : > { %v1549_v26 = vpack.c.bf16 %v5816_v33, %v5811_v37  ;;  %v715_v23 = vsub.f32 %v5800_v55, %v710_v40  ;;  %v716_v24 = vsub.f32 %v5813_v9, %v709_v61  ;;  %v760_v28 = vmul.f32 0.25, %v656_v50  ;;  %4840 = vmatpush3.bf16.msra.mxu1 %v4935_v16 }
  0xb6   : > { %v761_v8 = vmul.f32 0.25, %v657_v45  ;;  %v807_v34 = vadd.f32 %v759_v43, %v5755_v54  ;;  %v1667_v41 = vsel %vm1263_vm4, %v1665_v18, %v1666_v56  ;;  %v1669_v31 = vsel %vm1263_vm4, %v1666_v56, %v1668_v12 }
  0xb7   : > { %4798 = vmatmul.mubr.msk.bf16.gmra.mxu1 %vm1754_vm5, %v1549_v26  ;;  %v824_v0 = vmul.f32 0.125, %v714_v51  ;;  %v825_v2 = vmul.f32 0.125, %v715_v23  ;;  %v1725_v35 = vpack.c.bf16 %v1669_v31, %v1667_v41  ;;  %v808_v40 = vadd.f32 %v760_v28, %v5760_v47  ;;  %v5837_v26 = vld [vmem:[#allocation2 + $0x198] sm:$0xff]  ;;  %v5839_v41 = vld [vmem:[#allocation2 + $0x1a0] sm:$0xff] }
  0xb8   : > { %v809_v50 = vadd.f32 %v761_v8, %v5767_v44  ;;  %v826_v45 = vmul.f32 0.125, %v716_v24  ;;  %v1494_v61 = vrot.slane %v5763_v62, 1  ;;  %v1495_v43 = vrot.slane %v5765_v59, 1 }
  0xb9   : > { %v872_v54 = vadd.f32 %v824_v0, %v807_v34  ;;  %v1497_v18 = vrot.slane %v5778_v63, 1  ;;  %4764 = vmatmul.mubr.msk.bf16.gmra.mxu0 %vm1754_vm5, %v1725_v35  ;;  %v873_v12 = vadd.f32 %v825_v2, %v808_v40  ;;  %v762_v28 = vmul.f32 0.25, %v714_v51  ;;  %v5849_v35 = vld [vmem:[#allocation2 + $0x1a8] sm:$0x3] }
  0xba   : > { %v874_v56 = vadd.f32 %v826_v45, %v809_v50  ;;  %v763_v8 = vmul.f32 0.25, %v715_v23  ;;  %v5842_v44 = vsel %vm1054_vm3, %v1494_v61, %v1495_v43  ;;  %v764_v31 = vmul.f32 0.25, %v716_v24 }
  0xbb   : > { %v1670_v47 = vrot.slane %v872_v54, 2  ;;  %7758 = vst [vmem:[#allocation29_spill] sm:$0xff] %v5842_v44  ;;  %v5845_v34 = vsel %vm1054_vm3, %v1495_v43, %v1497_v18  ;;  %v1671_v0 = vrot.slane %v873_v12, 2  ;;  %v810_v40 = vadd.f32 %v762_v28, %v703_v38 }
  0xbc   : > { %7759 = vst [vmem:[#allocation30_spill] sm:$0xff] %v5845_v34  ;;  %v1673_v16 = vrot.slane %v874_v56, 2  ;;  %v1550_v2 = vpack.c.bf16 %v5845_v34, %v5842_v44  ;;  %v811_v50 = vadd.f32 %v763_v8, %v704_v6  ;;  %v812_v45 = vadd.f32 %v764_v31, %v705_v17  ;;  %v4943_v8 = vld [vmem:[#allocation2] sm:$0xff] }
  0xbd   : > { %v815_v51 = vrot.slane %v5837_v26, 6  ;;  %v816_v23 = vrot.slane %v5839_v41, 6  ;;  %v1672_v54 = vsel %vm1263_vm4, %v1670_v47, %v1671_v0  ;;  %v1499_v24 = vrot.slane %v5798_v1, 1  ;;  %v5866_v47 = vld [vmem:[#allocation2 + $0x30] sm:$0xff] }
  0xbe   : > { %v1674_v61 = vsel %vm1263_vm4, %v1671_v0, %v1673_v16  ;;  %4801 = vmatprep.mubr.msk.bf16.mxu1 %vm1754_vm5, %v1550_v2  ;;  %v1500_v43 = vrot.slane %v5800_v55, 1  ;;  %v1502_v28 = vrot.slane %v5813_v9, 1  ;;  %v878_v31 = vsub.f32 %v5866_v47, %v4943_v8  ;;  %v4945_v2 = vld [vmem:[#allocation2 + $0x8] sm:$0xff] }
  0xbf   : > { %v1726_v18 = vpack.c.bf16 %v1674_v61, %v1672_v54  ;;  %v817_v12 = vsel %vm513_vm2, %v815_v51, %v816_v23  ;;  %v821_v6 = vsub.f32 %v5837_v26, %v815_v51  ;;  %v823_v38 = vsub.f32 %v5849_v35, %v816_v23  ;;  %v5870_v51 = vld [vmem:[#allocation2 + $0x38] sm:$0xff]  ;;  %v4947_v54 = vld [vmem:[#allocation2 + $0x10] sm:$0x3]  ;;  %v5873_v61 = vld [vmem:[#allocation2 + $0x40] sm:$0x3] }
  0xc0   : > { %v822_v17 = vsub.f32 %v5839_v41, %v817_v12  ;;  %v5863_v56 = vsel %vm1054_vm3, %v1499_v24, %v1500_v43  ;;  %v879_v23 = vsub.f32 %v5870_v51, %v4945_v2  ;;  %v942_v24 = vsub.f32 %v5873_v61, %v4947_v54 }
  0xc1   : > { %7760 = vst [vmem:[#allocation31_spill] sm:$0xff] %v5863_v56  ;;  %4767 = vmatprep.mubr.msk.bf16.mxu0 %vm1754_vm5, %v1726_v18  ;;  %v827_v0 = vmul.f32 0.125, %v821_v6  ;;  %v829_v16 = vmul.f32 0.125, %v823_v38  ;;  %v5877_v34 = vsel %vm1054_vm3, %v1500_v43, %v1502_v28  ;;  %v910_v44 = vmul.f32 0.125, %v878_v31  ;;  %v4936_v43 = vld [vmem:[%s7604_s5 + $0x30] sm:$0xff]  }
  0xc2   : > { %v828_v12 = vmul.f32 0.125, %v822_v17  ;;  %7761 = vst [vmem:[#allocation32_spill] sm:$0xff] %v5877_v34  ;;  %v958_v8 = vmul.f32 0.25, %v878_v31  ;;  %v1551_v6 = vpack.c.bf16 %v5877_v34, %v5863_v56  ;;  %v911_v38 = vmul.f32 0.125, %v879_v23  ;;  %4841 = vmatprep.subr.bf16.mxu1 %v4936_v43 }
  0xc3   : > { %v875_v33 = vadd.f32 %v827_v0, %v810_v40  ;;  %v877_v18 = vadd.f32 %v829_v16, %v812_v45  ;;  %v959_v21 = vmul.f32 0.25, %v879_v23  ;;  %v960_v2 = vmul.f32 0.25, %v942_v24  ;;  %v4949_v16 = vld [vmem:[#allocation2 + $0x18] sm:$0xff]  ;;  %4842 = vmatpush3.bf16.msra.mxu1 %v4936_v43 }
  0xc4   : > { %v876_v37 = vadd.f32 %v828_v12, %v811_v50  ;;  %v1055_v52 = vrot.slane %v958_v8, 1  ;;  %4802 = vmatmul.mubr.msk.bf16.gmra.mxu1 %vm1754_vm5, %v1551_v6  ;;  %v1199_v17 = vmul.f32 0.125, %v942_v24  ;;  %v1264_v54 = vrot.slane %v910_v44, 2  ;;  %v5885_v50 = vld [vmem:[#allocation2 + $0x48] sm:$0xff]  ;;  %v5888_v12 = vld [vmem:[#allocation2 + $0x50] sm:$0xff] }
  0xc5   : > { %v1675_v14 = vrot.slane %v875_v33, 2  ;;  %v1678_v48 = vrot.slane %v877_v18, 2  ;;  %v1056_v45 = vrot.slane %v959_v21, 1  ;;  %v1058_v28 = vrot.slane %v960_v2, 1  ;;  %v4951_v33 = vld [vmem:[#allocation2 + $0x20] sm:$0xff] }
  0xc6   : > { %v1676_v40 = vrot.slane %v876_v37, 2  ;;  %v1265_v31 = vrot.slane %v911_v38, 2  ;;  %v1267_v0 = vrot.slane %v1199_v17, 2  ;;  %v880_v23 = vsub.f32 %v5885_v50, %v4949_v16  ;;  %v4953_v8 = vld [vmem:[#allocation2 + $0x28] sm:$0x3] }
  0xc7   : > { %v881_v24 = vsub.f32 %v5888_v12, %v4951_v33  ;;  %v5891_v18 = vld [vmem:[#allocation2 + $0x58] sm:$0x3]  ;;  %v1057_v2 = vsel %vm1054_vm3, %v1055_v52, %v1056_v45  ;;  %v1059_v17 = vsel %vm1054_vm3, %v1056_v45, %v1058_v28  ;;  %vm3355_vm6 = vcmask 130049  }
  0xc8   : > { %v943_v6 = vsub.f32 %v5891_v18, %v4953_v8  ;;  %v1677_v21 = vsel %vm1263_vm4, %v1675_v14, %v1676_v40  ;;  %v1679_v37 = vsel %vm1263_vm4, %v1676_v40, %v1678_v48  ;;  %v1167_v34 = vadd.f32 %v1057_v2, %v910_v44 }
  0xc9   : > { %v1727_v16 = vpack.c.bf16 %v1679_v37, %v1677_v21  ;;  %v1168_v56 = vadd.f32 %v1059_v17, %v911_v38  ;;  %v1266_v33 = vsel %vm1263_vm4, %v1264_v54, %v1265_v31  ;;  %v1268_v10 = vsel %vm1263_vm4, %v1265_v31, %v1267_v0  ;;  %v4955_v21 = vld [vmem:[#allocation2 + $0x60] sm:$0xff] }
  0xca   : > { %v912_v32 = vmul.f32 0.125, %v880_v23  ;;  %v913_v46 = vmul.f32 0.125, %v881_v24  ;;  %v961_v8 = vmul.f32 0.25, %v880_v23  ;;  %v1376_v14 = vadd.f32 %v1266_v33, %v1167_v34  ;;  %v4956_v23 = vld [vmem:[#allocation2 + $0x68] sm:$0xff]  ;;  %v4957_v34 = vld [vmem:[#allocation2 + $0x70] sm:$0x3] }
  0xcb   : > { %4768 = vmatmul.mubr.msk.bf16.gmra.mxu0 %vm1754_vm5, %v1727_v16  ;;  %v1377_v58 = vadd.f32 %v1268_v10, %v1168_v56  ;;  %v962_v48 = vmul.f32 0.25, %v881_v24  ;;  %v963_v40 = vmul.f32 0.25, %v943_v6  ;;  %v1200_v13 = vmul.f32 0.125, %v943_v6 }
  0xcc   : > { %v1060_v52 = vrot.slane %v961_v8, 1  ;;  %v1269_v45 = vrot.slane %v912_v32, 2  ;;  %v1270_v43 = vrot.slane %v913_v46, 2  ;;  %v882_v54 = vsub.f32 %v4955_v21, %v5866_v47 }
  0xcd   : > { %v1728_v28 = vpack.c.bf16 %v1377_v58, %v1376_v14  ;;  %v1061_v44 = vrot.slane %v962_v48, 1  ;;  %v1063_v38 = vrot.slane %v963_v40, 1  ;;  %v1272_v0 = vrot.slane %v1200_v13, 2 }
  0xce   : > { %v1271_v31 = vsel %vm1263_vm4, %v1269_v45, %v1270_v43  ;;  %v883_v37 = vsub.f32 %v4956_v23, %v5870_v51  ;;  %v944_v10 = vsub.f32 %v4957_v34, %v5873_v61  ;;  %v914_v24 = vmul.f32 0.125, %v882_v54 }
  0xcf   : > { %4807 = vmatprep.mubr.msk.bf16.mxu0 %vm1754_vm5, %v1728_v28  ;;  %v1062_v56 = vsel %vm1054_vm3, %v1060_v52, %v1061_v44  ;;  %v1064_v58 = vsel %vm1054_vm3, %v1061_v44, %v1063_v38  ;;  %v964_v6 = vmul.f32 0.25, %v882_v54  ;;  %v1273_v47 = vsel %vm1263_vm4, %v1270_v43, %v1272_v0  ;;  %v4960_v54 = vld [vmem:[#allocation2 + $0x88] sm:$0x3] }
  0xd0   : > { %v1169_v2 = vadd.f32 %v1062_v56, %v912_v32  ;;  %v1170_v17 = vadd.f32 %v1064_v58, %v913_v46  ;;  %v915_v16 = vmul.f32 0.125, %v883_v37  ;;  %v965_v13 = vmul.f32 0.25, %v883_v37  ;;  %v4959_v46 = vld [vmem:[#allocation2 + $0x80] sm:$0xff] }
  0xd1   : > { %v966_v33 = vmul.f32 0.25, %v944_v10  ;;  %v1065_v8 = vrot.slane %v964_v6, 1  ;;  %v1201_v51 = vmul.f32 0.125, %v944_v10  ;;  %v1274_v61 = vrot.slane %v914_v24, 2 }
  0xd2   : > { %v1378_v14 = vadd.f32 %v1271_v31, %v1169_v2  ;;  %v1379_v48 = vadd.f32 %v1273_v47, %v1170_v17  ;;  %v1275_v40 = vrot.slane %v915_v16, 2  ;;  %v1066_v45 = vrot.slane %v965_v13, 1  ;;  %v4937_v31 = vld [vmem:[%s7604_s5 + $0x28] sm:$0xff]  }
  0xd3   : > { %v1068_v28 = vrot.slane %v966_v33, 1  ;;  %v1277_v52 = vrot.slane %v1201_v51, 2  ;;  %v884_v44 = vsub.f32 %v4958_v42, %v5885_v50  ;;  %v885_v43 = vsub.f32 %v4959_v46, %v5888_v12  ;;  %4843 = vmatprep.subr.bf16.mxu1 %v4937_v31 }
  0xd4   : > { %v1729_v38 = vpack.c.bf16 %v1379_v48, %v1378_v14  ;;  %v1276_v32 = vsel %vm1263_vm4, %v1274_v61, %v1275_v40  ;;  %v945_v0 = vsub.f32 %v4960_v54, %v5891_v18  ;;  %v1067_v37 = vsel %vm1054_vm3, %v1065_v8, %v1066_v45  ;;  %4844 = vmatpush3.bf16.msra.mxu1 %v4937_v31 }
  0xd5   : > { %v1069_v10 = vsel %vm1054_vm3, %v1066_v45, %v1068_v28  ;;  %v1278_v56 = vsel %vm1263_vm4, %v1275_v40, %v1277_v52  ;;  %v916_v50 = vmul.f32 0.125, %v884_v44  ;;  %v1171_v58 = vadd.f32 %v1067_v37, %v914_v24  ;;  %v4961_v45 = vld [vmem:[#allocation2 + $0x90] sm:$0xff] }
  0xd6   : > { %4808 = vmatmul.mubr.msk.bf16.vlgmr.msra.gmra.mxu0 %vm1754_vm5, %v1729_v38  ;;  %v1172_v6 = vadd.f32 %v1069_v10, %v915_v16  ;;  %v917_v2 = vmul.f32 0.125, %v885_v43  ;;  %v967_v12 = vmul.f32 0.25, %v884_v44  ;;  %v968_v17 = vmul.f32 0.25, %v885_v43  ;;  %v4962_v16 = vld [vmem:[#allocation2 + $0x98] sm:$0xff]  ;;  %v4963_v38 = vld [vmem:[#allocation2 + $0xa0] sm:$0x3] }
  0xd7   : > { %v969_v18 = vmul.f32 0.25, %v945_v0  ;;  %v1202_v47 = vmul.f32 0.125, %v945_v0  ;;  %v1279_v13 = vrot.slane %v916_v50, 2  ;;  %v1380_v33 = vadd.f32 %v1276_v32, %v1171_v58 }
  0xd8   : > { %v1381_v51 = vadd.f32 %v1278_v56, %v1172_v6  ;;  %v1070_v8 = vrot.slane %v967_v12, 1  ;;  %v1280_v14 = vrot.slane %v917_v2, 2  ;;  %v1071_v48 = vrot.slane %v968_v17, 1 }
  0xd9   : > { %v1073_v61 = vrot.slane %v969_v18, 1  ;;  %v1282_v40 = vrot.slane %v1202_v47, 2  ;;  %v886_v28 = vsub.f32 %v4961_v45, %v4955_v21  ;;  %v887_v44 = vsub.f32 %v4962_v16, %v4956_v23 }
  0xda   : > { %v1730_v52 = vpack.c.bf16 %v1381_v51, %v1380_v33  ;;  %v1281_v24 = vsel %vm1263_vm4, %v1279_v13, %v1280_v14  ;;  %v946_v43 = vsub.f32 %v4963_v38, %v4957_v34  ;;  %v1072_v0 = vsel %vm1054_vm3, %v1070_v8, %v1071_v48 }
  0xdb   : > { %v1074_v31 = vsel %vm1054_vm3, %v1071_v48, %v1073_v61  ;;  %v1283_v32 = vsel %vm1263_vm4, %v1280_v14, %v1282_v40  ;;  %v918_v37 = vmul.f32 0.125, %v886_v28  ;;  %v1173_v10 = vadd.f32 %v1072_v0, %v916_v50  ;;  %v4964_v48 = vld [vmem:[#allocation2 + $0xa8] sm:$0xff]  ;;  %v4965_v50 = vld [vmem:[#allocation2 + $0xb0] sm:$0xff] }
  0xdc   : > { %4811 = vmatprep.mubr.msk.bf16.mxu0 %vm1754_vm5, %v1730_v52  ;;  %v1174_v56 = vadd.f32 %v1074_v31, %v917_v2  ;;  %v919_v58 = vmul.f32 0.125, %v887_v44  ;;  %v970_v21 = vmul.f32 0.25, %v886_v28  ;;  %v971_v6 = vmul.f32 0.25, %v887_v44  ;;  %v4966_v52 = vld [vmem:[#allocation2 + $0xb8] sm:$0x3] }
  0xdd   : > { %v972_v12 = vmul.f32 0.25, %v946_v43  ;;  %v1203_v17 = vmul.f32 0.125, %v946_v43  ;;  %v1284_v18 = vrot.slane %v918_v37, 2  ;;  %v1382_v23 = vadd.f32 %v1281_v24, %v1173_v10 }
  0xde   : > { %v1383_v47 = vadd.f32 %v1283_v32, %v1174_v56  ;;  %v1075_v34 = vrot.slane %v970_v21, 1  ;;  %v1285_v13 = vrot.slane %v919_v58, 2  ;;  %v1076_v33 = vrot.slane %v971_v6, 1 }
  0xdf   : > { %v1078_v51 = vrot.slane %v972_v12, 1  ;;  %v1287_v8 = vrot.slane %v1203_v17, 2  ;;  %v888_v14 = vsub.f32 %v4964_v48, %v4958_v42  ;;  %v889_v2 = vsub.f32 %v4965_v50, %v4959_v46  ;;  %v4938_v46 = vld [vmem:[%s7604_s5 + $0x20] sm:$0xff]  }
  0xe0   : > { %v1731_v61 = vpack.c.bf16 %v1383_v47, %v1382_v23  ;;  %v1286_v40 = vsel %vm1263_vm4, %v1284_v18, %v1285_v13  ;;  %v947_v28 = vsub.f32 %v4966_v52, %v4960_v54  ;;  %v1077_v44 = vsel %vm1054_vm3, %v1075_v34, %v1076_v33  ;;  %4845 = vmatprep.subr.bf16.mxu1 %v4938_v46 }
  0xe1   : > { %v1079_v43 = vsel %vm1054_vm3, %v1076_v33, %v1078_v51  ;;  %v1288_v24 = vsel %vm1263_vm4, %v1285_v13, %v1287_v8  ;;  %v920_v0 = vmul.f32 0.125, %v888_v14  ;;  %v1175_v31 = vadd.f32 %v1077_v44, %v918_v37  ;;  %v4967_v33 = vld [vmem:[#allocation2 + $0xc0] sm:$0xff]  ;;  %v4968_v8 = vld [vmem:[#allocation2 + $0xc8] sm:$0xff]  ;;  %4846 = vmatpush3.bf16.msra.mxu1 %v4938_v46 }
  0xe2   : > { %4812 = vmatmul.mubr.msk.bf16.gmra.mxu0 %vm1754_vm5, %v1731_v61  ;;  %v1176_v32 = vadd.f32 %v1079_v43, %v919_v58  ;;  %v921_v10 = vmul.f32 0.125, %v889_v2  ;;  %v973_v42 = vmul.f32 0.25, %v888_v14  ;;  %v974_v56 = vmul.f32 0.25, %v889_v2 }
  0xe3   : > { %v975_v21 = vmul.f32 0.25, %v947_v28  ;;  %v1204_v6 = vmul.f32 0.125, %v947_v28  ;;  %v1289_v12 = vrot.slane %v920_v0, 2  ;;  %v1384_v54 = vadd.f32 %v1286_v40, %v1175_v31 }
  0xe4   : > { %v1385_v17 = vadd.f32 %v1288_v24, %v1176_v32  ;;  %v1080_v18 = vrot.slane %v973_v42, 1  ;;  %v1290_v23 = vrot.slane %v921_v10, 2  ;;  %v1081_v47 = vrot.slane %v974_v56, 1 }
  0xe5   : > { %v1083_v34 = vrot.slane %v975_v21, 1  ;;  %v1292_v13 = vrot.slane %v1204_v6, 2  ;;  %v890_v37 = vsub.f32 %v4967_v33, %v4961_v45  ;;  %v891_v14 = vsub.f32 %v4968_v8, %v4962_v16 }
  0xe6   : > { %v1732_v58 = vpack.c.bf16 %v1385_v17, %v1384_v54  ;;  %v1291_v51 = vsel %vm1263_vm4, %v1289_v12, %v1290_v23  ;;  %v948_v61 = vsub.f32 %v5510_v60, %v4963_v38  ;;  %v1082_v2 = vsel %vm1054_vm3, %v1080_v18, %v1081_v47  ;;  %v4969_v17 = vld [vmem:[#allocation2 + $0xd8] sm:$0xff] }
  0xe7   : > { %v1084_v40 = vsel %vm1054_vm3, %v1081_v47, %v1083_v34  ;;  %v1293_v28 = vsel %vm1263_vm4, %v1290_v23, %v1292_v13  ;;  %v922_v44 = vmul.f32 0.125, %v890_v37  ;;  %v1177_v43 = vadd.f32 %v1082_v2, %v920_v0  ;;  %v4970_v0 = vld [vmem:[#allocation2 + $0xe0] sm:$0xff] }
  0xe8   : > { %4815 = vmatprep.mubr.msk.bf16.mxu0 %vm1754_vm5, %v1732_v58  ;;  %v1178_v45 = vadd.f32 %v1084_v40, %v921_v10  ;;  %v923_v24 = vmul.f32 0.125, %v891_v14  ;;  %v976_v31 = vmul.f32 0.25, %v890_v37  ;;  %v977_v32 = vmul.f32 0.25, %v891_v14 }
  0xe9   : > { %v978_v42 = vmul.f32 0.25, %v948_v61  ;;  %v1205_v56 = vmul.f32 0.125, %v948_v61  ;;  %v1294_v16 = vrot.slane %v922_v44, 2  ;;  %v1386_v21 = vadd.f32 %v1291_v51, %v1177_v43 }
  0xea   : > { %v1387_v60 = vadd.f32 %v1293_v28, %v1178_v45  ;;  %v1085_v38 = vrot.slane %v976_v31, 1  ;;  %v1295_v6 = vrot.slane %v923_v24, 2  ;;  %v1086_v12 = vrot.slane %v977_v32, 1 }
  0xeb   : > { %v1088_v46 = vrot.slane %v978_v42, 1  ;;  %v1297_v54 = vrot.slane %v1205_v56, 2  ;;  %v892_v18 = vsub.f32 %v4969_v17, %v4964_v48  ;;  %v893_v10 = vsub.f32 %v4970_v0, %v4965_v50 }
  0xec   : > { %v1733_v23 = vpack.c.bf16 %v1387_v60, %v1386_v21  ;;  %v1296_v47 = vsel %vm1263_vm4, %v1294_v16, %v1295_v6  ;;  %v949_v34 = vsub.f32 %v5544_v3, %v4966_v52  ;;  %v1087_v13 = vsel %vm1054_vm3, %v1085_v38, %v1086_v12 }
  0xed   : > { %v1089_v37 = vsel %vm1054_vm3, %v1086_v12, %v1088_v46  ;;  %v1298_v58 = vsel %vm1263_vm4, %v1295_v6, %v1297_v54  ;;  %v924_v51 = vmul.f32 0.125, %v892_v18  ;;  %v1179_v14 = vadd.f32 %v1087_v13, %v922_v44  ;;  %v4939_v6 = vld [vmem:[%s7604_s5 + $0x18] sm:$0xff]  }
  0xee   : > { %4816 = vmatmul.mubr.msk.bf16.gmra.mxu0 %vm1754_vm5, %v1733_v23  ;;  %v1180_v61 = vadd.f32 %v1089_v37, %v923_v24  ;;  %v925_v2 = vmul.f32 0.125, %v893_v10  ;;  %v979_v48 = vmul.f32 0.25, %v892_v18  ;;  %v980_v40 = vmul.f32 0.25, %v893_v10  ;;  %v4971_v24 = vld [vmem:[#allocation2 + $0xd0] sm:$0x3]  ;;  %4847 = vmatprep.subr.bf16.mxu1 %v4939_v6 }
  0xef   : > { %v981_v28 = vmul.f32 0.25, %v949_v34  ;;  %v1206_v43 = vmul.f32 0.125, %v949_v34  ;;  %v1299_v45 = vrot.slane %v924_v51, 2  ;;  %v1388_v50 = vadd.f32 %v1296_v47, %v1179_v14  ;;  %4848 = vmatpush3.bf16.msra.mxu1 %v4939_v6 }
  0xf0   : > { %v1389_v31 = vadd.f32 %v1298_v58, %v1180_v61  ;;  %v1090_v3 = vrot.slane %v979_v48, 1  ;;  %v1300_v52 = vrot.slane %v925_v2, 2  ;;  %v1091_v32 = vrot.slane %v980_v40, 1 }
  0xf1   : > { %v1093_v42 = vrot.slane %v981_v28, 1  ;;  %v1302_v56 = vrot.slane %v1206_v43, 2  ;;  %v894_v16 = vsub.f32 %v5564_v20, %v4967_v33  ;;  %v895_v44 = vsub.f32 %v5566_v5, %v4968_v8  ;;  %v4972_v43 = vld [vmem:[#allocation2 + $0xe8] sm:$0x3] }
  0xf2   : > { %v1734_v21 = vpack.c.bf16 %v1389_v31, %v1388_v50  ;;  %v1301_v60 = vsel %vm1263_vm4, %v1299_v45, %v1300_v52  ;;  %v950_v38 = vsub.f32 %v5588_v53, %v4971_v24  ;;  %v1092_v12 = vsel %vm1054_vm3, %v1090_v3, %v1091_v32 }
  0xf3   : > { %v1094_v46 = vsel %vm1054_vm3, %v1091_v32, %v1093_v42  ;;  %v1303_v54 = vsel %vm1263_vm4, %v1300_v52, %v1302_v56  ;;  %v926_v18 = vmul.f32 0.125, %v894_v16  ;;  %v1181_v20 = vadd.f32 %v1092_v12, %v924_v51  ;;  %v4973_v12 = vld [vmem:[#allocation2 + $0xf0] sm:$0xff] }
  0xf4   : > { %4819 = vmatprep.mubr.msk.bf16.mxu0 %vm1754_vm5, %v1734_v21  ;;  %v1182_v33 = vadd.f32 %v1094_v46, %v925_v2  ;;  %v927_v23 = vmul.f32 0.125, %v895_v44  ;;  %v982_v5 = vmul.f32 0.25, %v894_v16  ;;  %v983_v8 = vmul.f32 0.25, %v895_v44 }
  0xf5   : > { %v984_v53 = vmul.f32 0.25, %v950_v38  ;;  %v1207_v47 = vmul.f32 0.125, %v950_v38  ;;  %v1304_v10 = vrot.slane %v926_v18, 2  ;;  %v1390_v34 = vadd.f32 %v1301_v60, %v1181_v20  ;;  %v4974_v20 = vld [vmem:[#allocation2 + $0xf8] sm:$0xff] }
  0xf6   : > { %v1391_v13 = vadd.f32 %v1303_v54, %v1182_v33  ;;  %v1095_v37 = vrot.slane %v982_v5, 1  ;;  %v1305_v58 = vrot.slane %v927_v23, 2  ;;  %v1096_v14 = vrot.slane %v983_v8, 1 }
  0xf7   : > { %v1098_v61 = vrot.slane %v984_v53, 1  ;;  %v1307_v48 = vrot.slane %v1207_v47, 2  ;;  %v896_v40 = vsub.f32 %v5607_v7, %v4969_v17  ;;  %v897_v2 = vsub.f32 %v5609_v15, %v4970_v0 }
  0xf8   : > { %v1735_v28 = vpack.c.bf16 %v1391_v13, %v1390_v34  ;;  %v1306_v51 = vsel %vm1263_vm4, %v1304_v10, %v1305_v58  ;;  %v951_v45 = vsub.f32 %v5622_v27, %v4972_v43  ;;  %v1097_v50 = vsel %vm1054_vm3, %v1095_v37, %v1096_v14 }
  0xf9   : > { %v1099_v31 = vsel %vm1054_vm3, %v1096_v14, %v1098_v61  ;;  %v1308_v3 = vsel %vm1263_vm4, %v1305_v58, %v1307_v48  ;;  %v928_v52 = vmul.f32 0.125, %v896_v40  ;;  %v1183_v32 = vadd.f32 %v1097_v50, %v926_v18  ;;  %v4976_v50 = vld [vmem:[#allocation2 + $0x108] sm:$0xff] }
  0xfa   : > { %4820 = vmatmul.mubr.msk.bf16.gmra.mxu0 %vm1754_vm5, %v1735_v28  ;;  %v1184_v42 = vadd.f32 %v1099_v31, %v927_v23  ;;  %v929_v7 = vmul.f32 0.125, %v897_v2  ;;  %v985_v17 = vmul.f32 0.25, %v896_v40  ;;  %v986_v56 = vmul.f32 0.25, %v897_v2  ;;  %v4975_v23 = vld [vmem:[#allocation2 + $0x100] sm:$0x3] }
  0xfb   : > { %v987_v16 = vmul.f32 0.25, %v951_v45  ;;  %v1208_v21 = vmul.f32 0.125, %v951_v45  ;;  %v1309_v15 = vrot.slane %v928_v52, 2  ;;  %v1392_v0 = vadd.f32 %v1306_v51, %v1183_v32  ;;  %v4977_v32 = vld [vmem:[#allocation2 + $0x110] sm:$0xff] }
  0xfc   : > { %v1393_v60 = vadd.f32 %v1308_v3, %v1184_v42  ;;  %v1100_v27 = vrot.slane %v985_v17, 1  ;;  %v1310_v44 = vrot.slane %v929_v7, 2  ;;  %v1101_v24 = vrot.slane %v986_v56, 1 }
  0xfd   : > { %v1103_v38 = vrot.slane %v987_v16, 1  ;;  %v1312_v6 = vrot.slane %v1208_v21, 2  ;;  %v898_v46 = vsub.f32 %v5642_v49, %v4973_v12  ;;  %v899_v33 = vsub.f32 %v5644_v29, %v4974_v20 }
  0xfe   : > { %v1736_v54 = vpack.c.bf16 %v1393_v60, %v1392_v0  ;;  %v1311_v18 = vsel %vm1263_vm4, %v1309_v15, %v1310_v44  ;;  %v952_v5 = vsub.f32 %v5666_v36, %v4975_v23  ;;  %v1102_v8 = vsel %vm1054_vm3, %v1100_v27, %v1101_v24  ;;  %v4940_v36 = vld [vmem:[%s7604_s5 + $0x10] sm:$0xff]  }
  0xff   : > { %v1104_v53 = vsel %vm1054_vm3, %v1101_v24, %v1103_v38  ;;  %v1313_v47 = vsel %vm1263_vm4, %v1310_v44, %v1312_v6  ;;  %v930_v10 = vmul.f32 0.125, %v898_v46  ;;  %v1185_v34 = vadd.f32 %v1102_v8, %v928_v52  ;;  %4849 = vmatprep.subr.bf16.mxu1 %v4940_v36 }
 0x100   : > { %4823 = vmatprep.mubr.msk.bf16.mxu0 %vm1754_vm5, %v1736_v54  ;;  %v1186_v49 = vadd.f32 %v1104_v53, %v929_v7  ;;  %v931_v13 = vmul.f32 0.125, %v899_v33  ;;  %v988_v37 = vmul.f32 0.25, %v898_v46  ;;  %v989_v58 = vmul.f32 0.25, %v899_v33  ;;  %v4978_v7 = vld [vmem:[#allocation2 + $0x118] sm:$0x3]  ;;  %4850 = vmatpush3.bf16.msra.mxu1 %v4940_v36  ;;  %v4979_v33 = vld [vmem:[#allocation2 + $0x120] sm:$0xff] }
 0x101   : > { %v990_v14 = vmul.f32 0.25, %v952_v5  ;;  %v1209_v61 = vmul.f32 0.125, %v952_v5  ;;  %v1314_v29 = vrot.slane %v930_v10, 2  ;;  %v1394_v48 = vadd.f32 %v1311_v18, %v1185_v34  ;;  %v4980_v53 = vld [vmem:[#allocation2 + $0x128] sm:$0xff] }
 0x102   : > { %v1395_v40 = vadd.f32 %v1313_v47, %v1186_v49  ;;  %v1105_v28 = vrot.slane %v988_v37, 1  ;;  %v1315_v51 = vrot.slane %v931_v13, 2  ;;  %v1106_v2 = vrot.slane %v989_v58, 1 }
 0x103   : > { %v1108_v43 = vrot.slane %v990_v14, 1  ;;  %v1317_v45 = vrot.slane %v1209_v61, 2  ;;  %v900_v31 = vsub.f32 %v5685_v39, %v4976_v50  ;;  %v901_v42 = vsub.f32 %v5687_v11, %v4977_v32 }
 0x104   : > { %v1737_v3 = vpack.c.bf16 %v1395_v40, %v1394_v48  ;;  %v1316_v52 = vsel %vm1263_vm4, %v1314_v29, %v1315_v51  ;;  %v953_v17 = vsub.f32 %v5700_v19, %v4978_v7  ;;  %v1107_v56 = vsel %vm1054_vm3, %v1105_v28, %v1106_v2  ;;  %v4983_v7 = vld [vmem:[#allocation2 + $0x140] sm:$0xff] }
 0x105   : > { %v1109_v16 = vsel %vm1054_vm3, %v1106_v2, %v1108_v43  ;;  %v1318_v21 = vsel %vm1263_vm4, %v1315_v51, %v1317_v45  ;;  %v932_v15 = vmul.f32 0.125, %v900_v31  ;;  %v1187_v39 = vadd.f32 %v1107_v56, %v930_v10  ;;  %v4981_v10 = vld [vmem:[#allocation2 + $0x130] sm:$0x3]  ;;  %v4984_v56 = vld [vmem:[#allocation2 + $0x148] sm:$0x3] }
 0x106   : > { %4824 = vmatmul.mubr.msk.bf16.gmra.mxu0 %vm1754_vm5, %v1737_v3  ;;  %v1188_v0 = vadd.f32 %v1109_v16, %v931_v13  ;;  %v933_v60 = vmul.f32 0.125, %v901_v42  ;;  %v991_v27 = vmul.f32 0.25, %v900_v31  ;;  %v992_v44 = vmul.f32 0.25, %v901_v42  ;;  %v4982_v3 = vld [vmem:[#allocation2 + $0x138] sm:$0xff] }
 0x107   : > { %v993_v24 = vmul.f32 0.25, %v953_v17  ;;  %v1210_v11 = vmul.f32 0.125, %v953_v17  ;;  %v1319_v38 = vrot.slane %v932_v15, 2  ;;  %v1396_v6 = vadd.f32 %v1316_v52, %v1187_v39 }
 0x108   : > { %v1397_v19 = vadd.f32 %v1318_v21, %v1188_v0  ;;  %v1110_v12 = vrot.slane %v991_v27, 1  ;;  %v1320_v46 = vrot.slane %v933_v60, 2  ;;  %v1111_v54 = vrot.slane %v992_v44, 1 }
 0x109   : > { %v1113_v18 = vrot.slane %v993_v24, 1  ;;  %v1322_v20 = vrot.slane %v1210_v11, 2  ;;  %v902_v23 = vsub.f32 %v5720_v25, %v4979_v33  ;;  %v903_v47 = vsub.f32 %v5722_v57, %v4980_v53 }
 0x10a   : > { %v1738_v5 = vpack.c.bf16 %v1397_v19, %v1396_v6  ;;  %v1321_v8 = vsel %vm1263_vm4, %v1319_v38, %v1320_v46  ;;  %v954_v34 = vsub.f32 %v5744_v4, %v4981_v10  ;;  %v1112_v49 = vsel %vm1054_vm3, %v1110_v12, %v1111_v54  ;;  %v4986_v10 = vld [vmem:[#allocation2 + $0x158] sm:$0xff] }
 0x10b   : > { %v1114_v13 = vsel %vm1054_vm3, %v1111_v54, %v1113_v18  ;;  %v1323_v37 = vsel %vm1263_vm4, %v1320_v46, %v1322_v20  ;;  %v934_v58 = vmul.f32 0.125, %v902_v23  ;;  %v1189_v14 = vadd.f32 %v1112_v49, %v932_v15 }
 0x10c   : > { %4827 = vmatprep.mubr.msk.bf16.mxu0 %vm1754_vm5, %v1738_v5  ;;  %v1190_v25 = vadd.f32 %v1114_v13, %v933_v60  ;;  %v935_v61 = vmul.f32 0.125, %v903_v47  ;;  %v994_v29 = vmul.f32 0.25, %v902_v23  ;;  %v995_v36 = vmul.f32 0.25, %v903_v47  ;;  %v4985_v5 = vld [vmem:[#allocation2 + $0x150] sm:$0xff] }
 0x10d   : > { %v996_v48 = vmul.f32 0.25, %v954_v34  ;;  %v1211_v40 = vmul.f32 0.125, %v954_v34  ;;  %v1324_v57 = vrot.slane %v934_v58, 2  ;;  %v1398_v28 = vadd.f32 %v1321_v8, %v1189_v14 }
 0x10e   : > { %v1399_v51 = vadd.f32 %v1323_v37, %v1190_v25  ;;  %v1115_v2 = vrot.slane %v994_v29, 1  ;;  %v1325_v43 = vrot.slane %v935_v61, 2  ;;  %v1116_v45 = vrot.slane %v995_v36, 1 }
 0x10f   : > { %v1118_v50 = vrot.slane %v996_v48, 1  ;;  %v1327_v31 = vrot.slane %v1211_v40, 2  ;;  %v904_v52 = vsub.f32 %v5763_v62, %v4982_v3  ;;  %v905_v17 = vsub.f32 %v5765_v59, %v4983_v7  ;;  %v4941_v59 = vld [vmem:[%s7604_s5 + $0x8] sm:$0xff]   ;;  %v4987_v3 = vld [vmem:[#allocation2 + $0x170] sm:$0xff] }
 0x110   : > { %v1739_v32 = vpack.c.bf16 %v1399_v51, %v1398_v28  ;;  %v1326_v42 = vsel %vm1263_vm4, %v1324_v57, %v1325_v43  ;;  %v955_v16 = vsub.f32 %v5778_v63, %v4984_v56  ;;  %v1117_v21 = vsel %vm1054_vm3, %v1115_v2, %v1116_v45  ;;  %4851 = vmatprep.subr.bf16.mxu1 %v4941_v59 }
 0x111   : > { %v1119_v15 = vsel %vm1054_vm3, %v1116_v45, %v1118_v50  ;;  %v1328_v39 = vsel %vm1263_vm4, %v1325_v43, %v1327_v31  ;;  %v936_v0 = vmul.f32 0.125, %v904_v52  ;;  %v1191_v60 = vadd.f32 %v1117_v21, %v934_v58  ;;  %4852 = vmatpush3.bf16.msra.mxu1 %v4941_v59 }
 0x112   : > { %4828 = vmatmul.mubr.msk.bf16.gmra.mxu0 %vm1754_vm5, %v1739_v32  ;;  %v1192_v27 = vadd.f32 %v1119_v15, %v935_v61  ;;  %v937_v44 = vmul.f32 0.125, %v905_v17  ;;  %v997_v24 = vmul.f32 0.25, %v904_v52  ;;  %v998_v11 = vmul.f32 0.25, %v905_v17 }
 0x113   : > { %v999_v38 = vmul.f32 0.25, %v955_v16  ;;  %v1212_v6 = vmul.f32 0.125, %v955_v16  ;;  %v1329_v19 = vrot.slane %v936_v0, 2  ;;  %v1400_v12 = vadd.f32 %v1326_v42, %v1191_v60 }
 0x114   : > { %v1401_v46 = vadd.f32 %v1328_v39, %v1192_v27  ;;  %v1120_v54 = vrot.slane %v997_v24, 1  ;;  %v1330_v18 = vrot.slane %v937_v44, 2  ;;  %v1121_v20 = vrot.slane %v998_v11, 1 }
 0x115   : > { %v1123_v33 = vrot.slane %v999_v38, 1  ;;  %v1332_v23 = vrot.slane %v1212_v6, 2  ;;  %v906_v8 = vsub.f32 %v5798_v1, %v4985_v5  ;;  %v907_v34 = vsub.f32 %v5800_v55, %v4986_v10  ;;  %v4942_v38 = vld [vmem:[%s7604_s5] sm:$0xff]  }
 0x116   : > { %v1740_v53 = vpack.c.bf16 %v1401_v46, %v1400_v12  ;;  %v1331_v47 = vsel %vm1263_vm4, %v1329_v19, %v1330_v18  ;;  %v956_v49 = vsub.f32 %v5813_v9, %v5744_v4  ;;  %v1122_v13 = vsel %vm1054_vm3, %v1120_v54, %v1121_v20  ;;  %4853 = vmatprep.subr.bf16.mxu1 %v4942_v38 }
 0x117   : > { %v1124_v37 = vsel %vm1054_vm3, %v1121_v20, %v1123_v33  ;;  %v1333_v58 = vsel %vm1263_vm4, %v1330_v18, %v1332_v23  ;;  %v938_v14 = vmul.f32 0.125, %v906_v8  ;;  %v1193_v1 = vadd.f32 %v1122_v13, %v936_v0  ;;  %4854 = vmatpush3.bf16.msra.mxu1 %v4942_v38 }
 0x118   : > { %4831 = vmatprep.mubr.msk.bf16.mxu0 %vm1754_vm5, %v1740_v53  ;;  %v1194_v25 = vadd.f32 %v1124_v37, %v937_v44  ;;  %v939_v61 = vmul.f32 0.125, %v907_v34  ;;  %v1000_v29 = vmul.f32 0.25, %v906_v8  ;;  %v1001_v36 = vmul.f32 0.25, %v907_v34 }
 0x119   : > { %v1002_v48 = vmul.f32 0.25, %v956_v49  ;;  %v1213_v40 = vmul.f32 0.125, %v956_v49  ;;  %v1334_v55 = vrot.slane %v938_v14, 2  ;;  %v1402_v57 = vadd.f32 %v1331_v47, %v1193_v1 }
 0x11a   : > { %v1403_v28 = vadd.f32 %v1333_v58, %v1194_v25  ;;  %v1125_v4 = vrot.slane %v1000_v29, 1  ;;  %v1335_v9 = vrot.slane %v939_v61, 2  ;;  %v1126_v51 = vrot.slane %v1001_v36, 1 }
 0x11b   : > { %v1128_v2 = vrot.slane %v1002_v48, 1  ;;  %v1337_v43 = vrot.slane %v1213_v40, 2  ;;  %v908_v45 = vsub.f32 %v5837_v26, %v5763_v62  ;;  %v909_v52 = vsub.f32 %v5839_v41, %v4987_v3 }
 0x11c   : > { %v1741_v50 = vpack.c.bf16 %v1403_v28, %v1402_v57  ;;  %v1336_v31 = vsel %vm1263_vm4, %v1334_v55, %v1335_v9  ;;  %v957_v32 = vsub.f32 %v5849_v35, %v5778_v63  ;;  %v1127_v42 = vsel %vm1054_vm3, %v1125_v4, %v1126_v51 }
 0x11d   : > { %v1129_v7 = vsel %vm1054_vm3, %v1126_v51, %v1128_v2  ;;  %v1338_v17 = vsel %vm1263_vm4, %v1335_v9, %v1337_v43  ;;  %v940_v56 = vmul.f32 0.125, %v908_v45  ;;  %v1195_v16 = vadd.f32 %v1127_v42, %v938_v14 }
 0x11e   : > { %4832 = vmatmul.mubr.msk.bf16.gmra.mxu0 %vm1754_vm5, %v1741_v50  ;;  %v1196_v62 = vadd.f32 %v1129_v7, %v939_v61  ;;  %v941_v26 = vmul.f32 0.125, %v909_v52  ;;  %v1003_v21 = vmul.f32 0.25, %v908_v45  ;;  %v1004_v15 = vmul.f32 0.25, %v909_v52  ;;  %v4775_v9 = vpop.f32.mrf.mxu1 }
 0x11f   : > { %v1005_v39 = vmul.f32 0.25, %v957_v32  ;;  %v1214_v0 = vmul.f32 0.125, %v957_v32  ;;  %v1339_v41 = vrot.slane %v940_v56, 2  ;;  %v1404_v63 = vadd.f32 %v1336_v31, %v1195_v16 }
 0x120   : > { %v6021_v60 = vpop.f32.mrf.mxu0  ;;  %v1405_v35 = vadd.f32 %v1338_v17, %v1196_v62  ;;  %v1130_v27 = vrot.slane %v1003_v21, 1  ;;  %v1340_v44 = vrot.slane %v941_v26, 2  ;;  %v1131_v24 = vrot.slane %v1004_v15, 1  ;;  %v2052_v2 = vpop.f32.mrf.mxu1 }
 0x121   : > { %v1133_v59 = vrot.slane %v1005_v39, 1  ;;  %v1342_v11 = vrot.slane %v1214_v0, 2  ;;  %v2061_v0 = vadd.f32 %v4775_v9, %v6021_v60  ;;  %vm2779_vm7 = vcmask 1040384  }
 0x122   : > { %v1742_v6 = vpack.c.bf16 %v1405_v35, %v1404_v63  ;;  %v1132_v19 = vsel %vm1054_vm3, %v1130_v27, %v1131_v24  ;;  %v1341_v46 = vsel %vm1263_vm4, %v1339_v41, %v1340_v44  ;;  %v1837_v18 = vpop.f32.mrf.mxu0  ;;  %v4776_v45 = vpop.f32.mrf.mxu1  ;;  %vm3358_vm8 = vcmask 122880  }
 0x123   : > { %v1134_v12 = vsel %vm1054_vm3, %v1131_v24, %v1133_v59  ;;  %v1343_v54 = vsel %vm1263_vm4, %v1340_v44, %v1342_v11  ;;  %v1197_v20 = vadd.f32 %v1132_v19, %v940_v56  ;;  %v2053_v63 = vadd.f32 %v2052_v2, %v1837_v18  ;;  %v6090_v44 = vld [vmem:[%s7603_s4] ss:$0 sm:$0xff] }
 0x124   : > { %4835 = vmatprep.mubr.msk.bf16.mxu0 %vm1754_vm5, %v1742_v6  ;;  %v1198_v33 = vadd.f32 %v1134_v12, %v941_v26  ;;  %v4742_v8 = vpop.f32.mrf.mxu0  ;;  %v2055_v31 = vpop.f32.mrf.mxu1 }
 0x125   : > { %v1406_v23 = vadd.f32 %v1341_v46, %v1197_v20  ;;  %v2064_v59 = vadd.f32 %v4776_v45, %v4742_v8 }
 0x126   : > { %v1407_v5 = vadd.f32 %v1343_v54, %v1198_v33  ;;  %v1840_v47 = vpop.f32.mrf.mxu0 }
 0x127   : > { %v2056_v6 = vadd.f32 %v2055_v31, %v1840_v47 }
 0x128   : > { %v1743_v53 = vpack.c.bf16 %v1407_v5, %v1406_v23 }
 0x12a   : > { %4836 = vmatmul.mubr.msk.bf16.gmra.mxu0 %vm1754_vm5, %v1743_v53 }
 0x12b   : > { %v4779_v52 = vpop.f32.mrf.mxu1 }
 0x12d   : > { %v2068_v42 = vpop.f32.mrf.mxu1 }
 0x12e   : > { %v4745_v10 = vpop.f32.mrf.mxu0 }
 0x12f   : > { %v4780_v17 = vpop.f32.mrf.mxu1  ;;  %v2077_v9 = vadd.f32 %v4779_v52, %v4745_v10 }
 0x130   : > { %v6032_v34 = vpop.f32.mrf.mxu0 }
 0x131   : > { %v2071_v16 = vpop.f32.mrf.mxu1  ;;  %v2069_v31 = vadd.f32 %v2068_v42, %v6032_v34 }
 0x132   : > { %v6034_v49 = vpop.f32.mrf.mxu0 }
 0x134   : > { %v6036_v13 = vpop.f32.mrf.mxu0 }
 0x13b   : > { %v4783_v21 = vpop.f32.mrf.mxu1 }
 0x13d   : > { %v6038_v37 = vpop.f32.mrf.mxu0  ;;  %v2084_v39 = vpop.f32.mrf.mxu1 }
 0x13f   : > { %v6040_v58 = vpop.f32.mrf.mxu0  ;;  %v4784_v27 = vpop.f32.mrf.mxu1 }
 0x141   : > { %v6042_v14 = vpop.f32.mrf.mxu0  ;;  %v2087_v46 = vpop.f32.mrf.mxu1 }
 0x143   : > { %v6044_v1 = vpop.f32.mrf.mxu0 }
 0x14a   : > { %v4787_v53 = vpop.f32.mrf.mxu1 }
 0x14c   : > { %v6046_v25 = vpop.f32.mrf.mxu0 }
 0x14e   : > { %v6048_v61 = vpop.f32.mrf.mxu0 }
 0x150   : > { %v6050_v29 = vpop.f32.mrf.mxu0 }
 0x152   : > { %v6052_v36 = vpop.f32.mrf.mxu0 }
 0x15b   : > { %v6054_v48 = vpop.f32.mrf.mxu0 }
 0x15d   : > { %v6056_v40 = vpop.f32.mrf.mxu0 }
 0x15f   : > { %v6058_v55 = vpop.f32.mrf.mxu0 }
 0x161   : > { %v6060_v57 = vpop.f32.mrf.mxu0 }
 0x16a   : > { %v6062_v28 = vpop.f32.mrf.mxu0 }
 0x16c   : > { %v6064_v4 = vpop.f32.mrf.mxu0 }
 0x16e   : > { %v6066_v51 = vpop.f32.mrf.mxu0 }
 0x170   : > { %v6068_v43 = vpop.f32.mrf.mxu0 }
 0x179   : > { %v6070_v50 = vpop.f32.mrf.mxu0 }
 0x17b   : > { %v6072_v3 = vpop.f32.mrf.mxu0 }
 0x17d   : > { %v6074_v32 = vpop.f32.mrf.mxu0 }
 0x17f   : > { %v6076_v7 = vpop.f32.mrf.mxu0 }
 0x18b   : > { %v6078_v56 = vpop.f32.mrf.mxu0 }
 0x18d   : > { %v6080_v62 = vpop.f32.mrf.mxu0 }
 0x18f   : > { %v6082_v26 = vpop.f32.mrf.mxu0 }
 0x191   : > { %v6084_v15 = vpop.f32.mrf.mxu0 }
 0x196   : > { %v4809_v41 = vpop.f32.mrf.mxu0 }
 0x197   : > { %v2398_v35 = vadd.f32 %v4809_v41, %v2061_v0 }
 0x198   : > { %v2269_v24 = vpop.f32.mrf.mxu0 }
 0x199   : > { %v2396_v11 = vadd.f32 %v2269_v24, %v2053_v63  ;;  %v2437_v19 = vadd.f32 %v6090_v44, %v2398_v35  ;;  %v2100_v63 = vpop.f32.mrf.mxu1  ;;  %v2080_v24 = vadd.f32 %v4780_v17, %v6034_v49 }
 0x19a   : > { %v4810_v38 = vpop.f32.mrf.mxu0 }
 0x19b   : > { %v2399_v12 = vadd.f32 %v4810_v38, %v2064_v59  ;;  %v2435_v60 = vadd.f32 %v6090_v44, %v2396_v11  ;;  %v2469_v33 = vmax.f32 %v2437_v19, 0.0  ;;  %v2072_v38 = vadd.f32 %v2071_v16, %v6036_v13 }
 0x19c   : > { %v2272_v54 = vpop.f32.mrf.mxu0 }
 0x19d   : > { %v2438_v18 = vadd.f32 %v6090_v44, %v2399_v12  ;;  %v2397_v20 = vadd.f32 %v2272_v54, %v2056_v6  ;;  %v2467_v8 = vmax.f32 %v2435_v60, 0.0  ;;  %v4788_v6 = vpop.f32.mrf.mxu1 }
 0x19f   : > { %v2470_v23 = vmax.f32 %v2438_v18, 0.0  ;;  %v2436_v5 = vadd.f32 %v6090_v44, %v2397_v20  ;;  %v2103_v17 = vpop.f32.mrf.mxu1  ;;  %v2093_v18 = vadd.f32 %v4783_v21, %v6038_v37 }
 0x1a1   : > { %v2500_v2 = vpack.c.bf16 %v2470_v23, %v2469_v33  ;;  %v2468_v45 = vmax.f32 %v2436_v5, 0.0  ;;  %v2085_v23 = vadd.f32 %v2084_v39, %v6040_v58 }
 0x1a2   : > { %v4813_v47 = vpop.f32.mrf.mxu0 }
 0x1a3   : > { %v2402_v0 = vadd.f32 %v4813_v47, %v2077_v9  ;;  %v2499_v41 = vpack.c.bf16 %v2468_v45, %v2467_v8  ;;  %v4791_v8 = vpop.f32.mrf.mxu1  ;;  %v2096_v45 = vadd.f32 %v4784_v27, %v6042_v14 }
 0x1a4   : > { %v2285_v35 = vpop.f32.mrf.mxu0 }
 0x1a5   : > { %v2400_v59 = vadd.f32 %v2285_v35, %v2069_v31  ;;  %4855 = vmatprep.mubr.bf16.mxu1 %v2499_v41  ;;  %v2441_v10 = vadd.f32 %v6090_v44, %v2402_v0  ;;  %v2088_v0 = vadd.f32 %v2087_v46, %v6044_v1  ;;  %v2116_v41 = vpop.f32.mrf.mxu1 }
 0x1a6   : > { %v4814_v11 = vpop.f32.mrf.mxu0  ;;  %4856 = vmatmul.mubr.bf16.vlgmr.msra.gmra.mxu1 %v2500_v2 }
 0x1a7   : > { %v2403_v52 = vadd.f32 %v4814_v11, %v2080_v24  ;;  %v2439_v12 = vadd.f32 %v6090_v44, %v2400_v59  ;;  %v2473_v54 = vmax.f32 %v2441_v10, 0.0  ;;  %v4792_v27 = vpop.f32.mrf.mxu1 }
 0x1a8   : > { %v2288_v19 = vpop.f32.mrf.mxu0 }
 0x1a9   : > { %v2442_v34 = vadd.f32 %v6090_v44, %v2403_v52  ;;  %v2401_v42 = vadd.f32 %v2288_v19, %v2072_v38  ;;  %v2471_v20 = vmax.f32 %v2439_v12, 0.0  ;;  %v2109_v38 = vadd.f32 %v4787_v53, %v6046_v25 }
 0x1aa   : > { %v2101_v19 = vadd.f32 %v2100_v63, %v6048_v61 }
 0x1ab   : > { %v2474_v60 = vmax.f32 %v2442_v34, 0.0  ;;  %v2440_v49 = vadd.f32 %v6090_v44, %v2401_v42  ;;  %v2119_v42 = vpop.f32.mrf.mxu1 }
 0x1ad   : > { %v2472_v33 = vmax.f32 %v2440_v49, 0.0  ;;  %v2502_v13 = vpack.c.bf16 %v2474_v60, %v2473_v54  ;;  %v2112_v60 = vadd.f32 %v4788_v6, %v6050_v29 }
 0x1ae   : > { %v4817_v16 = vpop.f32.mrf.mxu0 }
 0x1af   : > { %v2406_v5 = vadd.f32 %v4817_v16, %v2093_v18  ;;  %v2501_v9 = vpack.c.bf16 %v2472_v33, %v2471_v20  ;;  %v2104_v20 = vadd.f32 %v2103_v17, %v6052_v36  ;;  %v4795_v33 = vpop.f32.mrf.mxu1 }
 0x1b0   : > { %v2301_v2 = vpop.f32.mrf.mxu0 }
 0x1b1   : > { %v2404_v47 = vadd.f32 %v2301_v2, %v2085_v23  ;;  %4859 = vmatprep.mubr.bf16.mxu1 %v2501_v9  ;;  %v2445_v37 = vadd.f32 %v6090_v44, %v2406_v5  ;;  %v2132_v6 = vpop.f32.mrf.mxu1  ;;  %v2125_v9 = vadd.f32 %v4791_v8, %v6054_v48 }
 0x1b2   : > { %v4818_v31 = vpop.f32.mrf.mxu0  ;;  %4860 = vmatmul.mubr.bf16.gmra.mxu1 %v2502_v13 }
 0x1b3   : > { %v2407_v21 = vadd.f32 %v4818_v31, %v2096_v45  ;;  %v2443_v24 = vadd.f32 %v6090_v44, %v2404_v47  ;;  %v2477_v59 = vmax.f32 %v2445_v37, 0.0  ;;  %v2117_v47 = vadd.f32 %v2116_v41, %v6056_v40  ;;  %v4796_v37 = vpop.f32.mrf.mxu1 }
 0x1b4   : > { %v2304_v35 = vpop.f32.mrf.mxu0 }
 0x1b5   : > { %v2446_v58 = vadd.f32 %v6090_v44, %v2407_v21  ;;  %v2405_v39 = vadd.f32 %v2304_v35, %v2088_v0  ;;  %v2475_v10 = vmax.f32 %v2443_v24, 0.0  ;;  %v2128_v35 = vadd.f32 %v4792_v27, %v6058_v55 }
 0x1b7   : > { %v2478_v11 = vmax.f32 %v2446_v58, 0.0  ;;  %v2444_v14 = vadd.f32 %v6090_v44, %v2405_v39  ;;  %v2120_v39 = vadd.f32 %v2119_v42, %v6060_v57 }
 0x1b9   : > { %v2476_v52 = vmax.f32 %v2444_v14, 0.0  ;;  %v2504_v1 = vpack.c.bf16 %v2478_v11, %v2477_v59  ;;  %v2135_v59 = vpop.f32.mrf.mxu1 }
 0x1ba   : > { %v4821_v46 = vpop.f32.mrf.mxu0 }
 0x1bb   : > { %v2410_v12 = vadd.f32 %v4821_v46, %v2109_v38  ;;  %v2503_v34 = vpack.c.bf16 %v2476_v52, %v2475_v10  ;;  %v4799_v27 = vpop.f32.mrf.mxu1  ;;  %v2141_v52 = vadd.f32 %v4795_v33, %v6062_v28 }
 0x1bc   : > { %v2317_v54 = vpop.f32.mrf.mxu0 }
 0x1bd   : > { %v2408_v49 = vadd.f32 %v2317_v54, %v2101_v19  ;;  %4863 = vmatprep.mubr.bf16.mxu1 %v2503_v34  ;;  %v2449_v25 = vadd.f32 %v6090_v44, %v2410_v12  ;;  %v2133_v12 = vadd.f32 %v2132_v6, %v6064_v4  ;;  %v2148_v54 = vpop.f32.mrf.mxu1 }
 0x1be   : > { %v4822_v18 = vpop.f32.mrf.mxu0  ;;  %4864 = vmatmul.mubr.bf16.gmra.mxu1 %v2504_v1 }
 0x1bf   : > { %v2411_v53 = vadd.f32 %v4822_v18, %v2112_v60  ;;  %v2447_v16 = vadd.f32 %v6090_v44, %v2408_v49  ;;  %v2481_v23 = vmax.f32 %v2449_v25, 0.0  ;;  %v2144_v49 = vadd.f32 %v4796_v37, %v6066_v51  ;;  %v4800_v33 = vpop.f32.mrf.mxu1 }
 0x1c0   : > { %v2320_v13 = vpop.f32.mrf.mxu0  ;;  %v2136_v25 = vadd.f32 %v2135_v59, %v6068_v43 }
 0x1c1   : > { %v2450_v61 = vadd.f32 %v6090_v44, %v2411_v53  ;;  %v2409_v63 = vadd.f32 %v2320_v13, %v2104_v20  ;;  %v2479_v2 = vmax.f32 %v2447_v16, 0.0 }
 0x1c3   : > { %v2482_v5 = vmax.f32 %v2450_v61, 0.0  ;;  %v2448_v29 = vadd.f32 %v6090_v44, %v2409_v63 }
 0x1c5   : > { %v2480_v45 = vmax.f32 %v2448_v29, 0.0  ;;  %v2506_v36 = vpack.c.bf16 %v2482_v5, %v2481_v23  ;;  %v2151_v5 = vpop.f32.mrf.mxu1  ;;  %v2157_v29 = vadd.f32 %v4799_v27, %v6070_v50 }
 0x1c6   : > { %v4825_v17 = vpop.f32.mrf.mxu0 }
 0x1c7   : > { %v2414_v31 = vadd.f32 %v4825_v17, %v2125_v9  ;;  %v2505_v0 = vpack.c.bf16 %v2480_v45, %v2479_v2  ;;  %v2149_v45 = vadd.f32 %v2148_v54, %v6072_v3 }
 0x1c8   : > { %v2333_v21 = vpop.f32.mrf.mxu0 }
 0x1c9   : > { %v2412_v24 = vadd.f32 %v2333_v21, %v2117_v47  ;;  %4867 = vmatprep.mubr.bf16.mxu1 %v2505_v0  ;;  %v2453_v48 = vadd.f32 %v6090_v44, %v2414_v31  ;;  %v4803_v47 = vpop.f32.mrf.mxu1  ;;  %v2160_v0 = vadd.f32 %v4800_v33, %v6074_v32 }
 0x1ca   : > { %v4826_v58 = vpop.f32.mrf.mxu0  ;;  %4868 = vmatmul.mubr.bf16.gmra.mxu1 %v2506_v36 }
 0x1cb   : > { %v2415_v8 = vadd.f32 %v4826_v58, %v2128_v35  ;;  %v2451_v14 = vadd.f32 %v6090_v44, %v2412_v24  ;;  %v2485_v38 = vmax.f32 %v2453_v48, 0.0  ;;  %v2152_v35 = vadd.f32 %v2151_v5, %v6076_v7  ;;  %v2164_v58 = vpop.f32.mrf.mxu1 }
 0x1cc   : > { %v2336_v11 = vpop.f32.mrf.mxu0 }
 0x1cd   : > { %v2454_v40 = vadd.f32 %v6090_v44, %v2415_v8  ;;  %v2413_v41 = vadd.f32 %v2336_v11, %v2120_v39  ;;  %v2483_v1 = vmax.f32 %v2451_v14, 0.0  ;;  %v4804_v14 = vpop.f32.mrf.mxu1 }
 0x1cf   : > { %v2486_v10 = vmax.f32 %v2454_v40, 0.0  ;;  %v2452_v55 = vadd.f32 %v6090_v44, %v2413_v41  ;;  %v2173_v40 = vadd.f32 %v4803_v47, %v6078_v56 }
 0x1d1   : > { %v2484_v46 = vmax.f32 %v2452_v55, 0.0  ;;  %v2508_v57 = vpack.c.bf16 %v2486_v10, %v2485_v38  ;;  %v2165_v55 = vadd.f32 %v2164_v58, %v6080_v62 }
 0x1d2   : > { %v4829_v19 = vpop.f32.mrf.mxu0 }
 0x1d3   : > { %v2418_v34 = vadd.f32 %v4829_v19, %v2141_v52  ;;  %v2507_v42 = vpack.c.bf16 %v2484_v46, %v2483_v1  ;;  %v2167_v1 = vpop.f32.mrf.mxu1 }
 0x1d4   : > { %v2349_v60 = vpop.f32.mrf.mxu0 }
 0x1d5   : > { %v2416_v18 = vadd.f32 %v2349_v60, %v2133_v12  ;;  %4871 = vmatprep.mubr.bf16.mxu1 %v2507_v42  ;;  %v2457_v28 = vadd.f32 %v6090_v44, %v2418_v34  ;;  %v2168_v34 = vadd.f32 %v2167_v1, %v6084_v15  ;;  %v5084_v15 = vmov 3  }
 0x1d6   : > { %v4830_v20 = vpop.f32.mrf.mxu0  ;;  %4872 = vmatmul.mubr.bf16.gmra.mxu1 %v2508_v57  ;;  %v2176_v57 = vadd.f32 %v4804_v14, %v6082_v26  ;;  %4930 = vset.pattern.permute.xlu0 %v5084_v15 }
 0x1d7   : > { %v2419_v53 = vadd.f32 %v4830_v20, %v2144_v49  ;;  %v2455_v16 = vadd.f32 %v6090_v44, %v2416_v18  ;;  %v2489_v63 = vmax.f32 %v2457_v28, 0.0  ;;  %4931 = vset.pattern.permute.xlu1 %v5084_v15 }
 0x1d8   : > { %v2352_v13 = vpop.f32.mrf.mxu0 }
 0x1d9   : > { %v2458_v4 = vadd.f32 %v6090_v44, %v2419_v53  ;;  %v2417_v61 = vadd.f32 %v2352_v13, %v2136_v25  ;;  %v2487_v6 = vmax.f32 %v2455_v16, 0.0  ;;  %v4988_v13 = vld [vmem:[#allocation2] sm:$0xff] }
 0x1da   : > { %v2925_v16 = vrot.slane %v4988_v13, 1 }
 0x1db   : > { %v2490_v23 = vmax.f32 %v2458_v4, 0.0  ;;  %v2456_v51 = vadd.f32 %v6090_v44, %v2417_v61  ;;  %v4989_v4 = vld [vmem:[#allocation2 + $0x8] sm:$0xff] }
 0x1dc   : > { %v2926_v61 = vrot.slane %v4989_v4, 1 }
 0x1dd   : > { %v2488_v9 = vmax.f32 %v2456_v51, 0.0  ;;  %v2510_v43 = vpack.c.bf16 %v2490_v23, %v2489_v63  ;;  %v4990_v63 = vld [vmem:[#allocation2 + $0x10] sm:$0x3]  ;;  %v2964_v51 = vrot.slane %v4988_v13, 2 }
 0x1de   : > { %v4833_v2 = vpop.f32.mrf.mxu0  ;;  %v2928_v23 = vrot.slane %v4990_v63, 1  ;;  %v2927_v5 = vsel %vm1054_vm3, %v2925_v16, %v2926_v61 }
 0x1df   : > { %v2422_v36 = vadd.f32 %v4833_v2, %v2157_v29  ;;  %v2509_v17 = vpack.c.bf16 %v2488_v9, %v2487_v6  ;;  %v2965_v29 = vrot.slane %v4989_v4, 2  ;;  %v2967_v6 = vrot.slane %v4990_v63, 2  ;;  %v6153_v2 = vld [vmem:[#allocation2 + $0x18] sm:$0xff] }
 0x1e0   : > { %v2365_v31 = vpop.f32.mrf.mxu0  ;;  %v2932_v9 = vmax.f32 %v4988_v13, %v2927_v5  ;;  %v6195_v13 = vld [vmem:[#allocation2 + $0x50] sm:$0xff] }
 0x1e1   : > { %v2420_v37 = vadd.f32 %v2365_v31, %v2149_v45  ;;  %4875 = vmatprep.mubr.bf16.mxu1 %v2509_v17  ;;  %v2461_v50 = vadd.f32 %v6090_v44, %v2422_v36  ;;  %v2969_v45 = vrot.slane %v6153_v2, 2  ;;  %v6156_v36 = vld [vmem:[#allocation2 + $0x20] sm:$0xff]  ;;  %v2966_v47 = vsel %vm1263_vm4, %v2964_v51, %v2965_v29 }
 0x1e2   : > { %v4834_v21 = vpop.f32.mrf.mxu0  ;;  %4876 = vmatmul.mubr.bf16.gmra.mxu1 %v2510_v43  ;;  %v2970_v17 = vrot.slane %v6156_v36, 2  ;;  %v2968_v31 = vsel %vm1263_vm4, %v2965_v29, %v2967_v6  ;;  %v2935_v58 = vmax.f32 %v6156_v36, %v5331_v30  ;;  %v2980_v16 = vrot.slane %v6195_v13, 2 }
 0x1e3   : > { %v2423_v24 = vadd.f32 %v4834_v21, %v2160_v0  ;;  %v2459_v48 = vadd.f32 %v6090_v44, %v2420_v37  ;;  %v2493_v59 = vmax.f32 %v2461_v50, 0.0  ;;  %v2934_v0 = vmax.f32 %v6153_v2, %v5325_v22  ;;  %v6163_v37 = vld [vmem:[#allocation2 + $0x28] sm:$0x3] }
 0x1e4   : > { %v2368_v39 = vpop.f32.mrf.mxu0  ;;  %v2972_v21 = vrot.slane %v6163_v37, 2  ;;  %v3076_v50 = vmax.f32 %v2932_v9, %v2966_v47  ;;  %v7765_v9 = vld [vmem:[#allocation5_spill] sm:$0xff]  ;;  %v6211_v47 = vld [vmem:[#allocation2 + $0x68] sm:$0xff] }
 0x1e5   : > { %v2462_v3 = vadd.f32 %v6090_v44, %v2423_v24  ;;  %v2421_v8 = vadd.f32 %v2368_v39, %v2152_v35  ;;  %v2491_v41 = vmax.f32 %v2459_v48, 0.0  ;;  %v2971_v35 = vsel %vm1263_vm4, %v2969_v45, %v2970_v17  ;;  %v6208_v45 = vld [vmem:[#allocation2 + $0x60] sm:$0xff] }
 0x1e6   : > { %v2973_v39 = vsel %vm1263_vm4, %v2970_v17, %v2972_v21  ;;  %v3078_v48 = vmax.f32 %v2934_v0, %v2971_v35  ;;  %v2984_v17 = vrot.slane %v6208_v45, 2 }
 0x1e7   : > { %v2494_v11 = vmax.f32 %v2462_v3, 0.0  ;;  %v2460_v32 = vadd.f32 %v6090_v44, %v2421_v8  ;;  %v3405_v3 = vld [vmem:[#allocation2] sm:$0xff]  ;;  %v3406_v8 = vld [vmem:[#allocation2 + $0x8] sm:$0xff] }
 0x1e9   : > { %v2492_v38 = vmax.f32 %v2460_v32, 0.0  ;;  %v2512_v7 = vpack.c.bf16 %v2494_v11, %v2493_v59  ;;  %v3108_v59 = vmax.f32 %v3076_v50, %v6153_v2  ;;  %v6172_v32 = vld [vmem:[#allocation2 + $0x30] sm:$0xff] }
 0x1ea   : > { %v4837_v10 = vpop.f32.mrf.mxu0  ;;  %v2974_v14 = vrot.slane %v6172_v32, 2 }
 0x1eb   : > { %v2426_v27 = vadd.f32 %v4837_v10, %v2173_v40  ;;  %v2511_v52 = vpack.c.bf16 %v2492_v38, %v2491_v41  ;;  %v6175_v40 = vld [vmem:[#allocation2 + $0x38] sm:$0xff]  ;;  %v3407_v38 = vld [vmem:[#allocation2 + $0x10] sm:$0x3]  ;;  %v3508_v10 = vrot.slane %v3406_v8, 1 }
 0x1ec   : > { %v2381_v46 = vpop.f32.mrf.mxu0  ;;  %v2975_v41 = vrot.slane %v6175_v40, 2  ;;  %v3510_v1 = vrot.slane %v3407_v38, 1 }
 0x1ed   : > { %v2424_v19 = vadd.f32 %v2381_v46, %v2165_v55  ;;  %4879 = vmatprep.mubr.bf16.mxu1 %v2511_v52  ;;  %v2465_v56 = vadd.f32 %v6090_v44, %v2426_v27  ;;  %v3079_v55 = vmax.f32 %v2935_v58, %v2973_v39  ;;  %v7762_v27 = vld [vmem:[#allocation3_spill] sm:$0xff]  ;;  %v3110_v46 = vmax.f32 %v3078_v48, %v6172_v32 }
 0x1ee   : > { %v4838_v12 = vpop.f32.mrf.mxu0  ;;  %4880 = vmatmul.mubr.bf16.gmra.mxu1 %v2512_v7  ;;  %v3507_v7 = vrot.slane %v3405_v3, 1  ;;  %v2936_v52 = vmax.f32 %v6172_v32, %v7762_v27  ;;  %7763 = vst [vmem:[#allocation3_spill] sm:$0xff] %v6195_v13  ;;  %v6225_v48 = vld [vmem:[#allocation2 + $0x70] sm:$0x3] }
 0x1ef   : > { %v2427_v42 = vadd.f32 %v4838_v12, %v2176_v57  ;;  %v2463_v60 = vadd.f32 %v6090_v44, %v2424_v19  ;;  %v2497_v18 = vmax.f32 %v2465_v56, 0.0  ;;  %v3140_v57 = vmax.f32 %v3108_v59, %v5325_v22 }
 0x1f0   : > { %v2384_v54 = vpop.f32.mrf.mxu0  ;;  %v2976_v12 = vsel %vm1263_vm4, %v2974_v14, %v2975_v41  ;;  %v3651_v56 = vrot.slane %v3405_v3, 2 }
 0x1f1   : > { %v2466_v62 = vadd.f32 %v6090_v44, %v2427_v42  ;;  %v2425_v49 = vadd.f32 %v2384_v54, %v2168_v34  ;;  %v2495_v26 = vmax.f32 %v2463_v60, 0.0  ;;  %v3509_v34 = vsel %vm1054_vm3, %v3507_v7, %v3508_v10  ;;  %v6185_v60 = vld [vmem:[#allocation2 + $0x40] sm:$0x3] }
 0x1f2   : > { %v3652_v42 = vrot.slane %v3406_v8, 2  ;;  %v3080_v54 = vmax.f32 %v2936_v52, %v2976_v12 }
 0x1f3   : > { %v2498_v20 = vmax.f32 %v2466_v62, 0.0  ;;  %v2464_v25 = vadd.f32 %v6090_v44, %v2425_v49  ;;  %v2929_v44 = vsel %vm1054_vm3, %v2926_v61, %v2928_v23  ;;  %v2977_v62 = vrot.slane %v6185_v60, 2  ;;  %v7764_v61 = vld [vmem:[#allocation4_spill] sm:$0xff] }
 0x1f4   : > { %v2933_v43 = vmax.f32 %v4989_v4, %v2929_v44  ;;  %v3511_v49 = vsel %vm1054_vm3, %v3508_v10, %v3510_v1  ;;  %v2937_v63 = vmax.f32 %v6175_v40, %v7764_v61 }
 0x1f5   : > { %v2496_v28 = vmax.f32 %v2464_v25, 0.0  ;;  %v2514_v53 = vpack.c.bf16 %v2498_v20, %v2497_v18  ;;  %v3654_v18 = vrot.slane %v3407_v38, 2  ;;  %v3111_v20 = vmax.f32 %v3079_v55, %v6175_v40  ;;  %v7768_v38 = vld [vmem:[#allocation7_spill] sm:$0xff]  ;;  %v7769_v55 = vld [vmem:[#allocation6_spill] sm:$0xff] }
 0x1f6   : > { %v3077_v24 = vmax.f32 %v2933_v43, %v2968_v31  ;;  %v3179_v25 = vmax.f32 %v3140_v57, %v2971_v35  ;;  %v2978_v23 = vsel %vm1263_vm4, %v2975_v41, %v2977_v62  ;;  %v2985_v31 = vrot.slane %v6211_v47, 2  ;;  %v6219_v35 = vld [vmem:[#allocation2 + $0x58] sm:$0x3] }
 0x1f7   : > { %v2513_v33 = vpack.c.bf16 %v2496_v28, %v2495_v26  ;;  %v3619_v26 = vmax.f32 %v3405_v3, %v3509_v34  ;;  %v3653_v28 = vsel %vm1263_vm4, %v3651_v56, %v3652_v42  ;;  %v3655_v51 = vsel %vm1263_vm4, %v3652_v42, %v3654_v18  ;;  %v6244_v57 = vld [vmem:[#allocation2 + $0x78] sm:$0xff]  ;;  %v6247_v34 = vld [vmem:[#allocation2 + $0x80] sm:$0xff] }
 0x1f8   : > { %v3109_v11 = vmax.f32 %v3077_v24, %v6156_v36  ;;  %v3211_v44 = vmax.f32 %v3179_v25, %v6172_v32  ;;  %v3143_v29 = vmax.f32 %v3111_v20, %v7764_v61  ;;  %v2982_v50 = vrot.slane %v6219_v35, 2  ;;  %7771 = vst [vmem:[#allocation7_spill] sm:$0xff] %v6244_v57  ;;  %7772 = vst [vmem:[#allocation6_spill] sm:$0xff] %v6247_v34 }
 0x1f9   : > { %4883 = vmatprep.mubr.bf16.mxu1 %v2513_v33  ;;  %v6192_v33 = vld [vmem:[#allocation2 + $0x48] sm:$0xff]  ;;  %v6214_v0 = vmax.f32 %v3619_v26, %v3653_v28  ;;  %v3081_v24 = vmax.f32 %v2937_v63, %v2978_v23  ;;  %v2987_v3 = vrot.slane %v6225_v48, 2  ;;  %v2940_v7 = vmax.f32 %v6208_v45, %v7768_v38 }
 0x1fa   : > { %4884 = vmatmul.mubr.bf16.gmra.mxu1 %v2514_v53  ;;  %v3141_v19 = vmax.f32 %v3109_v11, %v5331_v30  ;;  %v3142_v30 = vmax.f32 %v3110_v46, %v7762_v27  ;;  %v3620_v53 = vmax.f32 %v3406_v8, %v3511_v49  ;;  %v2979_v15 = vrot.slane %v6192_v33, 2  ;;  %v6255_v49 = vld [vmem:[#allocation2 + $0x88] sm:$0x3] }
 0x1fb   : > { %v3112_v4 = vmax.f32 %v3080_v54, %v6192_v33  ;;  %v2938_v43 = vmax.f32 %v6192_v33, %v7765_v9  ;;  %7766 = vst [vmem:[#allocation4_spill] sm:$0xff] %v6214_v0  ;;  %v3251_v8 = vmax.f32 %v3211_v44, %v7762_v27  ;;  %v3182_v59 = vmax.f32 %v3143_v29, %v2978_v23  ;;  %v7770_v27 = vld [vmem:[#allocation8_spill] sm:$0xff] }
 0x1fc   : > { %v3180_v22 = vmax.f32 %v3141_v19, %v2973_v39  ;;  %v3181_v5 = vmax.f32 %v3142_v30, %v2976_v12  ;;  %v6217_v21 = vsel %vm1263_vm4, %v2979_v15, %v2980_v16  ;;  %v6222_v58 = vmax.f32 %v3620_v53, %v3655_v51  ;;  %7773 = vst [vmem:[#allocation8_spill] sm:$0xff] %v6255_v49  ;;  %v7776_v53 = vld [vmem:[#allocation9_spill] sm:$0xff]  ;;  %v6282_v29 = vld [vmem:[#allocation2 + $0x98] sm:$0xff] }
 0x1fd   : > { %v3144_v39 = vmax.f32 %v3112_v4, %v7765_v9  ;;  %v3082_v41 = vmax.f32 %v2938_v43, %v6217_v21  ;;  %v6235_v10 = vsel %vm1263_vm4, %v2984_v17, %v2985_v31  ;;  %v2939_v52 = vmax.f32 %v6195_v13, %v7769_v55  ;;  %v6286_v43 = vld [vmem:[#allocation2 + $0xa0] sm:$0x3] }
 0x1fe   : > { %v3212_v6 = vmax.f32 %v3180_v22, %v6175_v40  ;;  %7767 = vst [vmem:[#allocation5_spill] sm:$0xff] %v6222_v58  ;;  %v3213_v14 = vmax.f32 %v3181_v5, %v6192_v33  ;;  %v6240_v1 = vsel %vm1263_vm4, %v2980_v16, %v2982_v50  ;;  %v2941_v46 = vmax.f32 %v6211_v47, %v7770_v27  ;;  %v6279_v5 = vld [vmem:[#allocation2 + $0x90] sm:$0xff] }
 0x1ff   : > { %v2989_v19 = vrot.slane %v6244_v57, 2  ;;  %v2990_v56 = vrot.slane %v6247_v34, 2  ;;  %v3113_v42 = vmax.f32 %v3081_v24, %v6195_v13  ;;  %v3183_v54 = vmax.f32 %v3144_v39, %v6217_v21  ;;  %7778 = vst [vmem:[#allocation9_spill] sm:$0xff] %v6286_v43  ;;  %v6292_v24 = vld [vmem:[#allocation2 + $0xb0] sm:$0xff] }
 0x200   : > { %v3252_v11 = vmax.f32 %v3212_v6, %v7764_v61  ;;  %v6253_v62 = vsel %vm1263_vm4, %v2985_v31, %v2987_v3  ;;  %v2992_v18 = vrot.slane %v6255_v49, 2  ;;  %v6258_v20 = vmax.f32 %v3251_v8, %v2976_v12  ;;  %v7777_v61 = vld [vmem:[#allocation10_spill] sm:$0xff] }
 0x201   : > { %v3253_v22 = vmax.f32 %v3213_v14, %v7765_v9  ;;  %v3084_v30 = vmax.f32 %v2940_v7, %v6235_v10  ;;  %v3083_v26 = vmax.f32 %v2939_v52, %v6240_v1  ;;  %v3214_v28 = vmax.f32 %v3182_v59, %v6195_v13  ;;  %v6289_v31 = vld [vmem:[#allocation2 + $0xa8] sm:$0xff]  ;;  %v7779_v52 = vld [vmem:[#allocation11_spill] sm:$0xff] }
 0x202   : > { %7774 = vst [vmem:[#allocation33_spill] sm:$0xff] %v6258_v20  ;;  %v6260_v25 = vmax.f32 %v3252_v11, %v2978_v23  ;;  %v2942_v15 = vmax.f32 %v6244_v57, %v7776_v53  ;;  %v3114_v16 = vmax.f32 %v3082_v41, %v6208_v45  ;;  %v3085_v4 = vmax.f32 %v2941_v46, %v6253_v62  ;;  %v6386_v20 = vld [vmem:[#allocation2 + $0xe8] sm:$0x3] }
 0x203   : > { %v6271_v12 = vsel %vm1263_vm4, %v2989_v19, %v2990_v56  ;;  %v2943_v63 = vmax.f32 %v6247_v34, %v7777_v61  ;;  %v3215_v23 = vmax.f32 %v3183_v54, %v6208_v45  ;;  %v6277_v51 = vsel %vm1263_vm4, %v2990_v56, %v2992_v18 }
 0x204   : > { %7775 = vst [vmem:[#allocation34_spill] sm:$0xff] %v6260_v25  ;;  %v2994_v44 = vrot.slane %v6279_v5, 2  ;;  %v2995_v6 = vrot.slane %v6282_v29, 2  ;;  %v3145_v9 = vmax.f32 %v3113_v42, %v7769_v55  ;;  %v2997_v17 = vrot.slane %v6286_v43, 2  ;;  %v7780_v42 = vld [vmem:[#allocation12_spill] sm:$0xff] }
 0x205   : > { %v2999_v50 = vrot.slane %v6289_v31, 2  ;;  %v3000_v39 = vrot.slane %v6292_v24, 2  ;;  %v3116_v3 = vmax.f32 %v3084_v30, %v6244_v57  ;;  %v3115_v8 = vmax.f32 %v3083_v26, %v6211_v47 }
 0x206   : > { %v3254_v59 = vmax.f32 %v3214_v28, %v7769_v55  ;;  %v3086_v11 = vmax.f32 %v2942_v15, %v6271_v12  ;;  %v3146_v14 = vmax.f32 %v3114_v16, %v7768_v38  ;;  %v3117_v41 = vmax.f32 %v3085_v4, %v6247_v34  ;;  %v7781_v55 = vld [vmem:[#allocation13_spill] sm:$0xff] }
 0x207   : > { %v3087_v7 = vmax.f32 %v2943_v63, %v6277_v51  ;;  %v2944_v46 = vmax.f32 %v6279_v5, %v7779_v52  ;;  %v3255_v19 = vmax.f32 %v3215_v23, %v7768_v38  ;;  %v6306_v56 = vsel %vm1263_vm4, %v2994_v44, %v2995_v6  ;;  %v6331_v44 = vld [vmem:[#allocation2 + $0xb8] sm:$0x3] }
 0x208   : > { %v2945_v54 = vmax.f32 %v6282_v29, %v7780_v42  ;;  %v2946_v18 = vmax.f32 %v6289_v31, %v7781_v55  ;;  %v6313_v30 = vmax.f32 %v3253_v22, %v6217_v21  ;;  %v3184_v26 = vmax.f32 %v3145_v9, %v6240_v1  ;;  %7784 = vst [vmem:[#allocation12_spill] sm:$0xff] %v6331_v44 }
 0x209   : > { %v6317_v28 = vsel %vm1263_vm4, %v2995_v6, %v2997_v17  ;;  %v6320_v15 = vsel %vm1263_vm4, %v2999_v50, %v3000_v39  ;;  %v6323_v38 = vmax.f32 %v3254_v59, %v6240_v1  ;;  %v3147_v16 = vmax.f32 %v3115_v8, %v7770_v27  ;;  %v6341_v8 = vld [vmem:[#allocation2 + $0xc0] sm:$0xff] }
 0x20a   : > { %7782 = vst [vmem:[#allocation10_spill] sm:$0xff] %v6313_v30  ;;  %v3118_v4 = vmax.f32 %v3086_v11, %v6279_v5  ;;  %v3148_v63 = vmax.f32 %v3116_v3, %v7776_v53  ;;  %v3119_v21 = vmax.f32 %v3087_v7, %v6282_v29  ;;  %v3149_v22 = vmax.f32 %v3117_v41, %v7777_v61  ;;  %v6344_v11 = vld [vmem:[#allocation2 + $0xc8] sm:$0xff]  ;;  %v6347_v7 = vld [vmem:[#allocation2 + $0xd0] sm:$0x3] }
 0x20b   : > { %7783 = vst [vmem:[#allocation11_spill] sm:$0xff] %v6323_v38  ;;  %v3088_v23 = vmax.f32 %v2944_v46, %v6306_v56  ;;  %v3002_v6 = vrot.slane %v6331_v44, 2  ;;  %v3185_v9 = vmax.f32 %v3146_v14, %v6235_v10  ;;  %v6336_v1 = vmax.f32 %v3255_v19, %v6235_v10  ;;  %7786 = vst [vmem:[#allocation35_spill] sm:$0xff] %v6347_v7  ;;  %v7788_v30 = vld [vmem:[#allocation15_spill] sm:$0xff] }
 0x20c   : > { %v3089_v17 = vmax.f32 %v2945_v54, %v6317_v28  ;;  %v3090_v50 = vmax.f32 %v2946_v18, %v6320_v15  ;;  %v3216_v3 = vmax.f32 %v3184_v26, %v6211_v47  ;;  %v3004_v59 = vrot.slane %v6341_v8, 2  ;;  %v7787_v54 = vld [vmem:[#allocation14_spill] sm:$0xff] }
 0x20d   : > { %7785 = vst [vmem:[#allocation13_spill] sm:$0xff] %v6336_v1  ;;  %v3005_v41 = vrot.slane %v6344_v11, 2  ;;  %v3007_v14 = vrot.slane %v6347_v7, 2  ;;  %v3186_v10 = vmax.f32 %v3147_v16, %v6253_v62  ;;  %v3187_v46 = vmax.f32 %v3148_v63, %v6271_v12  ;;  %7790 = vst [vmem:[#allocation14_spill] sm:$0xff] %v6386_v20 }
 0x20e   : > { %v3150_v19 = vmax.f32 %v3118_v4, %v7779_v52  ;;  %v2947_v18 = vmax.f32 %v6292_v24, %v7787_v54  ;;  %v3188_v26 = vmax.f32 %v3149_v22, %v6277_v51  ;;  %v3120_v38 = vmax.f32 %v3088_v23, %v6289_v31  ;;  %v7789_v4 = vld [vmem:[#allocation16_spill] sm:$0xff]  ;;  %v6376_v23 = vld [vmem:[#allocation2 + $0xe0] sm:$0xff] }
 0x20f   : > { %v3151_v44 = vmax.f32 %v3119_v21, %v7780_v42  ;;  %v6359_v1 = vsel %vm1263_vm4, %v3000_v39, %v3002_v6  ;;  %v3121_v7 = vmax.f32 %v3089_v17, %v6292_v24  ;;  %v3122_v16 = vmax.f32 %v3090_v50, %v6341_v8  ;;  %v6373_v21 = vld [vmem:[#allocation2 + $0xd8] sm:$0xff] }
 0x210   : > { %v2948_v63 = vmax.f32 %v6341_v8, %v7788_v30  ;;  %v2949_v25 = vmax.f32 %v6344_v11, %v7789_v4  ;;  %v6368_v49 = vsel %vm1263_vm4, %v3004_v59, %v3005_v41  ;;  %v6371_v22 = vsel %vm1263_vm4, %v3005_v41, %v3007_v14 }
 0x211   : > { %v3009_v39 = vrot.slane %v6373_v21, 2  ;;  %v3010_v6 = vrot.slane %v6376_v23, 2  ;;  %v3256_v17 = vmax.f32 %v3216_v3, %v7770_v27  ;;  %v3217_v50 = vmax.f32 %v3185_v9, %v6244_v57  ;;  %v7791_v3 = vld [vmem:[#allocation17_spill] sm:$0xff] }
 0x212   : > { %v3189_v43 = vmax.f32 %v3150_v19, %v6306_v56  ;;  %v3091_v59 = vmax.f32 %v2947_v18, %v6359_v1  ;;  %v3218_v58 = vmax.f32 %v3186_v10, %v6247_v34  ;;  %v3219_v41 = vmax.f32 %v3187_v46, %v6279_v5  ;;  %v7792_v34 = vld [vmem:[#allocation18_spill] sm:$0xff] }
 0x213   : > { %v3190_v14 = vmax.f32 %v3151_v44, %v6317_v28  ;;  %v3012_v13 = vrot.slane %v6386_v20, 2  ;;  %v3152_v0 = vmax.f32 %v3120_v38, %v7781_v55  ;;  %v3092_v27 = vmax.f32 %v2948_v63, %v6368_v49 }
 0x214   : > { %v3093_v9 = vmax.f32 %v2949_v25, %v6371_v22  ;;  %v2950_v19 = vmax.f32 %v6373_v21, %v7791_v3  ;;  %v3220_v18 = vmax.f32 %v3188_v26, %v6282_v29  ;;  %v3153_v10 = vmax.f32 %v3121_v7, %v7787_v54 }
 0x215   : > { %v3154_v46 = vmax.f32 %v3122_v16, %v7788_v30  ;;  %v6398_v44 = vsel %vm1263_vm4, %v3009_v39, %v3010_v6  ;;  %v3257_v20 = vmax.f32 %v3217_v50, %v7776_v53  ;;  %v3221_v38 = vmax.f32 %v3189_v43, %v6289_v31 }
 0x216   : > { %v3123_v63 = vmax.f32 %v3091_v59, %v6344_v11  ;;  %v2951_v25 = vmax.f32 %v6376_v23, %v7792_v34  ;;  %v6406_v57 = vmax.f32 %v3256_v17, %v6253_v62  ;;  %v3258_v26 = vmax.f32 %v3218_v58, %v7777_v61 }
 0x217   : > { %v3222_v7 = vmax.f32 %v3190_v14, %v6292_v24  ;;  %v6411_v16 = vsel %vm1263_vm4, %v3010_v6, %v3012_v13  ;;  %v3191_v39 = vmax.f32 %v3152_v0, %v6320_v15  ;;  %v3124_v53 = vmax.f32 %v3092_v27, %v6373_v21  ;;  %v6434_v27 = vld [vmem:[#allocation2 + $0xf8] sm:$0xff] }
 0x218   : > { %v3125_v43 = vmax.f32 %v3093_v9, %v6376_v23  ;;  %v3094_v50 = vmax.f32 %v2950_v19, %v6398_v44  ;;  %v3259_v59 = vmax.f32 %v3219_v41, %v7779_v52  ;;  %v3260_v62 = vmax.f32 %v3220_v18, %v7780_v42  ;;  %v6431_v42 = vld [vmem:[#allocation2 + $0xf0] sm:$0xff] }
 0x219   : > { %v3192_v17 = vmax.f32 %v3153_v10, %v6359_v1  ;;  %v3193_v58 = vmax.f32 %v3154_v46, %v6368_v49  ;;  %v6422_v13 = vmax.f32 %v3257_v20, %v6271_v12  ;;  %v3261_v0 = vmax.f32 %v3221_v38, %v7781_v55  ;;  %v6440_v12 = vld [vmem:[%s7605_s6] ss:$0 sm:$0xff] }
 0x21a   : > { %v3155_v61 = vmax.f32 %v3123_v63, %v7789_v4  ;;  %v3095_v6 = vmax.f32 %v2951_v25, %v6411_v16  ;;  %v6428_v14 = vmax.f32 %v3258_v26, %v6277_v51  ;;  %v3262_v52 = vmax.f32 %v3222_v7, %v7787_v54 }
 0x21b   : > { %v3014_v41 = vrot.slane %v6431_v42, 2  ;;  %v3015_v20 = vrot.slane %v6434_v27, 2  ;;  %v6443_v55 = vmax.f32 %v3191_v39, %v6341_v8  ;;  %v3126_v51 = vmax.f32 %v3094_v50, %v6431_v42 }
 0x21c   : > { %v3156_v54 = vmax.f32 %v3124_v53, %v7791_v3  ;;  %v3157_v9 = vmax.f32 %v3125_v43, %v7792_v34  ;;  %v6449_v19 = vmax.f32 %v3259_v59, %v6306_v56  ;;  %v6452_v18 = vmax.f32 %v3260_v62, %v6317_v28  ;;  %v7795_v56 = vld [vmem:[#allocation19_spill] sm:$0xff]  ;;  %v6474_v43 = vld [vmem:[#allocation2 + $0x100] sm:$0x3] }
 0x21d   : > { %v6455_v10 = vmax.f32 %v3192_v17, %v6344_v11  ;;  %v6458_v46 = vmax.f32 %v3193_v58, %v6373_v21  ;;  %v6461_v63 = vmax.f32 %v3261_v0, %v6320_v15  ;;  %v3194_v25 = vmax.f32 %v3155_v61, %v6371_v22 }
 0x21e   : > { %7793 = vst [vmem:[#allocation15_spill] sm:$0xff] %v6452_v18  ;;  %v3127_v26 = vmax.f32 %v3095_v6, %v6434_v27  ;;  %v2952_v7 = vmax.f32 %v6431_v42, %v7795_v56  ;;  %v6469_v39 = vmax.f32 %v3262_v52, %v6359_v1  ;;  %v6472_v53 = vsel %vm1263_vm4, %v3014_v41, %v3015_v20 }
 0x21f   : > { %7794 = vst [vmem:[#allocation16_spill] sm:$0xff] %v6461_v63  ;;  %v3017_v15 = vrot.slane %v6474_v43, 2  ;;  %v3263_v59 = vmax.f32 %v6443_v55, %v7788_v30  ;;  %v3195_v62 = vmax.f32 %v3156_v54, %v6398_v44  ;;  %v3196_v17 = vmax.f32 %v3157_v9, %v6411_v16  ;;  %v7797_v55 = vld [vmem:[#allocation20_spill] sm:$0xff] }
 0x220   : > { %7796 = vst [vmem:[#allocation17_spill] sm:$0xff] %v6469_v39  ;;  %v3158_v58 = vmax.f32 %v3126_v51, %v7795_v56  ;;  %v3264_v61 = vmax.f32 %v6455_v10, %v7789_v4  ;;  %v3265_v6 = vmax.f32 %v6458_v46, %v7791_v3  ;;  %v3226_v41 = vmax.f32 %v3194_v25, %v6376_v23 }
 0x221   : > { %v3096_v30 = vmax.f32 %v2952_v7, %v6472_v53  ;;  %v2953_v54 = vmax.f32 %v6434_v27, %v7797_v55  ;;  %v3159_v9 = vmax.f32 %v3127_v26, %v7797_v55  ;;  %v3018_v4 = vsel %vm1263_vm4, %v3015_v20, %v3017_v15  ;;  %v6500_v7 = vld [vmem:[#allocation2 + $0x108] sm:$0xff]  ;;  %v6509_v15 = vld [vmem:[#allocation2 + $0x110] sm:$0xff] }
 0x222   : > { %v3197_v3 = vmax.f32 %v3158_v58, %v6472_v53  ;;  %v3227_v46 = vmax.f32 %v3195_v62, %v6431_v42  ;;  %v3228_v25 = vmax.f32 %v3196_v17, %v6434_v27  ;;  %v3020_v58 = vrot.slane %v6509_v15, 2 }
 0x223   : > { %v3266_v62 = vmax.f32 %v3226_v41, %v7792_v34  ;;  %v3128_v17 = vmax.f32 %v3096_v30, %v6500_v7  ;;  %v7802_v41 = vld [vmem:[#allocation21_spill] sm:$0xff] }
 0x224   : > { %v3267_v34 = vmax.f32 %v3227_v46, %v7795_v56  ;;  %v2954_v30 = vmax.f32 %v6500_v7, %v7802_v41 }
 0x225   : > { %v6547_v46 = vmax.f32 %v3128_v17, %v7802_v41  ;;  %v6567_v17 = vmax.f32 %v3265_v6, %v6398_v44 }
 0x266   : > { %v4857_v38 = vpop.f32.mrf.mxu1 }
 0x267   : > { %v2629_v28 = vadd.f32 %v4857_v38, %v6440_v12 }
 0x268   : > { %v2620_v50 = vpop.f32.mrf.mxu1 }
 0x269   : > { %v2783_v0 = vrot.slane %v2629_v28, 7  ;;  %v2621_v1 = vadd.f32 %v6440_v12, %v2620_v50  ;;  %v3019_v50 = vrot.slane %v6500_v7, 2 }
 0x26a   : > { %v4858_v52 = vpop.f32.mrf.mxu1 }
 0x26b   : > { %v6493_v51 = vadd.f32 %v6172_v32, %v2783_v0  ;;  %v2780_v38 = vrot.slane %v2621_v1, 7  ;;  %v2632_v28 = vadd.f32 %v4858_v52, %v6440_v12  ;;  %v3097_v1 = vmax.f32 %v2953_v54, %v3018_v4 }
 0x26c   : > { %v2623_v10 = vpop.f32.mrf.mxu1  ;;  %v3198_v52 = vmax.f32 %v3159_v9, %v3018_v4  ;;  %v3229_v54 = vmax.f32 %v3197_v3, %v6500_v7  ;;  %v3268_v9 = vmax.f32 %v3228_v25, %v7797_v55  ;;  %v6555_v25 = vmax.f32 %v3263_v59, %v6368_v49 }
 0x26d   : > { %7798 = vst [vmem:[#allocation18_spill] sm:$0xff] %v6493_v51  ;;  %3360 = vst.msk [vmem:[#allocation2 + $0x30] sm:$0xfe] %vm3355_vm6, %v6493_v51  ;;  %v6506_v32 = vadd.f32 %v6153_v2, %v2780_v38  ;;  %v2784_v26 = vrot.slane %v2632_v28, 7  ;;  %v2624_v20 = vadd.f32 %v6440_v12, %v2623_v10  ;;  %v6520_v10 = vld [vmem:[#allocation2 + $0x118] sm:$0x3]  ;;  %v3129_v3 = vmax.f32 %v3097_v1, %v6509_v15 }
 0x26e   : > { %v3022_v63 = vrot.slane %v6520_v10, 2  ;;  %v3269_v49 = vmax.f32 %v3229_v54, %v7802_v41 }
 0x26f   : > { %7799 = vst [vmem:[#allocation19_spill] sm:$0xff] %v6506_v32  ;;  %3356 = vst.msk [vmem:[#allocation2 + $0x18] sm:$0xfe] %vm3355_vm6, %v6506_v32  ;;  %v2785_v39 = vsel %vm2779_vm7, %v2783_v0, %v2784_v26  ;;  %v6518_v2 = vadd.f32 %v6185_v60, %v2784_v26  ;;  %v2781_v28 = vrot.slane %v2624_v20, 7  ;;  %v6564_v20 = vmax.f32 %v3264_v61, %v6371_v22 }
 0x270   : > { %v6524_v18 = vadd.f32 %v6175_v40, %v2785_v39  ;;  %v6538_v40 = vsel %vm1263_vm4, %v3019_v50, %v3020_v58  ;;  %v3230_v50 = vmax.f32 %v3198_v52, %v6509_v15  ;;  %v6578_v52 = vmax.f32 %v3267_v34, %v6472_v53 }
 0x271   : > { %7800 = vst [vmem:[#allocation20_spill] sm:$0xff] %v6518_v2  ;;  %3362 = vst.msk [vmem:[#allocation2 + $0x40] sm:$0x1] %vm3358_vm8, %v6518_v2  ;;  %v2782_v60 = vsel %vm2779_vm7, %v2780_v38, %v2781_v28  ;;  %v6534_v0 = vadd.f32 %v6163_v37, %v2781_v28  ;;  %v7805_v38 = vld [vmem:[#allocation22_spill] sm:$0xff]  ;;  %v6570_v1 = vmax.f32 %v2954_v30, %v6538_v40  ;;  %v6596_v30 = vld [vmem:[#allocation2 + $0x120] sm:$0xff] }
 0x272   : > { %7801 = vst [vmem:[#allocation36_spill] sm:$0xff] %v6524_v18  ;;  %3361 = vst.msk [vmem:[#allocation2 + $0x38] sm:$0xff] %vm1754_vm5, %v6524_v18  ;;  %v6543_v56 = vadd.f32 %v6156_v36, %v2782_v60  ;;  %v4861_v39 = vpop.f32.mrf.mxu1  ;;  %v2955_v37 = vmax.f32 %v6509_v15, %v7805_v38  ;;  %v6558_v36 = vsel %vm1263_vm4, %v3020_v58, %v3022_v63 }
 0x273   : > { %7803 = vst [vmem:[#allocation21_spill] sm:$0xff] %v6534_v0  ;;  %3359 = vst.msk [vmem:[#allocation2 + $0x28] sm:$0x1] %vm3358_vm8, %v6534_v0  ;;  %v2645_v55 = vadd.f32 %v4861_v39, %v6440_v12  ;;  %v6575_v58 = vmax.f32 %v3266_v62, %v6411_v16  ;;  %v6580_v22 = vmax.f32 %v3268_v9, %v3018_v4  ;;  %v7809_v9 = vld [vmem:[#allocation23_spill] sm:$0xff] }
 0x274   : > { %7804 = vst [vmem:[#allocation37_spill] sm:$0xff] %v6543_v56  ;;  %7806 = vst [vmem:[#allocation22_spill] sm:$0xff] %v6558_v36  ;;  %v2636_v26 = vpop.f32.mrf.mxu1  ;;  %v6585_v61 = vmax.f32 %v2955_v37, %v6558_v36  ;;  %v6588_v6 = vmax.f32 %v3129_v3, %v7805_v38  ;;  %v3270_v53 = vmax.f32 %v3230_v50, %v7805_v38 }
 0x275   : > { %3357 = vst.msk [vmem:[#allocation2 + $0x20] sm:$0xff] %vm1754_vm5, %v6543_v56  ;;  %v2789_v59 = vrot.slane %v2645_v55, 7  ;;  %v2637_v63 = vadd.f32 %v6440_v12, %v2636_v26  ;;  %v3130_v54 = vmax.f32 %v6570_v1, %v6596_v30  ;;  %v6601_v60 = vmax.f32 %v3269_v49, %v6538_v40  ;;  %v6615_v1 = vld [vmem:[#allocation2 + $0x128] sm:$0xff] }
 0x276   : > { %v4862_v28 = vpop.f32.mrf.mxu1  ;;  %7807 = vst [vmem:[#allocation38_spill] sm:$0xff] %v6585_v61  ;;  %7808 = vst [vmem:[#allocation39_spill] sm:$0xff] %v6588_v6  ;;  %v3408_v55 = vld [vmem:[#allocation2 + $0x18] sm:$0xff]  ;;  %v6631_v4 = vmax.f32 %v3270_v53, %v6558_v36 }
 0x277   : > { %v6591_v41 = vadd.f32 %v6208_v45, %v2789_v59  ;;  %v2786_v16 = vrot.slane %v2637_v63, 7  ;;  %v2648_v62 = vadd.f32 %v4862_v28, %v6440_v12  ;;  %v6636_v63 = vld [vmem:[#allocation2 + $0x30] sm:$0xff]  ;;  %v3512_v49 = vrot.slane %v3408_v55, 1 }
 0x278   : > { %v2639_v34 = vpop.f32.mrf.mxu1  ;;  %7810 = vst [vmem:[#allocation23_spill] sm:$0xff] %v6631_v4  ;;  %v3656_v51 = vrot.slane %v3408_v55, 2  ;;  %v6667_v0 = vmax.f32 %v3130_v54, %v7809_v9  ;;  %v6671_v36 = vld [vmem:[#allocation2 + $0x40] sm:$0x3] }
 0x279   : > { %3366 = vst.msk [vmem:[#allocation2 + $0x60] sm:$0xfe] %vm3355_vm6, %v6591_v41  ;;  %v6609_v3 = vadd.f32 %v6192_v33, %v2786_v16  ;;  %v2790_v38 = vrot.slane %v2648_v62, 7  ;;  %v2640_v37 = vadd.f32 %v6440_v12, %v2639_v34  ;;  %v6613_v26 = vld [vmem:[#allocation2 + $0x38] sm:$0xff] }
 0x27a   : > { %v3518_v53 = vrot.slane %v6613_v26, 1 }
 0x27b   : > { %3363 = vst.msk [vmem:[#allocation2 + $0x48] sm:$0xfe] %vm3355_vm6, %v6609_v3  ;;  %v2791_v33 = vsel %vm2779_vm7, %v2789_v59, %v2790_v38  ;;  %v6626_v62 = vadd.f32 %v6225_v48, %v2790_v38  ;;  %v2787_v34 = vrot.slane %v2640_v37, 7  ;;  %v7812_v38 = vld [vmem:[#allocation4_spill] sm:$0xff]  ;;  %v3410_v37 = vld [vmem:[#allocation2 + $0x28] sm:$0x3] }
 0x27c   : > { %v6628_v50 = vld [vmem:[#allocation2 + $0x20] sm:$0xff]  ;;  %v6634_v39 = vadd.f32 %v6211_v47, %v2791_v33  ;;  %v3795_v47 = vmax.f32 %v7812_v38, %v3408_v55  ;;  %v7813_v33 = vld [vmem:[#allocation3_spill] sm:$0xff]  ;;  %v3517_v38 = vrot.slane %v6636_v63, 1 }
 0x27d   : > { %v3513_v45 = vrot.slane %v6628_v50, 1  ;;  %3368 = vst.msk [vmem:[#allocation2 + $0x70] sm:$0x1] %vm3358_vm8, %v6626_v62  ;;  %v2788_v48 = vsel %vm2779_vm7, %v2786_v16, %v2787_v34  ;;  %v6644_v59 = vadd.f32 %v6219_v35, %v2787_v34  ;;  %v3515_v35 = vrot.slane %v3410_v37, 1 }
 0x27e   : > { %7811 = vst [vmem:[#allocation40_spill] sm:$0xff] %v6634_v39  ;;  %3367 = vst.msk [vmem:[#allocation2 + $0x68] sm:$0xff] %vm1754_vm5, %v6634_v39  ;;  %v6651_v44 = vadd.f32 %v7813_v33, %v2788_v48  ;;  %v4865_v28 = vpop.f32.mrf.mxu1  ;;  %v7815_v33 = vld [vmem:[#allocation33_spill] sm:$0xff] }
 0x27f   : > { %v3514_v2 = vsel %vm1054_vm3, %v3512_v49, %v3513_v45  ;;  %3365 = vst.msk [vmem:[#allocation2 + $0x58] sm:$0x1] %vm3358_vm8, %v6644_v59  ;;  %v2661_v34 = vadd.f32 %v4865_v28, %v6440_v12  ;;  %vm3322_vm9 = vcmp.gt.f32.partialorder %v7815_v33, 0.1  ;;  %v7816_v49 = vrot.slane %v6628_v50, 2 }
 0x280   : > { %7814 = vst [vmem:[#allocation4_spill] sm:$0xff] %v6651_v44  ;;  %v3837_v32 = vmax.f32 %v3795_v47, %v3514_v2  ;;  %3364 = vst.msk [vmem:[#allocation2 + $0x50] sm:$0xff] %vm1754_vm5, %v6651_v44  ;;  %v2652_v48 = vpop.f32.mrf.mxu1  ;;  %v3621_v39 = vmax.f32 %v3408_v55, %v3514_v2  ;;  %v3519_v47 = vsel %vm1054_vm3, %v3517_v38, %v3518_v53 }
 0x281   : > { %v3658_v16 = vsel %vm1263_vm4, %v3656_v51, %v7816_v49  ;;  %v2795_v18 = vrot.slane %v2661_v34, 7  ;;  %v2653_v28 = vadd.f32 %v6440_v12, %v2652_v48  ;;  %v3516_v4 = vsel %vm1054_vm3, %v3513_v45, %v3515_v35 }
 0x282   : > { %v3876_v56 = vmax.f32 %v3837_v32, %v3658_v16  ;;  %v4866_v44 = vpop.f32.mrf.mxu1  ;;  %v3765_v61 = vmax.f32 %v3621_v39, %v3658_v16  ;;  %v7817_v51 = vmax.f32 %v6547_v46, %v6538_v40  ;;  %v3623_v48 = vmax.f32 %v6636_v63, %v3519_v47  ;;  %v7819_v40 = vld [vmem:[#allocation7_spill] sm:$0xff] }
 0x283   : > { %v6682_v54 = vadd.f32 %v6279_v5, %v2795_v18  ;;  %v2792_v55 = vrot.slane %v2653_v28, 7  ;;  %v2664_v32 = vadd.f32 %v4866_v44, %v6440_v12  ;;  %v3661_v39 = vrot.slane %v6636_v63, 2 }
 0x284   : > { %v6679_v2 = vmax.f32 %v7817_v51, %v6596_v30  ;;  %v3908_v34 = vmax.f32 %v3876_v56, %v6636_v63  ;;  %v2655_v38 = vpop.f32.mrf.mxu1  ;;  %v3797_v45 = vmax.f32 %v3765_v61, %v6636_v63  ;;  %v3520_v16 = vrot.slane %v6671_v36, 1  ;;  %v7821_v51 = vld [vmem:[#allocation5_spill] sm:$0xff] }
 0x285   : > { %7818 = vst [vmem:[#allocation3_spill] sm:$0xff] %v6682_v54  ;;  %3372 = vst.msk [vmem:[#allocation2 + $0x90] sm:$0xfe] %vm3355_vm6, %v6682_v54  ;;  %v6693_v5 = vadd.f32 %v7819_v40, %v2792_v55  ;;  %v2796_v46 = vrot.slane %v2664_v32, 7  ;;  %v2656_v44 = vadd.f32 %v6440_v12, %v2655_v38  ;;  %v3659_v35 = vrot.slane %v3410_v37, 2  ;;  %v7822_v63 = vld [vmem:[#allocation9_spill] sm:$0xff] }
 0x286   : > { %v3950_v56 = vmax.f32 %v3908_v34, %v3519_v47  ;;  %v3839_v49 = vmax.f32 %v3797_v45, %v3519_v47  ;;  %v3622_v28 = vmax.f32 %v6628_v50, %v3516_v4  ;;  %v3796_v6 = vmax.f32 %v7821_v51, %v6628_v50  ;;  %v7826_v51 = vld [vmem:[#allocation8_spill] sm:$0xff] }
 0x287   : > { %7820 = vst [vmem:[#allocation33_spill] sm:$0xff] %v6693_v5  ;;  %3369 = vst.msk [vmem:[#allocation2 + $0x78] sm:$0xfe] %vm3355_vm6, %v6693_v5  ;;  %v2797_v61 = vsel %vm2779_vm7, %v2795_v18, %v2796_v46  ;;  %v6703_v54 = vadd.f32 %v7822_v63, %v2796_v46  ;;  %v2793_v40 = vrot.slane %v2656_v44, 7  ;;  %v7824_v32 = vrot.slane %v6613_v26, 2  ;;  %v6718_v44 = vld [vmem:[#allocation2 + $0x48] sm:$0xff] }
 0x288   : > { %v6709_v47 = vadd.f32 %v6282_v29, %v2797_v61  ;;  %v3521_v45 = vsel %vm1054_vm3, %v3518_v53, %v3520_v16  ;;  %v7828_v63 = vrot.slane %v6628_v50, 2  ;;  %v3838_v29 = vmax.f32 %v3796_v6, %v3516_v4  ;;  %v6723_v61 = vld [vmem:[#allocation2 + $0x50] sm:$0xff]  ;;  %v7829_v53 = vld [vmem:[#allocation6_spill] sm:$0xff] }
 0x289   : > { %7823 = vst [vmem:[#allocation7_spill] sm:$0xff] %v6703_v54  ;;  %v3663_v37 = vsel %vm1263_vm4, %v3661_v39, %v7824_v32  ;;  %3374 = vst.msk [vmem:[#allocation2 + $0xa0] sm:$0x1] %vm3358_vm8, %v6703_v54  ;;  %v2794_v18 = vsel %vm2779_vm7, %v2792_v55, %v2793_v40  ;;  %v6716_v46 = vadd.f32 %v7826_v51, %v2793_v40  ;;  %v3664_v4 = vrot.slane %v6671_v36, 2  ;;  %v7831_v32 = vld [vmem:[#allocation10_spill] sm:$0xff] }
 0x28a   : > { %7825 = vst [vmem:[#allocation5_spill] sm:$0xff] %v6709_v47  ;;  %v3767_v34 = vmax.f32 %v3623_v48, %v3663_v37  ;;  %v3989_v38 = vmax.f32 %v3950_v56, %v3663_v37  ;;  %v3660_v39 = vsel %vm1263_vm4, %v7828_v63, %v3659_v35  ;;  %3373 = vst.msk [vmem:[#allocation2 + $0x98] sm:$0xff] %vm1754_vm5, %v6709_v47  ;;  %v4869_v16 = vpop.f32.mrf.mxu1  ;;  %v7830_v56 = vld [vmem:[#allocation34_spill] sm:$0xff]  ;;  %vm3324_vm13 = vcmp.gt.f32.partialorder %v7831_v32, 0.1 }
 0x28b   : > { %7827 = vst [vmem:[#allocation9_spill] sm:$0xff] %v6716_v46  ;;  %v6728_v48 = vadd.f32 %v7829_v53, %v2794_v18  ;;  %v3878_v55 = vmax.f32 %v3839_v49, %v3663_v37  ;;  %vm3323_vm11 = vcmp.gt.f32.partialorder %v7830_v56, 0.1  ;;  %v3766_v40 = vmax.f32 %v3622_v28, %v3660_v39  ;;  %3371 = vst.msk [vmem:[#allocation2 + $0x88] sm:$0x1] %vm3358_vm8, %v6716_v46  ;;  %v6777_v5 = vld [vmem:[#allocation2 + $0x68] sm:$0xff] }
 0x28c   : > { %vm4021_vm10 = vcmp.gt.f32.partialorder %v3989_v38, 0.1  ;;  %v2677_v50 = vadd.f32 %v4869_v16, %v6440_v12  ;;  %v3624_v6 = vmax.f32 %v6613_v26, %v3521_v45  ;;  %v3877_v35 = vmax.f32 %v3838_v29, %v3660_v39  ;;  %v2668_v49 = vpop.f32.mrf.mxu1 }
 0x28d   : > { %vm4053_vm12 = vmand %vm3322_vm9, %vm4021_vm10  ;;  %3370 = vst.msk [vmem:[#allocation2 + $0x80] sm:$0xff] %vm1754_vm5, %v6728_v48  ;;  %v7696_v28 = vmov 0   ;;  %v3799_v38 = vmax.f32 %v3767_v34, %v6718_v44  ;;  %v3522_v18 = vrot.slane %v6718_v44, 1  ;;  %v7701_v33 = vrot.slane %v6723_v61, 1 }
 0x28e   : > { %v4085_v37 = vsel %vm4053_vm12, 1, %v7696_v28  ;;  %v2801_v51 = vrot.slane %v2677_v50, 7  ;;  %v2669_v63 = vadd.f32 %v6440_v12, %v2668_v49  ;;  %v3909_v36 = vmax.f32 %v3877_v35, %v6613_v26  ;;  %v4870_v29 = vpop.f32.mrf.mxu1 }
 0x28f   : > { %4118 = vperm.xlu0 %4930, %v4085_v37   ;;  %v3798_v53 = vmax.f32 %v3766_v40, %v6613_v26  ;;  %v3524_v16 = vsel %vm1054_vm3, %v3522_v18, %v7701_v33  ;;  %v3666_v34 = vrot.slane %v6718_v44, 2  ;;  %v3910_v28 = vmax.f32 %v3878_v55, %v6718_v44 }
 0x290   : > { %v6755_v50 = vadd.f32 %v6341_v8, %v2801_v51  ;;  %v2798_v49 = vrot.slane %v2669_v63, 7  ;;  %v2680_v37 = vadd.f32 %v4870_v29, %v6440_v12  ;;  %v3951_v35 = vmax.f32 %v3909_v36, %v3521_v45  ;;  %v2671_v54 = vpop.f32.mrf.mxu1 }
 0x291   : > { %v7833_v39 = vrot.slane %v6613_v26, 2  ;;  %v3952_v47 = vmax.f32 %v3910_v28, %v3524_v16  ;;  %v3841_v46 = vmax.f32 %v3799_v38, %v3524_v16  ;;  %v7834_v18 = vrot.slane %v6615_v1, 2 }
 0x292   : > { %7832 = vst [vmem:[#allocation8_spill] sm:$0xff] %v6755_v50  ;;  %v7835_v33 = vrot.slane %v6596_v30, 2  ;;  %3378 = vst.msk [vmem:[#allocation2 + $0xc0] sm:$0xfe] %vm3355_vm6, %v6755_v50  ;;  %v6771_v8 = vadd.f32 %v6289_v31, %v2798_v49  ;;  %v2802_v63 = vrot.slane %v2680_v37, 7  ;;  %v2672_v26 = vadd.f32 %v6440_v12, %v2671_v54  ;;  %v7837_v31 = vld [vmem:[#allocation35_spill] sm:$0xff] }
 0x293   : > { %v3665_v40 = vsel %vm1263_vm4, %v7833_v39, %v3664_v4  ;;  %v7836_v4 = vrot.slane %v6723_v61, 2  ;;  %v3840_v36 = vmax.f32 %v3798_v53, %v3521_v45  ;;  %v3625_v54 = vmax.f32 %v6718_v44, %v3524_v16  ;;  %v6789_v45 = vld [vmem:[#allocation2 + $0x60] sm:$0xff]  ;;  %v7841_v53 = vld [vmem:[#allocation12_spill] sm:$0xff] }
 0x294   : > { %v6766_v55 = vsel %vm1263_vm4, %v7835_v33, %v7834_v18  ;;  %v3768_v38 = vmax.f32 %v3624_v6, %v3665_v40  ;;  %v3990_v39 = vmax.f32 %v3951_v35, %v3665_v40  ;;  %3375 = vst.msk [vmem:[#allocation2 + $0xa8] sm:$0xfe] %vm3355_vm6, %v6771_v8  ;;  %v2803_v33 = vsel %vm2779_vm7, %v2801_v51, %v2802_v63  ;;  %v7840_v6 = vld [vmem:[#allocation13_spill] sm:$0xff]  ;;  %v3416_v44 = vld [vmem:[#allocation2 + $0x58] sm:$0x3] }
 0x295   : > { %v3668_v28 = vsel %vm1263_vm4, %v3666_v34, %v7836_v4  ;;  %v6783_v18 = vadd.f32 %v7837_v31, %v2802_v63  ;;  %v2799_v37 = vrot.slane %v2672_v26, 7  ;;  %v6787_v50 = vadd.f32 %v6344_v11, %v2803_v33  ;;  %v7843_v16 = vld [vmem:[#allocation24_spill] sm:$0xff]  ;;  %v7845_v31 = vld [vmem:[#allocation11_spill] sm:$0xff] }
 0x296   : > { %v3991_v29 = vmax.f32 %v3952_v47, %v3668_v28  ;;  %vm4022_vm14 = vcmp.gt.f32.partialorder %v3990_v39, 0.1  ;;  %v3880_v47 = vmax.f32 %v3841_v46, %v3668_v28  ;;  %vm3326_vm0 = vcmp.gt.f32.partialorder %v7840_v6, 0.1  ;;  %v4873_v63 = vpop.f32.mrf.mxu1 }
 0x297   : > { %7838 = vst [vmem:[#allocation6_spill] sm:$0xff] %v6783_v18  ;;  %7839 = vst [vmem:[#allocation34_spill] sm:$0xff] %v6787_v50  ;;  %v2800_v51 = vsel %vm2779_vm7, %v2798_v49, %v2799_v37  ;;  %v6796_v34 = vadd.f32 %v7841_v53, %v2799_v37  ;;  %v7705_v11 = vrot.slane %v6777_v5, 1  ;;  %v3879_v49 = vmax.f32 %v3840_v36, %v3665_v40 }
 0x298   : > { %vm4023_vm15 = vcmp.gt.f32.partialorder %v3991_v29, 0.1  ;;  %3380 = vst.msk [vmem:[#allocation2 + $0xd0] sm:$0x1] %vm3358_vm8, %v6783_v18  ;;  %vm4054_vm1 = vmand %vm3323_vm11, %vm4022_vm14  ;;  %v6806_v46 = vadd.f32 %v6292_v24, %v2800_v51  ;;  %v7844_v26 = vmov 0   ;;  %v3800_v39 = vmax.f32 %v3768_v38, %v6723_v61  ;;  %v2684_v38 = vpop.f32.mrf.mxu1 }
 0x299   : > { %7842 = vst [vmem:[#allocation10_spill] sm:$0xff] %v6796_v34  ;;  %3379 = vst.msk [vmem:[#allocation2 + $0xc8] sm:$0xff] %vm1754_vm5, %v6787_v50  ;;  %v4086_v4 = vsel %vm4054_vm1, 1, %v7844_v26  ;;  %v2693_v56 = vadd.f32 %v4873_v63, %v6440_v12  ;;  %v3527_v24 = vrot.slane %v6789_v45, 1  ;;  %v7707_v40 = vrot.slane %v6777_v5, 2 }
 0x29a   : > { %vm4055_vm2 = vmand %vm3324_vm13, %vm4023_vm15  ;;  %3377 = vst.msk [vmem:[#allocation2 + $0xb8] sm:$0x1] %vm3358_vm8, %v6796_v34  ;;  %4121 = vperm.xlu0 %4930, %v4086_v4   ;;  %v3769_v36 = vmax.f32 %v3625_v54, %v3668_v28  ;;  %v3671_v32 = vrot.slane %v6789_v45, 2  ;;  %v3912_v29 = vmax.f32 %v3880_v47, %v6789_v45  ;;  %vm3325_vm9 = vcmp.gt.f32.partialorder %v7845_v31, 0.1  ;;  %v4874_v35 = vpop.f32.mrf.mxu1 }
 0x29b   : > { %v4087_v33 = vsel %vm4055_vm2, 1, %v7844_v26  ;;  %3376 = vst.msk [vmem:[#allocation2 + $0xb0] sm:$0xff] %vm1754_vm5, %v6806_v46  ;;  %v3525_v37 = vrot.slane %v3416_v44, 1  ;;  %v2807_v51 = vrot.slane %v2693_v56, 7  ;;  %v2685_v53 = vadd.f32 %v6440_v12, %v2684_v38  ;;  %v3419_v34 = vld [vmem:[#allocation2 + $0x70] sm:$0x3] }
 0x29c   : > { %4124 = vperm.xlu1 %4931, %v4087_v33   ;;  %v3529_v63 = vsel %vm1054_vm3, %v3527_v24, %v7705_v11  ;;  %v3669_v4 = vrot.slane %v3416_v44, 2  ;;  %v6831_v28 = vsel %vm1263_vm4, %v3671_v32, %v7707_v40  ;;  %v7846_v47 = vrot.slane %v6723_v61, 1  ;;  %v2687_v11 = vpop.f32.mrf.mxu1  ;;  %v6844_v40 = vld [vmem:[#allocation2 + $0x130] sm:$0x3] }
 0x29d   : > { %v3954_v54 = vmax.f32 %v3912_v29, %v3529_v63  ;;  %v3911_v56 = vmax.f32 %v3879_v49, %v6723_v61  ;;  %v6838_v38 = vadd.f32 %v6431_v42, %v2807_v51  ;;  %v2804_v18 = vrot.slane %v2685_v53, 7 }
 0x29e   : > { %v3526_v33 = vsel %vm1054_vm3, %v7846_v47, %v3525_v37  ;;  %v2696_v24 = vadd.f32 %v4874_v35, %v6440_v12  ;;  %v3801_v50 = vmax.f32 %v3769_v36, %v6789_v45  ;;  %v2688_v35 = vadd.f32 %v6440_v12, %v2687_v11 }
 0x29f   : > { %7847 = vst [vmem:[#allocation35_spill] sm:$0xff] %v6838_v38  ;;  %v3626_v44 = vmax.f32 %v6723_v61, %v3526_v33  ;;  %v3993_v32 = vmax.f32 %v3954_v54, %v6831_v28  ;;  %v3842_v29 = vmax.f32 %v3800_v39, %v3526_v33  ;;  %3384 = vst.msk [vmem:[#allocation2 + $0xf0] sm:$0xfe] %vm3355_vm6, %v6838_v38  ;;  %v7848_v53 = vrot.slane %v6723_v61, 2 }
 0x2a0   : > { %v6850_v42 = vadd.f32 %v6373_v21, %v2804_v18  ;;  %v2808_v49 = vrot.slane %v2696_v24, 7  ;;  %v3953_v47 = vmax.f32 %v3911_v56, %v3526_v33  ;;  %v2805_v24 = vrot.slane %v2688_v35, 7 }
 0x2a1   : > { %v3670_v36 = vsel %vm1263_vm4, %v7848_v53, %v3669_v4  ;;  %vm4025_vm10 = vcmp.gt.f32.partialorder %v3993_v32, 0.1  ;;  %v3627_v11 = vmax.f32 %v6789_v45, %v3529_v63  ;;  %v3843_v33 = vmax.f32 %v3801_v50, %v3529_v63 }
 0x2a2   : > { %v3770_v54 = vmax.f32 %v3626_v44, %v3670_v36  ;;  %v3881_v39 = vmax.f32 %v3842_v29, %v3670_v36  ;;  %3381 = vst.msk [vmem:[#allocation2 + $0xd8] sm:$0xfe] %vm3355_vm6, %v6850_v42  ;;  %v2809_v37 = vsel %vm2779_vm7, %v2807_v51, %v2808_v49  ;;  %v6860_v21 = vadd.f32 %v6474_v43, %v2808_v49  ;;  %vm4057_vm11 = vmand %vm3326_vm0, %vm4025_vm10  ;;  %v7851_v51 = vld [vmem:[#allocation14_spill] sm:$0xff]  ;;  %v4877_v50 = vpop.f32.mrf.mxu1  ;;  %v6883_v29 = vld [vmem:[#allocation2 + $0x80] sm:$0xff] }
 0x2a3   : > { %v6866_v61 = vadd.f32 %v6434_v27, %v2809_v37  ;;  %v4089_v4 = vsel %vm4057_vm11, 1, %v7844_v26  ;;  %v3992_v56 = vmax.f32 %v3953_v47, %v3670_v36  ;;  %vm3327_vm12 = vcmp.gt.f32.partialorder %v6406_v57, 0.1  ;;  %v6888_v37 = vld [vmem:[#allocation2 + $0x78] sm:$0xff] }
 0x2a4   : > { %7849 = vst [vmem:[#allocation13_spill] sm:$0xff] %v6860_v21  ;;  %3386 = vst.msk [vmem:[#allocation2 + $0x100] sm:$0x1] %vm3358_vm8, %v6860_v21  ;;  %v2806_v43 = vsel %vm2779_vm7, %v2804_v18, %v2805_v24  ;;  %v6874_v44 = vadd.f32 %v7851_v51, %v2805_v24  ;;  %4130 = vperm.xlu0 %4930, %v4089_v4   ;;  %v3802_v45 = vmax.f32 %v3770_v54, %v6777_v5  ;;  %v2700_v53 = vpop.f32.mrf.mxu1  ;;  %v7878_v21 = vld [vmem:[#allocation17_spill] sm:$0xff] }
 0x2a5   : > { %7850 = vst [vmem:[#allocation12_spill] sm:$0xff] %v6866_v61  ;;  %v3530_v6 = vrot.slane %v3419_v34, 1  ;;  %3385 = vst.msk [vmem:[#allocation2 + $0xf8] sm:$0xff] %vm1754_vm5, %v6866_v61  ;;  %v6880_v27 = vadd.f32 %v6376_v23, %v2806_v43  ;;  %vm4024_vm13 = vcmp.gt.f32.partialorder %v3992_v56, 0.1  ;;  %v3674_v63 = vrot.slane %v3419_v34, 2 }
 0x2a6   : > { %7852 = vst [vmem:[#allocation24_spill] sm:$0xff] %v6874_v44  ;;  %v3913_v32 = vmax.f32 %v3881_v39, %v6777_v5  ;;  %3383 = vst.msk [vmem:[#allocation2 + $0xe8] sm:$0x1] %vm3358_vm8, %v6874_v44  ;;  %v2709_v18 = vadd.f32 %v4877_v50, %v6440_v12  ;;  %v7853_v23 = vmax.f32 %v6596_v30, %v7809_v9  ;;  %v7854_v39 = vrot.slane %v6777_v5, 1  ;;  %v4878_v51 = vpop.f32.mrf.mxu1 }
 0x2a7   : > { %vm4056_vm14 = vmand %vm3325_vm9, %vm4024_vm13  ;;  %3382 = vst.msk [vmem:[#allocation2 + $0xe0] sm:$0xff] %vm1754_vm5, %v6880_v27  ;;  %v3771_v36 = vmax.f32 %v3627_v11, %v6831_v28  ;;  %v3882_v31 = vmax.f32 %v3843_v33, %v6831_v28  ;;  %vm3328_vm15 = vcmp.gt.f32.partialorder %v6422_v13, 0.1  ;;  %v2701_v4 = vadd.f32 %v6440_v12, %v2700_v53 }
 0x2a8   : > { %v6896_v49 = vmax.f32 %v7853_v23, %v6766_v55  ;;  %v4088_v54 = vsel %vm4056_vm14, 1, %v7844_v26  ;;  %v3531_v47 = vsel %vm1054_vm3, %v7854_v39, %v3530_v6  ;;  %v2813_v24 = vrot.slane %v2709_v18, 7 }
 0x2a9   : > { %4127 = vperm.xlu1 %4931, %v4088_v54   ;;  %v3955_v56 = vmax.f32 %v3913_v32, %v3531_v47  ;;  %v3533_v43 = vrot.slane %v6883_v29, 1  ;;  %v7855_v11 = vrot.slane %v6777_v5, 2  ;;  %v3844_v33 = vmax.f32 %v3802_v45, %v3531_v47  ;;  %v2703_v32 = vpop.f32.mrf.mxu1 }
 0x2aa   : > { %v3532_v50 = vrot.slane %v6888_v37, 1  ;;  %v3677_v23 = vrot.slane %v6883_v29, 2  ;;  %v6919_v6 = vadd.f32 %v6596_v30, %v2813_v24  ;;  %v2810_v18 = vrot.slane %v2701_v4, 7 }
 0x2ab   : > { %v3675_v28 = vsel %vm1263_vm4, %v7855_v11, %v3674_v63  ;;  %v2712_v53 = vadd.f32 %v4878_v51, %v6440_v12  ;;  %v3628_v39 = vmax.f32 %v6777_v5, %v3531_v47  ;;  %v3676_v34 = vrot.slane %v6888_v37, 2 }
 0x2ac   : > { %7856 = vst [vmem:[#allocation11_spill] sm:$0xff] %v6919_v6  ;;  %v3994_v54 = vmax.f32 %v3955_v56, %v3675_v28  ;;  %v3914_v35 = vmax.f32 %v3882_v31, %v6888_v37  ;;  %v7857_v45 = vrot.slane %v6844_v40, 2  ;;  %v7858_v63 = vrot.slane %v6615_v1, 2  ;;  %3390 = vst.msk [vmem:[#allocation2 + $0x120] sm:$0xfe] %vm3355_vm6, %v6919_v6 }
 0x2ad   : > { %v6935_v30 = vadd.f32 %v6500_v7, %v2810_v18  ;;  %v2814_v4 = vrot.slane %v2712_v53, 7  ;;  %v2704_v5 = vadd.f32 %v6440_v12, %v2703_v32  ;;  %v3534_v47 = vsel %vm1054_vm3, %v3532_v50, %v3533_v43  ;;  %v6968_v32 = vld [vmem:[#allocation2 + $0x138] sm:$0xff] }
 0x2ae   : > { %v6930_v11 = vsel %vm1263_vm4, %v7858_v63, %v7857_v45  ;;  %v3803_v31 = vmax.f32 %v3771_v36, %v6888_v37  ;;  %v3883_v56 = vmax.f32 %v3844_v33, %v3675_v28  ;;  %vm4026_vm0 = vcmp.gt.f32.partialorder %v3994_v54, 0.1  ;;  %v3422_v36 = vld [vmem:[#allocation2 + $0x88] sm:$0x3]  ;;  %v6966_v54 = vld [vmem:[#allocation2 + $0x98] sm:$0xff] }
 0x2af   : > { %7859 = vst [vmem:[#allocation14_spill] sm:$0xff] %v6935_v30  ;;  %v3956_v51 = vmax.f32 %v3914_v35, %v3534_v47  ;;  %3387 = vst.msk [vmem:[#allocation2 + $0x108] sm:$0xfe] %vm3355_vm6, %v6935_v30  ;;  %v2815_v45 = vsel %vm2779_vm7, %v2813_v24, %v2814_v4  ;;  %v6944_v63 = vadd.f32 %v6844_v40, %v2814_v4  ;;  %v2811_v7 = vrot.slane %v2704_v5, 7  ;;  %v4881_v5 = vpop.f32.mrf.mxu1 }
 0x2b0   : > { %vm4058_vm1 = vmand %vm3327_vm12, %vm4026_vm0  ;;  %v6951_v50 = vsel %vm1263_vm4, %v3676_v34, %v3677_v23  ;;  %v6954_v35 = vadd.f32 %v6615_v1, %v2815_v45  ;;  %v3629_v40 = vmax.f32 %v6888_v37, %v3534_v47  ;;  %vm3329_vm2 = vcmp.gt.f32.partialorder %v6428_v14, 0.1 }
 0x2b1   : > { %7860 = vst [vmem:[#allocation41_spill] sm:$0xff] %v6944_v63  ;;  %v4090_v33 = vsel %vm4058_vm1, 1, %v7844_v26  ;;  %v3995_v24 = vmax.f32 %v3956_v51, %v6951_v50  ;;  %3392 = vst.msk [vmem:[#allocation2 + $0x130] sm:$0x1] %vm3358_vm8, %v6944_v63  ;;  %v2812_v57 = vsel %vm2779_vm7, %v2810_v18, %v2811_v7  ;;  %v6964_v34 = vadd.f32 %v6520_v10, %v2811_v7  ;;  %v6981_v51 = vld [vmem:[#allocation2 + $0x90] sm:$0xff] }
 0x2b2   : > { %7861 = vst [vmem:[#allocation42_spill] sm:$0xff] %v6954_v35  ;;  %v3772_v53 = vmax.f32 %v3628_v39, %v3675_v28  ;;  %4133 = vperm.xlu1 %4931, %v4090_v33   ;;  %3391 = vst.msk [vmem:[#allocation2 + $0x128] sm:$0xff] %vm1754_vm5, %v6954_v35  ;;  %v6975_v37 = vadd.f32 %v6509_v15, %v2812_v57  ;;  %v3845_v18 = vmax.f32 %v3803_v31, %v3534_v47  ;;  %v2716_v47 = vpop.f32.mrf.mxu1 }
 0x2b3   : > { %7862 = vst [vmem:[#allocation43_spill] sm:$0xff] %v6964_v34  ;;  %vm4027_vm9 = vcmp.gt.f32.partialorder %v3995_v24, 0.1  ;;  %v3535_v10 = vrot.slane %v3422_v36, 1  ;;  %3389 = vst.msk [vmem:[#allocation2 + $0x118] sm:$0x1] %vm3358_vm8, %v6964_v34  ;;  %v2725_v28 = vadd.f32 %v4881_v5, %v6440_v12  ;;  %v3915_v15 = vmax.f32 %v3883_v56, %v6883_v29 }
 0x2b4   : > { %7863 = vst [vmem:[#allocation44_spill] sm:$0xff] %v6975_v37  ;;  %v3804_v39 = vmax.f32 %v3772_v53, %v6883_v29  ;;  %vm4059_vm10 = vmand %vm3328_vm15, %vm4027_vm9  ;;  %v3679_v45 = vrot.slane %v3422_v36, 2  ;;  %v3773_v7 = vmax.f32 %v3629_v40, %v6951_v50  ;;  %v7709_v24 = vrot.slane %v6966_v54, 1  ;;  %v4882_v4 = vpop.f32.mrf.mxu1 }
 0x2b5   : > { %3388 = vst.msk [vmem:[#allocation2 + $0x110] sm:$0xff] %vm1754_vm5, %v6975_v37  ;;  %v4091_v31 = vsel %vm4059_vm10, 1, %v7844_v26  ;;  %v3536_v33 = vsel %vm1054_vm3, %v3533_v43, %v3535_v10  ;;  %v2819_v57 = vrot.slane %v2725_v28, 7  ;;  %v2717_v53 = vadd.f32 %v6440_v12, %v2716_v47  ;;  %v7008_v28 = vld [vmem:[#allocation2 + $0x150] sm:$0xff]  ;;  %v3428_v37 = vld [vmem:[#allocation2 + $0xb8] sm:$0x3] }
 0x2b6   : > { %4136 = vperm.xlu0 %4930, %v4091_v31   ;;  %v3957_v13 = vmax.f32 %v3915_v15, %v3536_v33  ;;  %v7864_v56 = vmax.f32 %v6679_v2, %v7809_v9  ;;  %v3884_v5 = vmax.f32 %v3845_v18, %v6951_v50  ;;  %v7003_v43 = vsel %vm1263_vm4, %v3677_v23, %v3679_v45  ;;  %v2719_v45 = vpop.f32.mrf.mxu1  ;;  %v7041_v15 = vld [vmem:[#allocation2 + $0x158] sm:$0xff] }
 0x2b7   : > { %v3630_v40 = vmax.f32 %v6883_v29, %v3536_v33  ;;  %vm3330_vm11 = vcmp.gt.f32.partialorder %v6449_v19, 0.1  ;;  %v3537_v10 = vrot.slane %v6981_v51, 1  ;;  %v7011_v9 = vadd.f32 %v7008_v28, %v2819_v57  ;;  %v7091_v19 = vld [vmem:[#allocation2 + $0x180] sm:$0xff] }
 0x2b8   : > { %v6997_v36 = vmax.f32 %v7864_v56, %v6766_v55  ;;  %v2816_v2 = vrot.slane %v2717_v53, 7  ;;  %v2728_v50 = vadd.f32 %v4882_v4, %v6440_v12  ;;  %v3996_v18 = vmax.f32 %v3957_v13, %v7003_v43 }
 0x2b9   : > { %7865 = vst [vmem:[#allocation45_spill] sm:$0xff] %v7011_v9  ;;  %v3805_v23 = vmax.f32 %v3773_v7, %v6981_v51  ;;  %v3846_v29 = vmax.f32 %v3804_v39, %v3536_v33  ;;  %v3539_v47 = vsel %vm1054_vm3, %v3537_v10, %v7709_v24  ;;  %3396 = vst.msk [vmem:[#allocation2 + $0x150] sm:$0xfe] %vm3355_vm6, %v7011_v9  ;;  %v3681_v39 = vrot.slane %v6981_v51, 2  ;;  %v7033_v10 = vld [vmem:[#allocation2 + $0x160] sm:$0x3] }
 0x2ba   : > { %v7023_v31 = vadd.f32 %v6968_v32, %v2816_v2  ;;  %v2820_v53 = vrot.slane %v2728_v50, 7  ;;  %v2720_v4 = vadd.f32 %v6440_v12, %v2719_v45  ;;  %vm4028_vm12 = vcmp.gt.f32.partialorder %v3996_v18, 0.1  ;;  %v3425_v18 = vld [vmem:[#allocation2 + $0xa0] sm:$0x3]  ;;  %v7869_v9 = vld [vmem:[#allocation15_spill] sm:$0xff] }
 0x2bb   : > { %v3774_v7 = vmax.f32 %v3630_v40, %v7003_v43  ;;  %v3916_v33 = vmax.f32 %v3884_v5, %v6981_v51  ;;  %vm4060_vm13 = vmand %vm3329_vm2, %vm4028_vm12  ;;  %v3631_v40 = vmax.f32 %v6981_v51, %v3539_v47  ;;  %vm3331_vm14 = vcmp.gt.f32.partialorder %v7869_v9, 0.1 }
 0x2bc   : > { %7866 = vst [vmem:[#allocation46_spill] sm:$0xff] %v7023_v31  ;;  %3393 = vst.msk [vmem:[#allocation2 + $0x138] sm:$0xfe] %vm3355_vm6, %v7023_v31  ;;  %v2821_v56 = vsel %vm2779_vm7, %v2819_v57, %v2820_v53  ;;  %v7036_v50 = vadd.f32 %v7033_v10, %v2820_v53  ;;  %v2817_v45 = vrot.slane %v2720_v4, 7  ;;  %v4092_v24 = vsel %vm4060_vm13, 1, %v7844_v26 }
 0x2bd   : > { %v7044_v5 = vadd.f32 %v7041_v15, %v2821_v56  ;;  %v3885_v57 = vmax.f32 %v3846_v29, %v7003_v43  ;;  %v3958_v13 = vmax.f32 %v3916_v33, %v3539_v47  ;;  %v7052_v53 = vld [vmem:[#allocation2 + $0x148] sm:$0x3]  ;;  %4139 = vperm.xlu1 %4931, %v4092_v24   ;;  %v7871_v4 = vrot.slane %v6966_v54, 2  ;;  %v7062_v43 = vld [vmem:[#allocation2 + $0x140] sm:$0xff] }
 0x2be   : > { %7867 = vst [vmem:[#allocation47_spill] sm:$0xff] %v7036_v50  ;;  %3398 = vst.msk [vmem:[#allocation2 + $0x160] sm:$0x1] %vm3358_vm8, %v7036_v50  ;;  %v2818_v14 = vsel %vm2779_vm7, %v2816_v2, %v2817_v45  ;;  %v7055_v51 = vadd.f32 %v7052_v53, %v2817_v45  ;;  %v3847_v31 = vmax.f32 %v3805_v23, %v3539_v47  ;;  %v3426_v50 = vld [vmem:[#allocation2 + $0xa8] sm:$0xff]  ;;  %v4885_v45 = vpop.f32.mrf.mxu1  ;;  %v3540_v63 = vrot.slane %v3425_v18, 1 }
 0x2bf   : > { %7868 = vst [vmem:[#allocation48_spill] sm:$0xff] %v7044_v5  ;;  %v3683_v56 = vsel %vm1263_vm4, %v3681_v39, %v7871_v4  ;;  %3397 = vst.msk [vmem:[#allocation2 + $0x158] sm:$0xff] %vm1754_vm5, %v7044_v5  ;;  %v7065_v29 = vadd.f32 %v7062_v43, %v2818_v14  ;;  %v3806_v2 = vmax.f32 %v3774_v7, %v6966_v54  ;;  %v3684_v39 = vrot.slane %v3425_v18, 2  ;;  %v7074_v4 = vld [vmem:[#allocation2 + $0xb0] sm:$0xff] }
 0x2c0   : > { %7870 = vst [vmem:[#allocation15_spill] sm:$0xff] %v7055_v51  ;;  %v3997_v33 = vmax.f32 %v3958_v13, %v3683_v56  ;;  %3395 = vst.msk [vmem:[#allocation2 + $0x148] sm:$0x1] %vm3358_vm8, %v7055_v51  ;;  %v3775_v23 = vmax.f32 %v3631_v40, %v3683_v56  ;;  %v7072_v47 = vadd.f32 %v4885_v45, %v6440_v12  ;;  %v2732_v7 = vpop.f32.mrf.mxu1  ;;  %v7873_v14 = vrot.slane %v6966_v54, 1  ;;  %v7874_v51 = vld [vmem:[#allocation16_spill] sm:$0xff] }
 0x2c1   : > { %7872 = vst [vmem:[#allocation49_spill] sm:$0xff] %v7065_v29  ;;  %3394 = vst.msk [vmem:[#allocation2 + $0x140] sm:$0xff] %vm1754_vm5, %v7065_v29  ;;  %v3886_v13 = vmax.f32 %v3847_v31, %v3683_v56  ;;  %v3917_v5 = vmax.f32 %v3885_v57, %v6966_v54  ;;  %v2733_v18 = vadd.f32 %v6440_v12, %v2732_v7  ;;  %vm3332_vm1 = vcmp.gt.f32.partialorder %v7874_v51, 0.1 }
 0x2c2   : > { %vm4029_vm15 = vcmp.gt.f32.partialorder %v3997_v33, 0.1  ;;  %v3541_v24 = vsel %vm1054_vm3, %v7873_v14, %v3540_v63  ;;  %v2825_v40 = vrot.slane %v7072_v47, 7  ;;  %v3542_v33 = vrot.slane %v3426_v50, 1  ;;  %v4886_v14 = vpop.f32.mrf.mxu1 }
 0x2c3   : > { %vm4061_vm0 = vmand %vm3330_vm11, %vm4029_vm15  ;;  %v3632_v45 = vmax.f32 %v6966_v54, %v3541_v24  ;;  %v3959_v56 = vmax.f32 %v3917_v5, %v3541_v24  ;;  %v3848_v29 = vmax.f32 %v3806_v2, %v3541_v24  ;;  %v3543_v63 = vrot.slane %v7074_v4, 1 }
 0x2c4   : > { %v4093_v31 = vsel %vm4061_vm0, 1, %v7844_v26  ;;  %v7094_v47 = vadd.f32 %v7091_v19, %v2825_v40  ;;  %v2822_v12 = vrot.slane %v2733_v18, 7  ;;  %v7876_v7 = vrot.slane %v6966_v54, 2  ;;  %v2735_v24 = vpop.f32.mrf.mxu1 }
 0x2c5   : > { %4142 = vperm.xlu0 %4930, %v4093_v31   ;;  %v3807_v35 = vmax.f32 %v3775_v23, %v3426_v50  ;;  %v3544_v5 = vsel %vm1054_vm3, %v3542_v33, %v3543_v63  ;;  %v3687_v2 = vrot.slane %v7074_v4, 2  ;;  %v7103_v31 = vld [vmem:[#allocation2 + $0x168] sm:$0xff]  ;;  %v3686_v30 = vrot.slane %v3426_v50, 2 }
 0x2c6   : > { %7875 = vst [vmem:[#allocation16_spill] sm:$0xff] %v7094_v47  ;;  %v3685_v6 = vsel %vm1263_vm4, %v7876_v7, %v3684_v39  ;;  %3402 = vst.msk [vmem:[#allocation2 + $0x180] sm:$0xfe] %vm3355_vm6, %v7094_v47  ;;  %v7106_v57 = vadd.f32 %v7103_v31, %v2822_v12  ;;  %v3918_v54 = vmax.f32 %v3886_v13, %v3426_v50  ;;  %vm3333_vm10 = vcmp.gt.f32.partialorder %v7878_v21, 0.1 }
 0x2c7   : > { %v3998_v34 = vmax.f32 %v3959_v56, %v3685_v6  ;;  %v3776_v18 = vmax.f32 %v3632_v45, %v3685_v6  ;;  %v3887_v23 = vmax.f32 %v3848_v29, %v3685_v6  ;;  %v3633_v39 = vmax.f32 %v3426_v50, %v3544_v5  ;;  %v5035_v45 = vld [vmem:[%s7605_s6] ss:$0 sm:$0xff]  ;;  %v7123_v6 = vld [vmem:[#allocation2 + $0x190] sm:$0x3] }
 0x2c8   : > { %7877 = vst [vmem:[#allocation50_spill] sm:$0xff] %v7106_v57  ;;  %v3849_v56 = vmax.f32 %v3807_v35, %v3544_v5  ;;  %3399 = vst.msk [vmem:[#allocation2 + $0x168] sm:$0xfe] %vm3355_vm6, %v7106_v57  ;;  %v3688_v33 = vsel %vm1263_vm4, %v3686_v30, %v3687_v2  ;;  %v3960_v7 = vmax.f32 %v3918_v54, %v3544_v5  ;;  %v3545_v50 = vrot.slane %v3428_v37, 1  ;;  %v3429_v54 = vld [vmem:[#allocation2 + $0xc0] sm:$0xff] }
 0x2c9   : > { %vm4030_vm2 = vcmp.gt.f32.partialorder %v3998_v34, 0.1  ;;  %v2744_v47 = vadd.f32 %v5035_v45, %v4886_v14  ;;  %v2736_v13 = vadd.f32 %v5035_v45, %v2735_v24  ;;  %v3777_v34 = vmax.f32 %v3633_v39, %v3688_v33 }
 0x2ca   : > { %vm4062_vm9 = vmand %vm3331_vm14, %vm4030_vm2  ;;  %v3808_v9 = vmax.f32 %v3776_v18, %v7074_v4  ;;  %v3999_v29 = vmax.f32 %v3960_v7, %v3688_v33  ;;  %v3888_v57 = vmax.f32 %v3849_v56, %v3688_v33  ;;  %v3546_v38 = vsel %vm1054_vm3, %v3543_v63, %v3545_v50  ;;  %v3430_v7 = vld [vmem:[#allocation2 + $0xc8] sm:$0xff]  ;;  %v7136_v63 = vld [vmem:[#allocation2 + $0x170] sm:$0xff] }
 0x2cb   : > { %v4094_v35 = vsel %vm4062_vm9, 1, %v7844_v26  ;;  %v2826_v30 = vrot.slane %v2744_v47, 7  ;;  %v2823_v5 = vrot.slane %v2736_v13, 7  ;;  %v3689_v14 = vrot.slane %v3428_v37, 2  ;;  %v7131_v56 = vld [vmem:[#allocation2 + $0x188] sm:$0xff] }
 0x2cc   : > { %4145 = vperm.xlu1 %4931, %v4094_v35   ;;  %v3919_v24 = vmax.f32 %v3887_v23, %v7074_v4  ;;  %vm4031_vm6 = vcmp.gt.f32.partialorder %v3999_v29, 0.1  ;;  %v3809_v47 = vmax.f32 %v3777_v34, %v3429_v54  ;;  %v7141_v23 = vld [vmem:[#allocation2 + $0x178] sm:$0x3]  ;;  %v3634_v13 = vmax.f32 %v7074_v4, %v3546_v38  ;;  %v3431_v34 = vld [vmem:[#allocation2 + $0xd0] sm:$0x3] }
 0x2cd   : > { %v2827_v45 = vsel %vm2779_vm7, %v2825_v40, %v2826_v30  ;;  %v7126_v39 = vadd.f32 %v7123_v6, %v2826_v30  ;;  %v2824_v18 = vsel %vm2779_vm7, %v2822_v12, %v2823_v5  ;;  %vm4063_vm11 = vmand %vm3332_vm1, %vm4031_vm6  ;;  %v7144_v33 = vadd.f32 %v7141_v23, %v2823_v5 }
 0x2ce   : > { %v7134_v37 = vadd.f32 %v7131_v56, %v2827_v45  ;;  %v7139_v40 = vadd.f32 %v7136_v63, %v2824_v18  ;;  %vm3334_vm7 = vcmp.gt.f32.partialorder %v6555_v25, 0.1  ;;  %v4095_v51 = vsel %vm4063_vm11, 1, %v7844_v26 }
 0x2cf   : > { %7879 = vst [vmem:[#allocation17_spill] sm:$0xff] %v7126_v39  ;;  %7882 = vst [vmem:[#allocation53_spill] sm:$0xff] %v7144_v33  ;;  %v3961_v12 = vmax.f32 %v3919_v24, %v3546_v38  ;;  %v3547_v35 = vrot.slane %v3429_v54, 1  ;;  %4148 = vperm.xlu0 %4930, %v4095_v51   ;;  %v3690_v50 = vsel %vm1263_vm4, %v3687_v2, %v3689_v14  ;;  %v3548_v30 = vrot.slane %v3430_v7, 1  ;;  %v3432_v2 = vld [vmem:[#allocation2 + $0xd8] sm:$0xff] }
 0x2d0   : > { %7880 = vst [vmem:[#allocation51_spill] sm:$0xff] %v7134_v37  ;;  %7881 = vst [vmem:[#allocation52_spill] sm:$0xff] %v7139_v40  ;;  %v3850_v29 = vmax.f32 %v3808_v9, %v3546_v38  ;;  %v3691_v5 = vrot.slane %v3429_v54, 2  ;;  %v3778_v45 = vmax.f32 %v3634_v13, %v3690_v50  ;;  %v3692_v4 = vrot.slane %v3430_v7, 2 }
 0x2d1   : > { %3404 = vst.msk [vmem:[#allocation2 + $0x190] sm:$0x1] %vm3358_vm8, %v7126_v39  ;;  %3401 = vst.msk [vmem:[#allocation2 + $0x178] sm:$0x1] %vm3358_vm8, %v7144_v33  ;;  %v4000_v24 = vmax.f32 %v3961_v12, %v3690_v50  ;;  %v3920_v18 = vmax.f32 %v3888_v57, %v3429_v54  ;;  %vm3335_vm12 = vcmp.gt.f32.partialorder %v6564_v20, 0.1  ;;  %v3549_v39 = vsel %vm1054_vm3, %v3547_v35, %v3548_v30 }
 0x2d2   : > { %3403 = vst.msk [vmem:[#allocation2 + $0x188] sm:$0xff] %vm1754_vm5, %v7134_v37  ;;  %3400 = vst.msk [vmem:[#allocation2 + $0x170] sm:$0xff] %vm1754_vm5, %v7139_v40  ;;  %v3889_v51 = vmax.f32 %v3850_v29, %v3690_v50  ;;  %v3550_v37 = vrot.slane %v3431_v34, 1  ;;  %v3694_v61 = vrot.slane %v3431_v34, 2  ;;  %v3810_v40 = vmax.f32 %v3778_v45, %v3430_v7  ;;  %v3433_v12 = vld [vmem:[#allocation2 + $0xe0] sm:$0xff] }
 0x2d3   : > { %vm4032_vm13 = vcmp.gt.f32.partialorder %v4000_v24, 0.1  ;;  %v3635_v44 = vmax.f32 %v3429_v54, %v3549_v39  ;;  %v3693_v33 = vsel %vm1263_vm4, %v3691_v5, %v3692_v4  ;;  %v3962_v38 = vmax.f32 %v3920_v18, %v3549_v39  ;;  %v3435_v18 = vld [vmem:[#allocation2 + $0xf0] sm:$0xff] }
 0x2d4   : > { %vm4064_vm8 = vmand %vm3333_vm10, %vm4032_vm13  ;;  %v3851_v9 = vmax.f32 %v3809_v47, %v3549_v39  ;;  %v3551_v57 = vsel %vm1054_vm3, %v3548_v30, %v3550_v37  ;;  %v3695_v14 = vsel %vm1263_vm4, %v3692_v4, %v3694_v61  ;;  %v3921_v50 = vmax.f32 %v3889_v51, %v3430_v7 }
 0x2d5   : > { %v4096_v13 = vsel %vm4064_vm8, 1, %v7844_v26  ;;  %v3779_v35 = vmax.f32 %v3635_v44, %v3693_v33  ;;  %v3636_v34 = vmax.f32 %v3430_v7, %v3551_v57  ;;  %vm3336_vm14 = vcmp.gt.f32.partialorder %v6567_v17, 0.1  ;;  %v3434_v44 = vld [vmem:[#allocation2 + $0xe8] sm:$0x3] }
 0x2d6   : > { %4151 = vperm.xlu1 %4931, %v4096_v13   ;;  %v4001_v54 = vmax.f32 %v3962_v38, %v3693_v33  ;;  %v3890_v29 = vmax.f32 %v3851_v9, %v3693_v33  ;;  %v3852_v5 = vmax.f32 %v3810_v40, %v3551_v57  ;;  %v3552_v21 = vrot.slane %v3432_v2, 1  ;;  %v3438_v17 = vld [vmem:[#allocation2 + $0x108] sm:$0xff] }
 0x2d7   : > { %v3811_v24 = vmax.f32 %v3779_v35, %v3432_v2  ;;  %v3780_v45 = vmax.f32 %v3636_v34, %v3695_v14  ;;  %v3963_v39 = vmax.f32 %v3921_v50, %v3551_v57  ;;  %v3553_v47 = vrot.slane %v3433_v12, 1  ;;  %v3436_v50 = vld [vmem:[#allocation2 + $0xf8] sm:$0xff] }
 0x2d8   : > { %vm4033_vm15 = vcmp.gt.f32.partialorder %v4001_v54, 0.1  ;;  %v3891_v37 = vmax.f32 %v3852_v5, %v3695_v14  ;;  %v3696_v61 = vrot.slane %v3432_v2, 2  ;;  %v3697_v30 = vrot.slane %v3433_v12, 2 }
 0x2d9   : > { %vm3337_vm0 = vcmp.gt.f32.partialorder %v6575_v58, 0.1  ;;  %vm4065_vm1 = vmand %vm3334_vm7, %vm4033_vm15  ;;  %v4002_v7 = vmax.f32 %v3963_v39, %v3695_v14  ;;  %v3812_v4 = vmax.f32 %v3780_v45, %v3433_v12  ;;  %v3554_v40 = vsel %vm1054_vm3, %v3552_v21, %v3553_v47 }
 0x2da   : > { %v3922_v33 = vmax.f32 %v3890_v29, %v3432_v2  ;;  %v4097_v51 = vsel %vm4065_vm1, 1, %v7844_v26  ;;  %v3698_v38 = vsel %vm1263_vm4, %v3696_v61, %v3697_v30  ;;  %v3637_v9 = vmax.f32 %v3432_v2, %v3554_v40 }
 0x2db   : > { %v3853_v57 = vmax.f32 %v3811_v24, %v3554_v40  ;;  %4154 = vperm.xlu0 %4930, %v4097_v51   ;;  %vm4034_vm2 = vcmp.gt.f32.partialorder %v4002_v7, 0.1  ;;  %v3555_v35 = vrot.slane %v3434_v44, 1  ;;  %v3699_v34 = vrot.slane %v3434_v44, 2  ;;  %v3437_v44 = vld [vmem:[#allocation2 + $0x100] sm:$0x3] }
 0x2dc   : > { %v3964_v13 = vmax.f32 %v3922_v33, %v3554_v40  ;;  %vm4066_vm9 = vmand %vm3335_vm12, %vm4034_vm2  ;;  %v3781_v25 = vmax.f32 %v3637_v9, %v3698_v38  ;;  %v3923_v54 = vmax.f32 %v3891_v37, %v3433_v12  ;;  %vm3338_vm10 = vcmp.gt.f32.partialorder %v6578_v52, 0.1  ;;  %v3441_v52 = vld [vmem:[#allocation2 + $0x120] sm:$0xff] }
 0x2dd   : > { %v3892_v14 = vmax.f32 %v3853_v57, %v3698_v38  ;;  %v3557_v29 = vrot.slane %v3435_v18, 1  ;;  %v4098_v5 = vsel %vm4066_vm9, 1, %v7844_v26  ;;  %v3556_v2 = vsel %vm1054_vm3, %v3553_v47, %v3555_v35 }
 0x2de   : > { %v4003_v21 = vmax.f32 %v3964_v13, %v3698_v38  ;;  %v3700_v24 = vsel %vm1263_vm4, %v3697_v30, %v3699_v34  ;;  %4157 = vperm.xlu1 %4931, %v4098_v5   ;;  %v3813_v45 = vmax.f32 %v3781_v25, %v3435_v18  ;;  %v3965_v39 = vmax.f32 %v3923_v54, %v3556_v2 }
 0x2df   : > { %v3638_v61 = vmax.f32 %v3433_v12, %v3556_v2  ;;  %v3854_v20 = vmax.f32 %v3812_v4, %v3556_v2  ;;  %v3558_v7 = vrot.slane %v3436_v50, 1  ;;  %v3701_v40 = vrot.slane %v3435_v18, 2 }
 0x2e0   : > { %vm4035_vm6 = vcmp.gt.f32.partialorder %v4003_v21, 0.1  ;;  %v3702_v37 = vrot.slane %v3436_v50, 2  ;;  %vm3339_vm11 = vcmp.gt.f32.partialorder %v6580_v22, 0.1  ;;  %v4004_v33 = vmax.f32 %v3965_v39, %v3700_v24 }
 0x2e1   : > { %vm4067_vm7 = vmand %vm3336_vm14, %vm4035_vm6  ;;  %v3782_v51 = vmax.f32 %v3638_v61, %v3700_v24  ;;  %v3893_v47 = vmax.f32 %v3854_v20, %v3700_v24  ;;  %v3924_v38 = vmax.f32 %v3892_v14, %v3435_v18  ;;  %v3559_v9 = vsel %vm1054_vm3, %v3557_v29, %v3558_v7  ;;  %v3439_v24 = vld [vmem:[#allocation2 + $0x110] sm:$0xff] }
 0x2e2   : > { %v4099_v30 = vsel %vm4067_vm7, 1, %v7844_v26  ;;  %v3703_v12 = vsel %vm1263_vm4, %v3701_v40, %v3702_v37  ;;  %v3560_v4 = vrot.slane %v3437_v44, 1  ;;  %vm4036_vm12 = vcmp.gt.f32.partialorder %v4004_v33, 0.1 }
 0x2e3   : > { %4160 = vperm.xlu0 %4930, %v4099_v30   ;;  %v3814_v57 = vmax.f32 %v3782_v51, %v3436_v50  ;;  %v3639_v13 = vmax.f32 %v3435_v18, %v3559_v9  ;;  %v3966_v35 = vmax.f32 %v3924_v38, %v3559_v9  ;;  %vm4068_vm13 = vmand %vm3337_vm0, %vm4036_vm12  ;;  %v3855_v34 = vmax.f32 %v3813_v45, %v3559_v9 }
 0x2e4   : > { %v3561_v25 = vsel %vm1054_vm3, %v3558_v7, %v3560_v4  ;;  %v3704_v14 = vrot.slane %v3437_v44, 2  ;;  %v3925_v54 = vmax.f32 %v3893_v47, %v3436_v50  ;;  %v4100_v5 = vsel %vm4068_vm13, 1, %v7844_v26  ;;  %v3440_v44 = vld [vmem:[#allocation2 + $0x118] sm:$0x3]  ;;  %v7883_v47 = vld [vmem:[#allocation23_spill] sm:$0xff] }
 0x2e5   : > { %v3783_v29 = vmax.f32 %v3639_v13, %v3703_v12  ;;  %v4005_v21 = vmax.f32 %v3966_v35, %v3703_v12  ;;  %v3640_v2 = vmax.f32 %v3436_v50, %v3561_v25  ;;  %vm3340_vm8 = vcmp.gt.f32.partialorder %v6601_v60, 0.1  ;;  %4163 = vperm.xlu1 %4931, %v4100_v5  }
 0x2e6   : > { %v3894_v18 = vmax.f32 %v3855_v34, %v3703_v12  ;;  %v3705_v39 = vsel %vm1263_vm4, %v3702_v37, %v3704_v14  ;;  %v3967_v58 = vmax.f32 %v3925_v54, %v3561_v25  ;;  %v3856_v61 = vmax.f32 %v3814_v57, %v3561_v25  ;;  %v7200_v54 = vld [vmem:[#allocation2 + $0x128] sm:$0xff] }
 0x2e7   : > { %vm4037_vm14 = vcmp.gt.f32.partialorder %v4005_v21, 0.1  ;;  %v3815_v45 = vmax.f32 %v3783_v29, %v3438_v17  ;;  %v3784_v20 = vmax.f32 %v3640_v2, %v3705_v39  ;;  %v3562_v7 = vrot.slane %v3438_v17, 1 }
 0x2e8   : > { %vm4069_vm15 = vmand %vm3338_vm10, %vm4037_vm14  ;;  %v4006_v40 = vmax.f32 %v3967_v58, %v3705_v39  ;;  %v3895_v33 = vmax.f32 %v3856_v61, %v3705_v39  ;;  %v3563_v50 = vrot.slane %v3439_v24, 1  ;;  %v3706_v51 = vrot.slane %v3438_v17, 2 }
 0x2e9   : > { %vm3341_vm0 = vcmp.gt.f32.partialorder %v7883_v47, 0.1  ;;  %v4101_v38 = vsel %vm4069_vm15, 1, %v7844_v26  ;;  %v3816_v30 = vmax.f32 %v3784_v20, %v3439_v24  ;;  %v3707_v37 = vrot.slane %v3439_v24, 2 }
 0x2ea   : > { %v3926_v9 = vmax.f32 %v3894_v18, %v3438_v17  ;;  %4166 = vperm.xlu0 %4930, %v4101_v38   ;;  %vm4038_vm1 = vcmp.gt.f32.partialorder %v4006_v40, 0.1  ;;  %v3564_v12 = vsel %vm1054_vm3, %v3562_v7, %v3563_v50  ;;  %v3565_v4 = vrot.slane %v3440_v44, 1 }
 0x2eb   : > { %v3709_v57 = vrot.slane %v3440_v44, 2  ;;  %vm4070_vm2 = vmand %vm3339_vm11, %vm4038_vm1  ;;  %v3708_v13 = vsel %vm1263_vm4, %v3706_v51, %v3707_v37  ;;  %v3641_v34 = vmax.f32 %v3438_v17, %v3564_v12  ;;  %v3857_v25 = vmax.f32 %v3815_v45, %v3564_v12 }
 0x2ec   : > { %v3968_v35 = vmax.f32 %v3926_v9, %v3564_v12  ;;  %v4102_v14 = vsel %vm4070_vm2, 1, %v7844_v26  ;;  %v3566_v5 = vsel %vm1054_vm3, %v3563_v50, %v3565_v4  ;;  %v3927_v21 = vmax.f32 %v3895_v33, %v3439_v24 }
 0x2ed   : > { %v3710_v29 = vsel %vm1263_vm4, %v3707_v37, %v3709_v57  ;;  %4169 = vperm.xlu1 %4931, %v4102_v14   ;;  %v3785_v18 = vmax.f32 %v3641_v34, %v3708_v13  ;;  %v3896_v22 = vmax.f32 %v3857_v25, %v3708_v13  ;;  %v3642_v39 = vmax.f32 %v3439_v24, %v3566_v5  ;;  %v3443_v37 = vld [vmem:[#allocation2 + $0x130] sm:$0x3]  ;;  %v7888_v14 = vld [vmem:[#allocation22_spill] sm:$0xff] }
 0x2ee   : > { %v4007_v2 = vmax.f32 %v3968_v35, %v3708_v13  ;;  %v3969_v58 = vmax.f32 %v3927_v21, %v3566_v5  ;;  %v3858_v61 = vmax.f32 %v3816_v30, %v3566_v5  ;;  %vm3342_vm9 = vcmp.gt.f32.partialorder %v6997_v36, 0.1  ;;  %v7885_v35 = vld [vmem:[#allocation38_spill] sm:$0xff] }
 0x2ef   : > { %v3567_v17 = vrot.slane %v3441_v52, 1  ;;  %v3817_v45 = vmax.f32 %v3785_v18, %v3441_v52  ;;  %v3786_v20 = vmax.f32 %v3642_v39, %v3710_v29  ;;  %v3568_v7 = vrot.slane %v7200_v54, 1  ;;  %v3444_v39 = vld [vmem:[#allocation2 + $0x138] sm:$0xff] }
 0x2f0   : > { %vm4039_vm10 = vcmp.gt.f32.partialorder %v4007_v2, 0.1  ;;  %v4008_v44 = vmax.f32 %v3969_v58, %v3710_v29  ;;  %v3897_v40 = vmax.f32 %v3858_v61, %v3710_v29  ;;  %v3711_v33 = vrot.slane %v3441_v52, 2 }
 0x2f1   : > { %vm4071_vm6 = vmand %vm3340_vm8, %vm4039_vm10  ;;  %v3712_v50 = vrot.slane %v7200_v54, 2  ;;  %v3818_v51 = vmax.f32 %v3786_v20, %v7200_v54  ;;  %v3569_v38 = vsel %vm1054_vm3, %v3567_v17, %v3568_v7  ;;  %v3928_v30 = vmax.f32 %v3896_v22, %v3441_v52 }
 0x2f2   : > { %v4103_v24 = vsel %vm4071_vm6, 1, %v7844_v26  ;;  %vm4040_vm11 = vcmp.gt.f32.partialorder %v4008_v44, 0.1  ;;  %v3643_v9 = vmax.f32 %v3441_v52, %v3569_v38  ;;  %v3859_v60 = vmax.f32 %v3817_v45, %v3569_v38  ;;  %v7887_v52 = vld [vmem:[#allocation39_spill] sm:$0xff] }
 0x2f3   : > { %4172 = vperm.xlu0 %4930, %v4103_v24   ;;  %v3713_v12 = vsel %vm1263_vm4, %v3711_v33, %v3712_v50  ;;  %vm4072_vm7 = vmand %vm3341_vm0, %vm4040_vm11  ;;  %v3970_v4 = vmax.f32 %v3928_v30, %v3569_v38  ;;  %v7884_v57 = vmax.f32 %v6615_v1, %v7843_v16  ;;  %v7886_v34 = vmax.f32 %v7885_v35, %v6615_v1 }
 0x2f4   : > { %v7889_v5 = vmax.f32 %v7887_v52, %v7888_v14  ;;  %v4104_v47 = vsel %vm4072_vm7, 1, %v7844_v26  ;;  %v3787_v21 = vmax.f32 %v3643_v9, %v3713_v12  ;;  %v3898_v2 = vmax.f32 %v3859_v60, %v3713_v12 }
 0x2f5   : > { %v7219_v13 = vmax.f32 %v7884_v57, %v6930_v11  ;;  %v7225_v25 = vmax.f32 %v7886_v34, %v7843_v16  ;;  %v3570_v18 = vrot.slane %v3443_v37, 1  ;;  %4175 = vperm.xlu1 %4931, %v4104_v47   ;;  %v4009_v22 = vmax.f32 %v3970_v4, %v3713_v12  ;;  %v7244_v12 = vld [vmem:[#allocation2 + $0x140] sm:$0xff] }
 0x2f6   : > { %v3232_v29 = vmax.f32 %v7889_v5, %v6615_v1  ;;  %v3819_v45 = vmax.f32 %v3787_v21, %v3444_v39  ;;  %v3714_v1 = vrot.slane %v3443_v37, 2  ;;  %v3929_v44 = vmax.f32 %v3897_v40, %v7200_v54 }
 0x2f7   : > { %v3133_v58 = vmax.f32 %v7219_v13, %v7062_v43  ;;  %v3202_v61 = vmax.f32 %v7225_v25, %v6930_v11  ;;  %v3571_v20 = vsel %vm1054_vm3, %v3568_v7, %v3570_v18  ;;  %vm4041_vm12 = vcmp.gt.f32.partialorder %v4009_v22, 0.1  ;;  %v3446_v22 = vld [vmem:[#allocation2 + $0x148] sm:$0x3] }
 0x2f8   : > { %v3272_v17 = vmax.f32 %v3232_v29, %v7843_v16  ;;  %v3644_v24 = vmax.f32 %v7200_v54, %v3571_v20  ;;  %v3860_v38 = vmax.f32 %v3818_v51, %v3571_v20  ;;  %vm4073_vm13 = vmand %vm3342_vm9, %vm4041_vm12  ;;  %v3715_v30 = vsel %vm1263_vm4, %v3712_v50, %v3714_v1  ;;  %v7890_v16 = vld [vmem:[#allocation25_spill] sm:$0xff] }
 0x2f9   : > { %v3971_v9 = vmax.f32 %v3929_v44, %v3571_v20  ;;  %v2958_v7 = vmax.f32 %v6968_v32, %v7890_v16  ;;  %v3029_v37 = vrot.slane %v6968_v32, 2  ;;  %v4105_v40 = vsel %vm4073_vm13, 1, %v7844_v26  ;;  %v7893_v44 = vld [vmem:[#allocation26_spill] sm:$0xff] }
 0x2fa   : > { %v3311_v33 = vmax.f32 %v3272_v17, %v6930_v11  ;;  %v3788_v11 = vmax.f32 %v3644_v24, %v3715_v30  ;;  %v3899_v60 = vmax.f32 %v3860_v38, %v3715_v30  ;;  %4178 = vperm.xlu0 %4930, %v4105_v40   ;;  %v3030_v36 = vrot.slane %v7062_v43, 2 }
 0x2fb   : > { %v4010_v54 = vmax.f32 %v3971_v9, %v3715_v30  ;;  %v7891_v50 = vmax.f32 %v6896_v49, %v6968_v32  ;;  %v7892_v4 = vmax.f32 %v6667_v0, %v6766_v55  ;;  %v3572_v35 = vrot.slane %v3444_v39, 1  ;;  %v3447_v30 = vld [vmem:[#allocation2 + $0x150] sm:$0xff] }
 0x2fc   : > { %vm3343_vm8 = vcmp.gt.f32.partialorder %v3311_v33, 0.1  ;;  %v3820_v13 = vmax.f32 %v3788_v11, %v7244_v12  ;;  %v3573_v34 = vrot.slane %v7244_v12, 1  ;;  %v3716_v25 = vrot.slane %v3444_v39, 2 }
 0x2fd   : > { %v3164_v51 = vmax.f32 %v7891_v50, %v7890_v16  ;;  %v3233_v57 = vmax.f32 %v7892_v4, %v6968_v32  ;;  %vm4042_vm14 = vcmp.gt.f32.partialorder %v4010_v54, 0.1  ;;  %v3031_v52 = vsel %vm1263_vm4, %v3029_v37, %v3030_v36 }
 0x2fe   : > { %v3717_v5 = vrot.slane %v7244_v12, 2  ;;  %vm4074_vm15 = vmand %vm3343_vm8, %vm4042_vm14  ;;  %v3102_v49 = vmax.f32 %v2958_v7, %v3031_v52  ;;  %v3574_v0 = vsel %vm1054_vm3, %v3572_v35, %v3573_v34  ;;  %v3930_v55 = vmax.f32 %v3898_v2, %v3444_v39  ;;  %v7293_v35 = vld [vmem:[#allocation2 + $0x158] sm:$0xff] }
 0x2ff   : > { %v3273_v14 = vmax.f32 %v3233_v57, %v7890_v16  ;;  %v3203_v29 = vmax.f32 %v3164_v51, %v3031_v52  ;;  %v4106_v32 = vsel %vm4074_vm15, 1, %v7844_v26  ;;  %v3645_v18 = vmax.f32 %v3444_v39, %v3574_v0 }
 0x300   : > { %v7268_v21 = vsel %vm1263_vm4, %v3716_v25, %v3717_v5  ;;  %4181 = vperm.xlu1 %4931, %v4106_v32   ;;  %v3134_v17 = vmax.f32 %v3102_v49, %v7008_v28  ;;  %v3972_v20 = vmax.f32 %v3930_v55, %v3574_v0  ;;  %v3861_v1 = vmax.f32 %v3819_v45, %v3574_v0 }
 0x301   : > { %v3312_v47 = vmax.f32 %v3273_v14, %v3031_v52  ;;  %v2959_v33 = vmax.f32 %v7062_v43, %v7893_v44  ;;  %v3789_v24 = vmax.f32 %v3645_v18, %v7268_v21  ;;  %v3032_v2 = vrot.slane %v7052_v53, 2 }
 0x302   : > { %v7276_v38 = vmax.f32 %v3133_v58, %v7893_v44  ;;  %v4011_v39 = vmax.f32 %v3972_v20, %v7268_v21  ;;  %v3900_v9 = vmax.f32 %v3861_v1, %v7268_v21  ;;  %v3234_v16 = vmax.f32 %v3202_v61, %v7062_v43  ;;  %v7894_v43 = vld [vmem:[#allocation27_spill] sm:$0xff] }
 0x303   : > { %vm3344_vm0 = vcmp.gt.f32.partialorder %v3312_v47, 0.1  ;;  %v3575_v7 = vrot.slane %v3446_v22, 1  ;;  %v3821_v45 = vmax.f32 %v3789_v24, %v3447_v30  ;;  %v3033_v37 = vsel %vm1263_vm4, %v3030_v36, %v3032_v2  ;;  %v3449_v2 = vld [vmem:[#allocation2 + $0x160] sm:$0x3] }
 0x304   : > { %v3719_v40 = vrot.slane %v3446_v22, 2  ;;  %v3931_v11 = vmax.f32 %v3899_v60, %v7244_v12  ;;  %vm4043_vm1 = vcmp.gt.f32.partialorder %v4011_v39, 0.1  ;;  %v3103_v54 = vmax.f32 %v2959_v33, %v3033_v37 }
 0x305   : > { %v3204_v53 = vmax.f32 %v7276_v38, %v3033_v37  ;;  %v3274_v58 = vmax.f32 %v3234_v16, %v7893_v44  ;;  %vm4075_vm2 = vmand %vm3344_vm0, %vm4043_vm1  ;;  %v3576_v50 = vsel %vm1054_vm3, %v3573_v34, %v3575_v7  ;;  %v2960_v61 = vmax.f32 %v7008_v28, %v7894_v43  ;;  %v7895_v7 = vld [vmem:[#allocation28_spill] sm:$0xff] }
 0x306   : > { %v3720_v51 = vsel %vm1263_vm4, %v3717_v5, %v3719_v40  ;;  %v3034_v36 = vrot.slane %v7008_v28, 2  ;;  %v4107_v4 = vsel %vm4075_vm2, 1, %v7844_v26  ;;  %v3135_v60 = vmax.f32 %v3103_v54, %v7041_v15 }
 0x307   : > { %v3313_v57 = vmax.f32 %v3274_v58, %v3033_v37  ;;  %v3973_v25 = vmax.f32 %v3931_v11, %v3576_v50  ;;  %4184 = vperm.xlu0 %4930, %v4107_v4   ;;  %v3646_v52 = vmax.f32 %v7244_v12, %v3576_v50  ;;  %v3862_v14 = vmax.f32 %v3820_v13, %v3576_v50  ;;  %v7315_v50 = vld [vmem:[#allocation2 + $0x168] sm:$0xff] }
 0x308   : > { %v3035_v34 = vrot.slane %v7041_v15, 2  ;;  %v7298_v5 = vmax.f32 %v3134_v17, %v7894_v43  ;;  %v3235_v0 = vmax.f32 %v3203_v29, %v7008_v28  ;;  %v3577_v55 = vrot.slane %v3447_v30, 1 }
 0x309   : > { %vm3345_vm9 = vcmp.gt.f32.partialorder %v3313_v57, 0.1  ;;  %v4012_v49 = vmax.f32 %v3973_v25, %v3720_v51  ;;  %v3790_v32 = vmax.f32 %v3646_v52, %v3720_v51  ;;  %v3901_v47 = vmax.f32 %v3862_v14, %v3720_v51  ;;  %v7896_v14 = vld [vmem:[#allocation29_spill] sm:$0xff] }
 0x30a   : > { %v3036_v21 = vsel %vm1263_vm4, %v3034_v36, %v3035_v34  ;;  %v3578_v18 = vrot.slane %v7293_v35, 1  ;;  %v3275_v13 = vmax.f32 %v3235_v0, %v7894_v43  ;;  %v3721_v1 = vrot.slane %v3447_v30, 2 }
 0x30b   : > { %vm4044_vm10 = vcmp.gt.f32.partialorder %v4012_v49, 0.1  ;;  %v3104_v22 = vmax.f32 %v2960_v61, %v3036_v21  ;;  %v3205_v12 = vmax.f32 %v7298_v5, %v3036_v21  ;;  %v3822_v17 = vmax.f32 %v3790_v32, %v7293_v35 }
 0x30c   : > { %vm4076_vm6 = vmand %vm3345_vm9, %vm4044_vm10  ;;  %v3579_v20 = vsel %vm1054_vm3, %v3577_v55, %v3578_v18  ;;  %v3722_v28 = vrot.slane %v7293_v35, 2  ;;  %v3314_v33 = vmax.f32 %v3275_v13, %v3036_v21  ;;  %v3932_v39 = vmax.f32 %v3900_v9, %v3447_v30  ;;  %v3451_v55 = vld [vmem:[#allocation2 + $0x170] sm:$0xff] }
 0x30d   : > { %v4108_v29 = vsel %vm4076_vm6, 1, %v7844_v26  ;;  %v3136_v44 = vmax.f32 %v3104_v22, %v7103_v31  ;;  %v3647_v24 = vmax.f32 %v3447_v30, %v3579_v20  ;;  %v3863_v16 = vmax.f32 %v3821_v45, %v3579_v20 }
 0x30e   : > { %4187 = vperm.xlu1 %4931, %v4108_v29   ;;  %v3723_v38 = vsel %vm1263_vm4, %v3721_v1, %v3722_v28  ;;  %v2961_v37 = vmax.f32 %v7041_v15, %v7895_v7  ;;  %vm3346_vm11 = vcmp.gt.f32.partialorder %v3314_v33, 0.1  ;;  %v3037_v11 = vrot.slane %v7033_v10, 2 }
 0x30f   : > { %v3791_v40 = vmax.f32 %v3647_v24, %v3723_v38  ;;  %v3167_v54 = vmax.f32 %v3135_v60, %v7895_v7  ;;  %v3974_v58 = vmax.f32 %v3932_v39, %v3579_v20  ;;  %v3902_v51 = vmax.f32 %v3863_v16, %v3723_v38  ;;  %v7897_v39 = vld [vmem:[#allocation30_spill] sm:$0xff] }
 0x310   : > { %v3236_v43 = vmax.f32 %v3204_v53, %v7041_v15  ;;  %v3580_v61 = vrot.slane %v3449_v2, 1  ;;  %v3038_v30 = vsel %vm1263_vm4, %v3035_v34, %v3037_v11  ;;  %v3724_v9 = vrot.slane %v3449_v2, 2 }
 0x311   : > { %v3823_v36 = vmax.f32 %v3791_v40, %v7315_v50  ;;  %v3933_v45 = vmax.f32 %v3901_v47, %v7293_v35  ;;  %v4013_v4 = vmax.f32 %v3974_v58, %v3723_v38  ;;  %v3105_v57 = vmax.f32 %v2961_v37, %v3038_v30  ;;  %v3452_v37 = vld [vmem:[#allocation2 + $0x178] sm:$0x3] }
 0x312   : > { %v3206_v25 = vmax.f32 %v3167_v54, %v3038_v30  ;;  %v3276_v10 = vmax.f32 %v3236_v43, %v7895_v7  ;;  %v3581_v60 = vsel %vm1054_vm3, %v3578_v18, %v3580_v61  ;;  %v3725_v52 = vsel %vm1263_vm4, %v3722_v28, %v3724_v9 }
 0x313   : > { %v2962_v15 = vmax.f32 %v7103_v31, %v7896_v14  ;;  %v3039_v53 = vrot.slane %v7103_v31, 2  ;;  %vm4045_vm7 = vcmp.gt.f32.partialorder %v4013_v4, 0.1  ;;  %v3137_v34 = vmax.f32 %v3105_v57, %v7136_v63 }
 0x314   : > { %v3315_v5 = vmax.f32 %v3276_v10, %v3038_v30  ;;  %v3648_v49 = vmax.f32 %v7293_v35, %v3581_v60  ;;  %vm4077_vm12 = vmand %vm3346_vm11, %vm4045_vm7  ;;  %v3975_v0 = vmax.f32 %v3933_v45, %v3581_v60  ;;  %v3864_v32 = vmax.f32 %v3822_v17, %v3581_v60 }
 0x315   : > { %v3040_v47 = vrot.slane %v7136_v63, 2  ;;  %v7332_v21 = vmax.f32 %v3136_v44, %v7896_v14  ;;  %v4109_v18 = vsel %vm4077_vm12, 1, %v7844_v26  ;;  %v3237_v13 = vmax.f32 %v3205_v12, %v7103_v31 }
 0x316   : > { %vm3347_vm13 = vcmp.gt.f32.partialorder %v3315_v5, 0.1  ;;  %v3792_v22 = vmax.f32 %v3648_v49, %v3725_v52  ;;  %4190 = vperm.xlu0 %4930, %v4109_v18   ;;  %v4014_v20 = vmax.f32 %v3975_v0, %v3725_v52  ;;  %v3903_v1 = vmax.f32 %v3864_v32, %v3725_v52  ;;  %v3453_v0 = vld [vmem:[#allocation2 + $0x180] sm:$0xff]  ;;  %v3454_v32 = vld [vmem:[#allocation2 + $0x188] sm:$0xff] }
 0x317   : > { %v3041_v35 = vsel %vm1263_vm4, %v3039_v53, %v3040_v47  ;;  %v3582_v28 = vrot.slane %v7315_v50, 1  ;;  %v3277_v44 = vmax.f32 %v3237_v13, %v7896_v14  ;;  %v3583_v24 = vrot.slane %v3451_v55, 1 }
 0x318   : > { %v3824_v29 = vmax.f32 %v3792_v22, %v3451_v55  ;;  %v3106_v17 = vmax.f32 %v2962_v15, %v3041_v35  ;;  %v3207_v33 = vmax.f32 %v7332_v21, %v3041_v35  ;;  %vm4046_vm8 = vcmp.gt.f32.partialorder %v4014_v20, 0.1 }
 0x319   : > { %v3726_v2 = vrot.slane %v7315_v50, 2  ;;  %v3727_v38 = vrot.slane %v3451_v55, 2  ;;  %vm4078_vm14 = vmand %vm3347_vm13, %vm4046_vm8  ;;  %v3316_v31 = vmax.f32 %v3277_v44, %v3041_v35  ;;  %v3934_v12 = vmax.f32 %v3902_v51, %v7315_v50 }
 0x31a   : > { %v2963_v16 = vmax.f32 %v7136_v63, %v7897_v39  ;;  %v3042_v7 = vrot.slane %v7141_v23, 2  ;;  %v4110_v40 = vsel %vm4078_vm14, 1, %v7844_v26  ;;  %v3584_v11 = vsel %vm1054_vm3, %v3582_v28, %v3583_v24 }
 0x31b   : > { %v3728_v54 = vsel %vm1263_vm4, %v3726_v2, %v3727_v38  ;;  %v3169_v58 = vmax.f32 %v3137_v34, %v7897_v39  ;;  %4193 = vperm.xlu1 %4931, %v4110_v40   ;;  %vm3348_vm15 = vcmp.gt.f32.partialorder %v3316_v31, 0.1  ;;  %v3976_v43 = vmax.f32 %v3934_v12, %v3584_v11 }
 0x31c   : > { %v3649_v61 = vmax.f32 %v7315_v50, %v3584_v11  ;;  %v3865_v51 = vmax.f32 %v3823_v36, %v3584_v11  ;;  %v3043_v30 = vsel %vm1263_vm4, %v3040_v47, %v3042_v7  ;;  %v3238_v9 = vmax.f32 %v3206_v25, %v7136_v63 }
 0x31d   : > { %v3585_v23 = vrot.slane %v3452_v37, 1  ;;  %v3729_v45 = vrot.slane %v3452_v37, 2  ;;  %v4015_v4 = vmax.f32 %v3976_v43, %v3728_v54  ;;  %v3107_v60 = vmax.f32 %v2963_v16, %v3043_v30  ;;  %v3455_v16 = vld [vmem:[#allocation2 + $0x190] sm:$0x3] }
 0x31e   : > { %v3793_v57 = vmax.f32 %v3649_v61, %v3728_v54  ;;  %v3904_v10 = vmax.f32 %v3865_v51, %v3728_v54  ;;  %v3208_v52 = vmax.f32 %v3169_v58, %v3043_v30  ;;  %v3278_v14 = vmax.f32 %v3238_v9, %v7897_v39  ;;  %v7899_v54 = vld [vmem:[#allocation32_spill] sm:$0xff]  ;;  %v7374_v9 = vpop.permute.xlu0 %4118 }
 0x31f   : > { %v3586_v15 = vsel %vm1054_vm3, %v3583_v24, %v3585_v23  ;;  %v3730_v53 = vsel %vm1263_vm4, %v3727_v38, %v3729_v45  ;;  %vm4047_vm0 = vcmp.gt.f32.partialorder %v4015_v4, 0.1  ;;  %v3935_v50 = vmax.f32 %v3903_v1, %v3451_v55 }
 0x320   : > { %v3650_v36 = vmax.f32 %v3451_v55, %v3586_v15  ;;  %v3866_v34 = vmax.f32 %v3824_v29, %v3586_v15  ;;  %vm4079_vm1 = vmand %vm3348_vm15, %vm4047_vm0  ;;  %v3317_v63 = vmax.f32 %v3278_v14, %v3043_v30  ;;  %v3138_v25 = vmax.f32 %v3106_v17, %v7091_v19  ;;  %v7898_v55 = vld [vmem:[#allocation31_spill] sm:$0xff]  ;;  %v3456_v14 = vld [vmem:[#allocation2 + $0x198] sm:$0xff] }
 0x321   : > { %v3172_v5 = vrot.slane %v7091_v19, 2  ;;  %v3173_v49 = vrot.slane %v7131_v56, 2  ;;  %v4111_v47 = vsel %vm4079_vm1, 1, %v7844_v26  ;;  %v3977_v21 = vmax.f32 %v3935_v50, %v3586_v15 }
 0x322   : > { %v3794_v18 = vmax.f32 %v3650_v36, %v3730_v53  ;;  %v3905_v22 = vmax.f32 %v3866_v34, %v3730_v53  ;;  %4196 = vperm.xlu0 %4930, %v4111_v47   ;;  %vm3349_vm2 = vcmp.gt.f32.partialorder %v3317_v63, 0.1  ;;  %v3170_v13 = vmax.f32 %v3138_v25, %v7898_v55 }
 0x323   : > { %v3174_v20 = vsel %vm1263_vm4, %v3172_v5, %v3173_v49  ;;  %v3239_v1 = vmax.f32 %v3207_v33, %v7091_v19  ;;  %v4016_v35 = vmax.f32 %v3977_v21, %v3730_v53  ;;  %v3830_v28 = vrot.slane %v3453_v0, 1  ;;  %v5040_v53 = vld [vmem:[#allocation2 + $0x198] sm:$0xff]  ;;  %v5041_v5 = vld [vmem:[#allocation2 + $0x1a0] sm:$0xff] }
 0x324   : > { %v3831_v29 = vrot.slane %v3454_v32, 1  ;;  %v3869_v17 = vrot.slane %v3453_v0, 2  ;;  %v3209_v44 = vmax.f32 %v3170_v13, %v3174_v20  ;;  %v3870_v2 = vrot.slane %v3454_v32, 2 }
 0x325   : > { %v3279_v24 = vmax.f32 %v3239_v1, %v7898_v55  ;;  %v3936_v38 = vmax.f32 %v3904_v10, %v3453_v0  ;;  %vm4048_vm9 = vcmp.gt.f32.partialorder %v4016_v35, 0.1  ;;  %v3825_v12 = vmax.f32 %v3793_v57, %v3453_v0  ;;  %v3457_v0 = vld [vmem:[#allocation2 + $0x1a0] sm:$0xff] }
 0x326   : > { %v3832_v31 = vsel %vm1054_vm3, %v3830_v28, %v3831_v29  ;;  %v3139_v39 = vmax.f32 %v3107_v60, %v7131_v56  ;;  %vm4080_vm10 = vmand %vm3349_vm2, %vm4048_vm9  ;;  %v3871_v19 = vsel %vm1263_vm4, %v3869_v17, %v3870_v2  ;;  %v3175_v37 = vrot.slane %v7123_v6, 2 }
 0x327   : > { %v3318_v7 = vmax.f32 %v3279_v24, %v3174_v20  ;;  %v3978_v33 = vmax.f32 %v3936_v38, %v3832_v31  ;;  %v4112_v40 = vsel %vm4080_vm10, 1, %v7844_v26  ;;  %v3867_v11 = vmax.f32 %v3825_v12, %v3832_v31  ;;  %v4122_v20 = vpop.permute.xlu0 %4121  ;;  %v5042_v24 = vld [vmem:[#allocation2 + $0x1a8] sm:$0x3] }
 0x328   : > { %v3171_v58 = vmax.f32 %v3139_v39, %v7899_v54  ;;  %v3240_v43 = vmax.f32 %v3208_v52, %v7131_v56  ;;  %4199 = vperm.xlu1 %4931, %v4112_v40   ;;  %v3176_v51 = vsel %vm1263_vm4, %v3173_v49, %v3175_v37  ;;  %v3833_v30 = vrot.slane %v3455_v16, 1  ;;  %v7378_v56 = vpop.permute.xlu1 %4124  ;;  %v3458_v38 = vld [vmem:[#allocation2 + $0x1a8] sm:$0x3] }
 0x329   : > { %vm3350_vm6 = vcmp.gt.f32.partialorder %v3318_v7, 0.1  ;;  %v4017_v61 = vmax.f32 %v3978_v33, %v3871_v19  ;;  %v3906_v23 = vmax.f32 %v3867_v11, %v3871_v19  ;;  %v3872_v6 = vrot.slane %v3455_v16, 2 }
 0x32a   : > { %v3210_v45 = vmax.f32 %v3171_v58, %v3176_v51  ;;  %v3280_v4 = vmax.f32 %v3240_v43, %v7899_v54  ;;  %v3834_v57 = vsel %vm1054_vm3, %v3831_v29, %v3833_v30  ;;  %v3937_v10 = vmax.f32 %v3905_v22, %v3454_v32 }
 0x32b   : > { %vm4049_vm11 = vcmp.gt.f32.partialorder %v4017_v61, 0.1  ;;  %v3826_v60 = vmax.f32 %v3794_v18, %v3454_v32  ;;  %v3873_v15 = vsel %vm1263_vm4, %v3870_v2, %v3872_v6  ;;  %v3241_v50 = vmax.f32 %v3209_v44, %v5040_v53  ;;  %v7901_v6 = vld [vmem:[#allocation36_spill] sm:$0xff] }
 0x32c   : > { %vm4081_vm7 = vmand %vm3350_vm6, %vm4049_vm11  ;;  %v3319_v52 = vmax.f32 %v3280_v4, %v3176_v51  ;;  %v3244_v36 = vrot.slane %v5040_v53, 1  ;;  %v3979_v63 = vmax.f32 %v3937_v10, %v3834_v57  ;;  %v3245_v49 = vrot.slane %v5041_v5, 1  ;;  %v4128_v31 = vpop.permute.xlu1 %4127  ;;  %v7900_v51 = vld [vmem:[#allocation37_spill] sm:$0xff] }
 0x32d   : > { %v4113_v34 = vsel %vm4081_vm7, 1, %v7844_v26  ;;  %v3868_v25 = vmax.f32 %v3826_v60, %v3834_v57  ;;  %v3283_v32 = vrot.slane %v5040_v53, 2  ;;  %v3284_v47 = vrot.slane %v5041_v5, 2 }
 0x32e   : > { %4202 = vperm.xlu0 %4930, %v4113_v34   ;;  %vm3351_vm12 = vcmp.gt.f32.partialorder %v3319_v52, 0.1  ;;  %v3938_v21 = vmax.f32 %v3906_v23, %v3456_v14  ;;  %v4018_v18 = vmax.f32 %v3979_v63, %v3873_v15  ;;  %v3246_v55 = vsel %vm1054_vm3, %v3244_v36, %v3245_v49  ;;  %v4131_v23 = vpop.permute.xlu0 %4130  ;;  %v7906_v63 = vld [vmem:[#allocation18_spill] sm:$0xff] }
 0x32f   : > { %v3907_v22 = vmax.f32 %v3868_v25, %v3873_v15  ;;  %v3943_v13 = vrot.slane %v3456_v14, 1  ;;  %v3281_v1 = vmax.f32 %v3241_v50, %v3246_v55  ;;  %v3285_v35 = vsel %vm1263_vm4, %v3283_v32, %v3284_v47  ;;  %v7904_v50 = vld [vmem:[#allocation21_spill] sm:$0xff]  ;;  %v7909_v55 = vld [vmem:[#allocation20_spill] sm:$0xff] }
 0x330   : > { %v3944_v28 = vrot.slane %v3457_v0, 1  ;;  %v3982_v29 = vrot.slane %v3456_v14, 2  ;;  %vm4050_vm13 = vcmp.gt.f32.partialorder %v4018_v18, 0.1  ;;  %v3983_v17 = vrot.slane %v3457_v0, 2  ;;  %v7902_v14 = vld [vmem:[#allocation19_spill] sm:$0xff]  ;;  %v4134_v53 = vpop.permute.xlu1 %4133 }
 0x331   : > { %v3242_v44 = vmax.f32 %v3210_v45, %v5041_v5  ;;  %v3247_v2 = vrot.slane %v5042_v24, 1  ;;  %vm4082_vm8 = vmand %vm3351_vm12, %vm4050_vm13  ;;  %v3320_v12 = vmax.f32 %v3281_v1, %v3285_v35  ;;  %v3286_v16 = vrot.slane %v5042_v24, 2  ;;  %v7908_v18 = vld [vmem:[#allocation4_spill] sm:$0xff] }
 0x332   : > { %v3945_v39 = vsel %vm1054_vm3, %v3943_v13, %v3944_v28  ;;  %v3939_v7 = vmax.f32 %v3907_v22, %v3457_v0  ;;  %v4114_v19 = vsel %vm4082_vm8, 1, %v7844_v26  ;;  %v3984_v37 = vsel %vm1263_vm4, %v3982_v29, %v3983_v17 }
 0x333   : > { %v3980_v33 = vmax.f32 %v3938_v21, %v3945_v39  ;;  %v3248_v40 = vsel %vm1054_vm3, %v3245_v49, %v3247_v2  ;;  %4205 = vperm.xlu1 %4931, %v4114_v19   ;;  %vm3352_vm14 = vcmp.gt.f32.partialorder %v3320_v12, 0.1  ;;  %v3287_v54 = vsel %vm1263_vm4, %v3284_v47, %v3286_v16  ;;  %v4137_v47 = vpop.permute.xlu0 %4136 }
 0x334   : > { %v3282_v11 = vmax.f32 %v3242_v44, %v3248_v40  ;;  %v3946_v58 = vrot.slane %v3458_v38, 1  ;;  %v3985_v61 = vrot.slane %v3458_v38, 2  ;;  %v4294_v30 = vrot.slane %v7900_v51, 1  ;;  %v7917_v40 = vld [vmem:[#allocation9_spill] sm:$0xff]  ;;  %v7919_v51 = vld [vmem:[#allocation3_spill] sm:$0xff] }
 0x335   : > { %v4019_v43 = vmax.f32 %v3980_v33, %v3984_v37  ;;  %vm4213_vm15 = vcmp.eq.s32.totalorder %v7374_v9, 1  ;;  %vm4214_vm0 = vcmp.eq.s32.totalorder %v4122_v20, 1  ;;  %v4299_v57 = vrot.slane %v7901_v6, 1  ;;  %v7920_v6 = vld [vmem:[#allocation7_spill] sm:$0xff] }
 0x336   : > { %v3321_v45 = vmax.f32 %v3282_v11, %v3287_v54  ;;  %v3947_v4 = vsel %vm1054_vm3, %v3944_v28, %v3946_v58  ;;  %v3986_v60 = vsel %vm1263_vm4, %v3983_v17, %v3985_v61  ;;  %v7903_v52 = vrot.slane %v7902_v14, 1 }
 0x337   : > { %vm4051_vm1 = vcmp.gt.f32.partialorder %v4019_v43, 0.1  ;;  %v3981_v10 = vmax.f32 %v3939_v7, %v3947_v4  ;;  %v7905_v36 = vrot.slane %v7904_v50, 1  ;;  %v7907_v25 = vrot.slane %v7906_v63, 1  ;;  %v7916_v7 = vld [vmem:[#allocation33_spill] sm:$0xff] }
 0x338   : > { %v4295_v15 = vsel %vm1054_vm3, %v7903_v52, %v4294_v30  ;;  %vm4083_vm2 = vmand %vm3352_vm14, %vm4051_vm1  ;;  %vm3353_vm9 = vcmp.gt.f32.partialorder %v3321_v45, 0.1  ;;  %vm4215_vm4 = vcmp.eq.s32.totalorder %v7378_v56, 1  ;;  %v4304_v22 = vrot.slane %v7908_v18, 1  ;;  %v7911_v56 = vld [vmem:[#allocation40_spill] sm:$0xff]  ;;  %v4140_v12 = vpop.permute.xlu1 %4139 }
 0x339   : > { %v4405_v9 = vsel %vm4213_vm15, %v4295_v15, 0.0  ;;  %v4297_v34 = vsel %vm1054_vm3, %v4294_v30, %v7905_v36  ;;  %v4300_v5 = vsel %vm1054_vm3, %v7907_v25, %v4299_v57  ;;  %v4115_v49 = vsel %vm4083_vm2, 1, %v7844_v26  ;;  %v7922_v25 = vld [vmem:[#allocation34_spill] sm:$0xff] }
 0x33a   : > { %v4020_v0 = vmax.f32 %v3981_v10, %v3986_v60  ;;  %4437 = vst.msk [vmem:[#allocation2 + $0x19] sm:$0xff] %vm1754_vm5, %v4405_v9  ;;  %4469 = vst.msk [vmem:[%s5164_s19] sm:$0xff] %vm1754_vm5, %v4405_v9  ;;  %v4406_v32 = vsel %vm4214_vm0, %v4297_v34, 0.0  ;;  %4208 = vperm.xlu0 %4930, %v4115_v49   ;;  %v4407_v21 = vsel %vm4215_vm4, %v4300_v5, 0.0  ;;  %vm4217_vm10 = vcmp.eq.s32.totalorder %v4131_v23, 1 }
 0x33b   : > { %4438 = vst.msk [vmem:[#allocation2 + $0x21] sm:$0xff] %vm1754_vm5, %v4406_v32  ;;  %4470 = vst.msk [vmem:[%s5164_s19 + $0x8] sm:$0xff] %vm1754_vm5, %v4406_v32  ;;  %v7910_v13 = vrot.slane %v7909_v55, 1  ;;  %vm4216_vm11 = vcmp.eq.s32.totalorder %v4128_v31, 1  ;;  %vm4218_vm7 = vcmp.eq.s32.totalorder %v4134_v53, 1  ;;  %v4309_v20 = vrot.slane %v7911_v56, 1 }
 0x33c   : > { %vm4052_vm6 = vcmp.gt.f32.partialorder %v4020_v0, 0.1  ;;  %4439 = vst.msk [vmem:[#allocation2 + $0x31] sm:$0xff] %vm1754_vm5, %v4407_v21  ;;  %4471 = vst.msk [vmem:[%s5164_s19 + $0x10] sm:$0xff] %vm1754_vm5, %v4407_v21  ;;  %v7912_v35 = vrot.slane %v6609_v3, 1  ;;  %v7913_v17 = vrot.slane %v6644_v59, 1 }
 0x33d   : > { %v4302_v1 = vsel %vm1054_vm3, %v4299_v57, %v7910_v13  ;;  %vm4084_vm12 = vmand %vm3353_vm9, %vm4052_vm6  ;;  %vm4219_vm13 = vcmp.eq.s32.totalorder %v4137_v47, 1  ;;  %v7914_v3 = vrot.slane %v6591_v41, 1  ;;  %vm4220_vm8 = vcmp.eq.s32.totalorder %v4140_v12, 1  ;;  %v7921_v53 = vld [vmem:[#allocation10_spill] sm:$0xff]  ;;  %v7928_v12 = vld [vmem:[#allocation13_spill] sm:$0xff] }
 0x33e   : > { %v4305_v28 = vsel %vm1054_vm3, %v7912_v35, %v4304_v22  ;;  %v4408_v29 = vsel %vm4216_vm11, %v4302_v1, 0.0  ;;  %v4307_v44 = vsel %vm1054_vm3, %v4304_v22, %v7913_v17  ;;  %v4116_v24 = vsel %vm4084_vm12, 1, %v7844_v26  ;;  %v7924_v32 = vld [vmem:[#allocation6_spill] sm:$0xff]  ;;  %v7925_v35 = vld [vmem:[#allocation24_spill] sm:$0xff] }
 0x33f   : > { %v4409_v2 = vsel %vm4217_vm10, %v4305_v28, 0.0  ;;  %4440 = vst.msk [vmem:[#allocation2 + $0x39] sm:$0xff] %vm1754_vm5, %v4408_v29  ;;  %4472 = vst.msk [vmem:[%s5164_s19 + $0x18] sm:$0xff] %vm1754_vm5, %v4408_v29  ;;  %v4410_v38 = vsel %vm4218_vm7, %v4307_v44, 0.0  ;;  %v4310_v31 = vsel %vm1054_vm3, %v7914_v3, %v4309_v20  ;;  %4211 = vperm.xlu1 %4931, %v4116_v24   ;;  %v7915_v26 = vrot.slane %v6626_v62, 1  ;;  %v7927_v3 = vld [vmem:[#allocation35_spill] sm:$0xff] }
 0x340   : > { %4441 = vst.msk [vmem:[#allocation2 + $0x49] sm:$0xff] %vm1754_vm5, %v4409_v2  ;;  %4473 = vst.msk [vmem:[%s5164_s19 + $0x20] sm:$0xff] %vm1754_vm5, %v4409_v2  ;;  %v4411_v59 = vsel %vm4219_vm13, %v4310_v31, 0.0  ;;  %v4314_v16 = vrot.slane %v6728_v48, 1  ;;  %v4313_v19 = vrot.slane %v7916_v7, 1  ;;  %v4143_v33 = vpop.permute.xlu0 %4142  ;;  %v4316_v11 = vrot.slane %v7917_v40, 1 }
 0x341   : > { %4442 = vst.msk [vmem:[#allocation2 + $0x51] sm:$0xff] %vm1754_vm5, %v4410_v38  ;;  %4474 = vst.msk [vmem:[%s5164_s19 + $0x28] sm:$0xff] %vm1754_vm5, %v4410_v38  ;;  %v4312_v39 = vsel %vm1054_vm3, %v4309_v20, %v7915_v26  ;;  %vm4221_vm14 = vcmp.eq.s32.totalorder %v4143_v33, 1  ;;  %v7918_v48 = vld [vmem:[#allocation5_spill] sm:$0xff]  ;;  %v4318_v30 = vrot.slane %v7919_v51, 1  ;;  %v4321_v57 = vrot.slane %v7920_v6, 1 }
 0x342   : > { %4443 = vst.msk [vmem:[#allocation2 + $0x61] sm:$0xff] %vm1754_vm5, %v4411_v59  ;;  %4475 = vst.msk [vmem:[%s5164_s19 + $0x30] sm:$0xff] %vm1754_vm5, %v4411_v59  ;;  %v4412_v41 = vsel %vm4220_vm8, %v4312_v39, 0.0  ;;  %v4315_v62 = vsel %vm1054_vm3, %v4313_v19, %v4314_v16  ;;  %v4317_v58 = vsel %vm1054_vm3, %v4314_v16, %v4316_v11  ;;  %v4319_v61 = vrot.slane %v7918_v48, 1  ;;  %v7926_v2 = vld [vmem:[#allocation12_spill] sm:$0xff] }
 0x343   : > { %4444 = vst.msk [vmem:[#allocation2 + $0x69] sm:$0xff] %vm1754_vm5, %v4412_v41  ;;  %4476 = vst.msk [vmem:[%s5164_s19 + $0x38] sm:$0xff] %vm1754_vm5, %v4412_v41  ;;  %v4413_v37 = vsel %vm4221_vm14, %v4315_v62, 0.0  ;;  %v4324_v52 = vrot.slane %v6806_v46, 1  ;;  %v4323_v15 = vrot.slane %v6771_v8, 1  ;;  %v4326_v9 = vrot.slane %v7921_v53, 1 }
 0x344   : > { %4445 = vst.msk [vmem:[#allocation2 + $0x79] sm:$0xff] %vm1754_vm5, %v4413_v37  ;;  %4477 = vst.msk [vmem:[%s5164_s19 + $0x40] sm:$0xff] %vm1754_vm5, %v4413_v37  ;;  %v4320_v45 = vsel %vm1054_vm3, %v4318_v30, %v4319_v61  ;;  %v4322_v60 = vsel %vm1054_vm3, %v4319_v61, %v4321_v57  ;;  %v4329_v5 = vrot.slane %v7922_v25, 1  ;;  %v7923_v8 = vld [vmem:[#allocation8_spill] sm:$0xff]  ;;  %v4331_v47 = vrot.slane %v7924_v32, 1  ;;  %v7930_v37 = vld [vmem:[#allocation14_spill] sm:$0xff] }
 0x345   : > { %v4325_v36 = vsel %vm1054_vm3, %v4323_v15, %v4324_v52  ;;  %v4327_v63 = vsel %vm1054_vm3, %v4324_v52, %v4326_v9  ;;  %v4328_v0 = vrot.slane %v7923_v8, 1  ;;  %v4334_v1 = vrot.slane %v6880_v27, 1  ;;  %v7929_v33 = vld [vmem:[#allocation44_spill] sm:$0xff] }
 0x346   : > { %v4332_v13 = vsel %vm1054_vm3, %v4329_v5, %v4331_v47  ;;  %v4333_v20 = vrot.slane %v6850_v42, 1  ;;  %v4336_v28 = vrot.slane %v7925_v35, 1  ;;  %v4339_v38 = vrot.slane %v7926_v2, 1 }
 0x347   : > { %v4146_v54 = vpop.permute.xlu1 %4145  ;;  %v4330_v18 = vsel %vm1054_vm3, %v4328_v0, %v4329_v5  ;;  %v4338_v31 = vrot.slane %v7927_v3, 1  ;;  %v4341_v59 = vrot.slane %v7928_v12, 1  ;;  %v4344_v62 = vrot.slane %v7929_v33, 1  ;;  %v7937_v5 = vld [vmem:[#allocation15_spill] sm:$0xff] }
 0x348   : > { %vm4222_vm15 = vcmp.eq.s32.totalorder %v4146_v54, 1  ;;  %v4335_v17 = vsel %vm1054_vm3, %v4333_v20, %v4334_v1  ;;  %v4337_v42 = vsel %vm1054_vm3, %v4334_v1, %v4336_v28  ;;  %v4343_v40 = vrot.slane %v7930_v37, 1  ;;  %v7940_v20 = vld [vmem:[#allocation47_spill] sm:$0xff] }
 0x349   : > { %v4414_v43 = vsel %vm4222_vm15, %v4317_v58, 0.0  ;;  %v4340_v39 = vsel %vm1054_vm3, %v4338_v31, %v4339_v38  ;;  %v4342_v7 = vsel %vm1054_vm3, %v4339_v38, %v4341_v59  ;;  %v7931_v58 = vld [vmem:[#allocation43_spill] sm:$0xff]  ;;  %v4361_v35 = vrot.slane %v7940_v20, 1  ;;  %v7943_v31 = vld [vmem:[#allocation53_spill] sm:$0xff] }
 0x34a   : > { %4446 = vst.msk [vmem:[#allocation2 + $0x81] sm:$0xff] %vm1754_vm5, %v4414_v43  ;;  %4478 = vst.msk [vmem:[%s5164_s19 + $0x48] sm:$0xff] %vm1754_vm5, %v4414_v43  ;;  %v4149_v23 = vpop.permute.xlu0 %4148  ;;  %v4345_v54 = vsel %vm1054_vm3, %v4343_v40, %v4344_v62  ;;  %v4346_v43 = vrot.slane %v7931_v58, 1  ;;  %v4366_v12 = vrot.slane %v7943_v31, 1 }
 0x34b   : > { %vm4223_vm0 = vcmp.eq.s32.totalorder %v4149_v23, 1  ;;  %v7932_v23 = vld [vmem:[#allocation42_spill] sm:$0xff] }
 0x34c   : > { %v4415_v4 = vsel %vm4223_vm0, %v4320_v45, 0.0  ;;  %v4347_v51 = vsel %vm1054_vm3, %v4344_v62, %v4346_v43  ;;  %v4349_v45 = vrot.slane %v7932_v23, 1  ;;  %v7946_v62 = vld [vmem:[#allocation17_spill] sm:$0xff] }
 0x34d   : > { %4447 = vst.msk [vmem:[#allocation2 + $0x91] sm:$0xff] %vm1754_vm5, %v4415_v4  ;;  %4479 = vst.msk [vmem:[%s5164_s19 + $0x50] sm:$0xff] %vm1754_vm5, %v4415_v4  ;;  %v7933_v4 = vld [vmem:[#allocation11_spill] sm:$0xff]  ;;  %v4371_v37 = vrot.slane %v7946_v62, 1 }
 0x34e   : > { %v4348_v6 = vrot.slane %v7933_v4, 1 }
 0x351   : > { %v4152_v10 = vpop.permute.xlu1 %4151 }
 0x352   : > { %vm4224_vm1 = vcmp.eq.s32.totalorder %v4152_v10, 1  ;;  %v4350_v10 = vsel %vm1054_vm3, %v4348_v6, %v4349_v45 }
 0x353   : > { %v4416_v14 = vsel %vm4224_vm1, %v4322_v60, 0.0 }
 0x354   : > { %4448 = vst.msk [vmem:[#allocation2 + $0x99] sm:$0xff] %vm1754_vm5, %v4416_v14  ;;  %4480 = vst.msk [vmem:[%s5164_s19 + $0x58] sm:$0xff] %vm1754_vm5, %v4416_v14  ;;  %v7934_v14 = vld [vmem:[#allocation41_spill] sm:$0xff] }
 0x355   : > { %v4351_v52 = vrot.slane %v7934_v14, 1 }
 0x356   : > { %v4155_v50 = vpop.permute.xlu0 %4154 }
 0x357   : > { %vm4225_vm2 = vcmp.eq.s32.totalorder %v4155_v50, 1  ;;  %v4352_v53 = vsel %vm1054_vm3, %v4349_v45, %v4351_v52  ;;  %v7935_v50 = vld [vmem:[#allocation49_spill] sm:$0xff] }
 0x358   : > { %v4417_v34 = vsel %vm4225_vm2, %v4325_v36, 0.0  ;;  %v4354_v36 = vrot.slane %v7935_v50, 1 }
 0x359   : > { %4449 = vst.msk [vmem:[#allocation2 + $0xa9] sm:$0xff] %vm1754_vm5, %v4417_v34  ;;  %4481 = vst.msk [vmem:[%s5164_s19 + $0x60] sm:$0xff] %vm1754_vm5, %v4417_v34  ;;  %v4158_v46 = vpop.permute.xlu1 %4157  ;;  %v7936_v34 = vld [vmem:[#allocation46_spill] sm:$0xff] }
 0x35a   : > { %vm4226_vm9 = vcmp.eq.s32.totalorder %v4158_v46, 1  ;;  %v4353_v46 = vrot.slane %v7936_v34, 1 }
 0x35b   : > { %v4418_v49 = vsel %vm4226_vm9, %v4327_v63, 0.0 }
 0x35c   : > { %4450 = vst.msk [vmem:[#allocation2 + $0xb1] sm:$0xff] %vm1754_vm5, %v4418_v49  ;;  %4482 = vst.msk [vmem:[%s5164_s19 + $0x68] sm:$0xff] %vm1754_vm5, %v4418_v49  ;;  %v4355_v25 = vsel %vm1054_vm3, %v4353_v46, %v4354_v36  ;;  %v4356_v49 = vrot.slane %v7937_v5, 1 }
 0x35e   : > { %v4161_v21 = vpop.permute.xlu0 %4160  ;;  %v4357_v32 = vsel %vm1054_vm3, %v4354_v36, %v4356_v49 }
 0x35f   : > { %vm4227_vm4 = vcmp.eq.s32.totalorder %v4161_v21, 1  ;;  %v7938_v21 = vld [vmem:[#allocation48_spill] sm:$0xff] }
 0x360   : > { %v4419_v22 = vsel %vm4227_vm4, %v4330_v18, 0.0  ;;  %v4164_v55 = vpop.permute.xlu1 %4163  ;;  %v4359_v18 = vrot.slane %v7938_v21, 1 }
 0x361   : > { %4451 = vst.msk [vmem:[#allocation2 + $0xc1] sm:$0xff] %vm1754_vm5, %v4419_v22  ;;  %4483 = vst.msk [vmem:[%s5164_s19 + $0x70] sm:$0xff] %vm1754_vm5, %v4419_v22  ;;  %vm4228_vm10 = vcmp.eq.s32.totalorder %v4164_v55, 1  ;;  %v7939_v22 = vld [vmem:[#allocation45_spill] sm:$0xff] }
 0x362   : > { %v4420_v56 = vsel %vm4228_vm10, %v4332_v13, 0.0  ;;  %v4358_v55 = vrot.slane %v7939_v22, 1 }
 0x363   : > { %4452 = vst.msk [vmem:[#allocation2 + $0xc9] sm:$0xff] %vm1754_vm5, %v4420_v56  ;;  %4484 = vst.msk [vmem:[%s5164_s19 + $0x78] sm:$0xff] %vm1754_vm5, %v4420_v56 }
 0x364   : > { %v4360_v1 = vsel %vm1054_vm3, %v4358_v55, %v4359_v18 }
 0x365   : > { %v4167_v29 = vpop.permute.xlu0 %4166 }
 0x366   : > { %vm4229_vm6 = vcmp.eq.s32.totalorder %v4167_v29, 1  ;;  %v4362_v29 = vsel %vm1054_vm3, %v4359_v18, %v4361_v35 }
 0x367   : > { %v4421_v44 = vsel %vm4229_vm6, %v4335_v17, 0.0 }
 0x368   : > { %4453 = vst.msk [vmem:[#allocation2 + $0xd9] sm:$0xff] %vm1754_vm5, %v4421_v44  ;;  %4485 = vst.msk [vmem:[%s5164_s19 + $0x80] sm:$0xff] %vm1754_vm5, %v4421_v44  ;;  %v4170_v27 = vpop.permute.xlu1 %4169  ;;  %v7941_v44 = vld [vmem:[#allocation52_spill] sm:$0xff] }
 0x369   : > { %vm4230_vm11 = vcmp.eq.s32.totalorder %v4170_v27, 1  ;;  %v4364_v27 = vrot.slane %v7941_v44, 1 }
 0x36a   : > { %v4422_v24 = vsel %vm4230_vm11, %v4337_v42, 0.0  ;;  %v7942_v42 = vld [vmem:[#allocation50_spill] sm:$0xff] }
 0x36b   : > { %4454 = vst.msk [vmem:[#allocation2 + $0xe1] sm:$0xff] %vm1754_vm5, %v4422_v24  ;;  %4486 = vst.msk [vmem:[%s5164_s19 + $0x88] sm:$0xff] %vm1754_vm5, %v4422_v24  ;;  %v4363_v24 = vrot.slane %v7942_v42, 1 }
 0x36d   : > { %v4365_v38 = vsel %vm1054_vm3, %v4363_v24, %v4364_v27 }
 0x36e   : > { %v4173_v26 = vpop.permute.xlu0 %4172 }
 0x36f   : > { %vm4231_vm7 = vcmp.eq.s32.totalorder %v4173_v26, 1  ;;  %v4367_v26 = vsel %vm1054_vm3, %v4364_v27, %v4366_v12 }
 0x370   : > { %v4423_v41 = vsel %vm4231_vm7, %v4340_v39, 0.0  ;;  %v4176_v16 = vpop.permute.xlu1 %4175 }
 0x371   : > { %4455 = vst.msk [vmem:[#allocation2 + $0xf1] sm:$0xff] %vm1754_vm5, %v4423_v41  ;;  %4487 = vst.msk [vmem:[%s5164_s19 + $0x90] sm:$0xff] %vm1754_vm5, %v4423_v41  ;;  %vm4232_vm12 = vcmp.eq.s32.totalorder %v4176_v16, 1  ;;  %v7944_v41 = vld [vmem:[#allocation51_spill] sm:$0xff] }
 0x372   : > { %v4424_v19 = vsel %vm4232_vm12, %v4342_v7, 0.0  ;;  %v4369_v16 = vrot.slane %v7944_v41, 1  ;;  %v7945_v7 = vld [vmem:[#allocation16_spill] sm:$0xff] }
 0x373   : > { %4456 = vst.msk [vmem:[#allocation2 + $0xf9] sm:$0xff] %vm1754_vm5, %v4424_v19  ;;  %4488 = vst.msk [vmem:[%s5164_s19 + $0x98] sm:$0xff] %vm1754_vm5, %v4424_v19  ;;  %v4368_v19 = vrot.slane %v7945_v7, 1 }
 0x374   : > { %v4372_v58 = vsel %vm1054_vm3, %v4369_v16, %v4371_v37 }
 0x375   : > { %v4179_v11 = vpop.permute.xlu0 %4178  ;;  %v4370_v40 = vsel %vm1054_vm3, %v4368_v19, %v4369_v16 }
 0x376   : > { %vm4233_vm13 = vcmp.eq.s32.totalorder %v4179_v11, 1 }
 0x377   : > { %v4425_v48 = vsel %vm4233_vm13, %v4345_v54, 0.0 }
 0x378   : > { %4457 = vst.msk [vmem:[#allocation2 + $0x109] sm:$0xff] %vm1754_vm5, %v4425_v48  ;;  %4489 = vst.msk [vmem:[%s5164_s19 + $0xa0] sm:$0xff] %vm1754_vm5, %v4425_v48 }
 0x37b   : > { %v4182_v61 = vpop.permute.xlu1 %4181 }
 0x37c   : > { %vm4234_vm8 = vcmp.eq.s32.totalorder %v4182_v61, 1 }
 0x37d   : > { %v4426_v30 = vsel %vm4234_vm8, %v4347_v51, 0.0 }
 0x37e   : > { %4458 = vst.msk [vmem:[#allocation2 + $0x111] sm:$0xff] %vm1754_vm5, %v4426_v30  ;;  %4490 = vst.msk [vmem:[%s5164_s19 + $0xa8] sm:$0xff] %vm1754_vm5, %v4426_v30 }
 0x382   : > { %v4185_v57 = vpop.permute.xlu0 %4184 }
 0x383   : > { %vm4235_vm14 = vcmp.eq.s32.totalorder %v4185_v57, 1 }
 0x384   : > { %v4427_v60 = vsel %vm4235_vm14, %v4350_v10, 0.0 }
 0x385   : > { %4459 = vst.msk [vmem:[#allocation2 + $0x121] sm:$0xff] %vm1754_vm5, %v4427_v60  ;;  %4491 = vst.msk [vmem:[%s5164_s19 + $0xb0] sm:$0xff] %vm1754_vm5, %v4427_v60 }
 0x389   : > { %v4188_v15 = vpop.permute.xlu1 %4187 }
 0x38a   : > { %vm4236_vm15 = vcmp.eq.s32.totalorder %v4188_v15, 1 }
 0x38b   : > { %v4428_v9 = vsel %vm4236_vm15, %v4352_v53, 0.0 }
 0x38c   : > { %4460 = vst.msk [vmem:[#allocation2 + $0x129] sm:$0xff] %vm1754_vm5, %v4428_v9  ;;  %4492 = vst.msk [vmem:[%s5164_s19 + $0xb8] sm:$0xff] %vm1754_vm5, %v4428_v9 }
 0x391   : > { %v4191_v63 = vpop.permute.xlu0 %4190 }
 0x392   : > { %vm4237_vm0 = vcmp.eq.s32.totalorder %v4191_v63, 1 }
 0x393   : > { %v4429_v8 = vsel %vm4237_vm0, %v4355_v25, 0.0 }
 0x394   : > { %4461 = vst.msk [vmem:[#allocation2 + $0x139] sm:$0xff] %vm1754_vm5, %v4429_v8  ;;  %4493 = vst.msk [vmem:[%s5164_s19 + $0xc0] sm:$0xff] %vm1754_vm5, %v4429_v8 }
 0x396   : > { %v4194_v0 = vpop.permute.xlu1 %4193 }
 0x397   : > { %vm4238_vm1 = vcmp.eq.s32.totalorder %v4194_v0, 1 }
 0x398   : > { %v4430_v47 = vsel %vm4238_vm1, %v4357_v32, 0.0 }
 0x399   : > { %4462 = vst.msk [vmem:[#allocation2 + $0x141] sm:$0xff] %vm1754_vm5, %v4430_v47  ;;  %4494 = vst.msk [vmem:[%s5164_s19 + $0xc8] sm:$0xff] %vm1754_vm5, %v4430_v47 }
 0x39d   : > { %v4197_v13 = vpop.permute.xlu0 %4196 }
 0x39e   : > { %vm4239_vm2 = vcmp.eq.s32.totalorder %v4197_v13, 1 }
 0x39f   : > { %v4431_v56 = vsel %vm4239_vm2, %v4360_v1, 0.0 }
 0x3a0   : > { %4463 = vst.msk [vmem:[#allocation2 + $0x151] sm:$0xff] %vm1754_vm5, %v4431_v56  ;;  %4495 = vst.msk [vmem:[%s5164_s19 + $0xd0] sm:$0xff] %vm1754_vm5, %v4431_v56 }
 0x3a3   : > { %v4200_v28 = vpop.permute.xlu1 %4199 }
 0x3a4   : > { %vm4240_vm9 = vcmp.eq.s32.totalorder %v4200_v28, 1 }
 0x3a5   : > { %v4432_v17 = vsel %vm4240_vm9, %v4362_v29, 0.0 }
 0x3a6   : > { %4464 = vst.msk [vmem:[#allocation2 + $0x159] sm:$0xff] %vm1754_vm5, %v4432_v17  ;;  %4496 = vst.msk [vmem:[%s5164_s19 + $0xd8] sm:$0xff] %vm1754_vm5, %v4432_v17 }
 0x3a9   : > { %v4203_v2 = vpop.permute.xlu0 %4202 }
 0x3aa   : > { %vm4241_vm4 = vcmp.eq.s32.totalorder %v4203_v2, 1 }
 0x3ab   : > { %v4433_v3 = vsel %vm4241_vm4, %v4365_v38, 0.0 }
 0x3ac   : > { %4465 = vst.msk [vmem:[#allocation2 + $0x169] sm:$0xff] %vm1754_vm5, %v4433_v3  ;;  %4497 = vst.msk [vmem:[%s5164_s19 + $0xe0] sm:$0xff] %vm1754_vm5, %v4433_v3 }
 0x3ae   : > { %v4206_v59 = vpop.permute.xlu1 %4205 }
 0x3af   : > { %vm4242_vm10 = vcmp.eq.s32.totalorder %v4206_v59, 1 }
 0x3b0   : > { %v4434_v39 = vsel %vm4242_vm10, %v4367_v26, 0.0 }
 0x3b1   : > { %4466 = vst.msk [vmem:[#allocation2 + $0x171] sm:$0xff] %vm1754_vm5, %v4434_v39  ;;  %4498 = vst.msk [vmem:[%s5164_s19 + $0xe8] sm:$0xff] %vm1754_vm5, %v4434_v39 }
 0x3b5   : > { %v4209_v33 = vpop.permute.xlu0 %4208 }
 0x3b6   : > { %vm4243_vm6 = vcmp.eq.s32.totalorder %v4209_v33, 1 }
 0x3b7   : > { %v4435_v11 = vsel %vm4243_vm6, %v4370_v40, 0.0 }
 0x3b8   : > { %4467 = vst.msk [vmem:[#allocation2 + $0x181] sm:$0xff] %vm1754_vm5, %v4435_v11  ;;  %4499 = vst.msk [vmem:[%s5164_s19 + $0xf0] sm:$0xff] %vm1754_vm5, %v4435_v11 }
 0x3ba   : > { %v4212_v54 = vpop.permute.xlu1 %4211 }
 0x3bb   : > { %vm4244_vm11 = vcmp.eq.s32.totalorder %v4212_v54, 1 }
 0x3bc   : > { %v4436_v43 = vsel %vm4244_vm11, %v4372_v58, 0.0 }
 0x3bd   : > { %4468 = vst.msk [vmem:[#allocation2 + $0x189] sm:$0xff] %vm1754_vm5, %v4436_v43  ;;  %4500 = vst.msk [vmem:[%s5164_s19 + $0xf8] sm:$0xff] %vm1754_vm5, %v4436_v43 }
 0x3be PF: > { %s17_s28 = sadd.s32 1, %s5081_s28   ;;  %s7947_s24 = smov %s5073_s26 }
 0x3bf   : > { %p14_p8 = scmp.ge.s32.totalorder %s17_s28, 8   ;;  %s7948_s25 = smov %s5077_s27 }
 0x3c0   : > { %s7949_s26 = smov %s7952_s29  ;;  %s7950_s27 = smov %s7956_s30 }
 0x3c1   :  { %16 = sbr.rel (!%p14_p8) target bundleno = 3 (0x3), region = 84 }

</bundles_post_ra>
